<compile_context>
chip_gen: v7x
topology: tpu7x:2x2x1
jax: 0.10.0
libtpu: 0.0.40
codegen_flags: <defaults>
</compile_context>

<pallas_src>
import functools

import jax
import jax.numpy as jnp
from jax.experimental import pallas as pl
from jax.experimental.pallas import tpu as pltpu


OUT_C = 3      # recon_num of the PyTorch module
OUT_PAD = 8    # padded output channels (sublane-dense f32 stores)


def _round_up(x, m):
    return ((x + m - 1) // m) * m


# ----------------------------------------------------------------------------
# Pallas kernel: fused 5-layer per-point MLP (4x ReLU, last layer linear).
# Layout: activations are (channels, points) -> channels on sublanes,
# points on lanes; every layer is W (c_out, c_in) @ H (c_in, tile_n).
# ----------------------------------------------------------------------------
def _face_dec_kernel(x_ref,
                     w1_ref, b1_ref, w2_ref, b2_ref, w3_ref, b3_ref,
                     w4_ref, b4_ref, w5_ref, b5_ref,
                     out_ref):
    x = x_ref[...].astype(jnp.bfloat16)                      # (C_pad, tile_n)

    h = jnp.dot(w1_ref[...], x, preferred_element_type=jnp.float32) + b1_ref[...]
    h = jnp.maximum(h, 0.0)

    h = jnp.dot(w2_ref[...], h.astype(jnp.bfloat16),
                preferred_element_type=jnp.float32) + b2_ref[...]
    h = jnp.maximum(h, 0.0)

    h = jnp.dot(w3_ref[...], h.astype(jnp.bfloat16),
                preferred_element_type=jnp.float32) + b3_ref[...]
    h = jnp.maximum(h, 0.0)

    h = jnp.dot(w4_ref[...], h.astype(jnp.bfloat16),
                preferred_element_type=jnp.float32) + b4_ref[...]
    h = jnp.maximum(h, 0.0)

    y = jnp.dot(w5_ref[...], h.astype(jnp.bfloat16),
                preferred_element_type=jnp.float32) + b5_ref[...]
    out_ref[...] = y.astype(out_ref.dtype)                   # (OUT_PAD, tile_n)


# ----------------------------------------------------------------------------
# Wrapper: pads ragged dims, builds the grid, calls the kernel, undoes padding.
# ----------------------------------------------------------------------------
@functools.partial(jax.jit, static_argnames=("tile_n",))
def face_dec_forward(x_ncw, params, tile_n=512):
    """x_ncw: (B, dim_fuse, N) float32 (PyTorch NCW layout). Returns (B, N, 3)."""
    assert tile_n % 128 == 0
    B, C, N = x_ncw.shape
    (w1, b1), (w2, b2), (w3, b3), (w4, b4), (w5, b5) = params
    c_pad = w1.shape[1]
    assert C <= c_pad

    # Zero-pad channels up to the weight's (already padded) K and points up to
    # a multiple of the point tile.  Only the ragged remainders are padded.
    n_block = min(tile_n, _round_up(N, 128))
    n_total = _round_up(N, n_block)
    pad_c, pad_n = c_pad - C, n_total - N
    if pad_c or pad_n:
        x_ncw = jnp.pad(x_ncw, ((0, 0), (0, pad_c), (0, pad_n)))

    grid = (B, n_total // n_block)

    def _full(shape):
        # Whole array resident in VMEM every grid step (weights / biases).
        return pl.BlockSpec(shape, lambda b, j: (0, 0))

    in_specs = [pl.BlockSpec((None, c_pad, n_block), lambda b, j: (b, 0, j))]
    flat_args = [x_ncw]
    for w, b in params:
        in_specs += [_full(w.shape), _full(b.shape)]
        flat_args += [w, b]

    out_pad = w5.shape[0]
    flops = 2 * B * n_total * (c_pad * 512 + 512 * 512 + 512 * 256 +
                               256 * 128 + 128 * out_pad)
    bytes_accessed = (x_ncw.size * 4 + B * out_pad * n_total * 4 +
                      sum(w.size * 2 + b.size * 4 for w, b in params))

    out = pl.pallas_call(
        _face_dec_kernel,
        out_shape=jax.ShapeDtypeStruct((B, out_pad, n_total), jnp.float32),
        grid_spec=pltpu.PrefetchScalarGridSpec(
            num_scalar_prefetch=0,
            grid=grid,
            in_specs=in_specs,
            out_specs=pl.BlockSpec((None, out_pad, n_block),
                                   lambda b, j: (b, 0, j)),
        ),
        compiler_params=pltpu.CompilerParams(
            dimension_semantics=("parallel", "parallel"),
            vmem_limit_bytes=64 * 1024 * 1024),
        cost_estimate=pl.CostEstimate(flops=flops, transcendentals=0,
                                      bytes_accessed=bytes_accessed),
    )(*flat_args)

    # Drop padded channels / points; permute(0, 2, 1) of the tiny result.
    return jnp.transpose(out[:, :OUT_C, :N], (0, 2, 1))


# ----------------------------------------------------------------------------
# Parameter construction (deterministic) + eval-mode BatchNorm folding.
# Conv1d(c_in, c_out, 1) weight (c_out, c_in, 1) is kept as (c_out, c_in),
# which is exactly the lhs the channel-major kernel wants (no transpose).
# ----------------------------------------------------------------------------
def _make_layer(key, c_in, c_out, with_bn, k_pad=None, m_pad=None):
    k_w, k_b, k_g, k_be, k_m, k_v = jax.random.split(key, 6)
    w = jax.random.normal(k_w, (c_out, c_in), jnp.float32) / jnp.sqrt(c_in)
    b = 0.01 * jax.random.normal(k_b, (c_out,), jnp.float32)
    if with_bn:  # eval-mode BN folded in f32 before any bf16 cast
        gamma = 1.0 + 0.1 * jax.random.normal(k_g, (c_out,), jnp.float32)
        beta = 0.1 * jax.random.normal(k_be, (c_out,), jnp.float32)
        mean = 0.1 * jax.random.normal(k_m, (c_out,), jnp.float32)
        var = jnp.abs(1.0 + 0.1 * jax.random.normal(k_v, (c_out,), jnp.float32))
        scale = gamma / jnp.sqrt(var + 1e-5)
        w = w * scale[:, None]
        b = (b - mean) * scale + beta
    if k_pad is not None and k_pad > c_in:       # zero-pad contraction dim
        w = jnp.pad(w, ((0, 0), (0, k_pad - c_in)))
    if m_pad is not None and m_pad > c_out:      # zero-pad output channels
        w = jnp.pad(w, ((0, m_pad - c_out), (0, 0)))
        b = jnp.pad(b, (0, m_pad - c_out))
    # weights bf16 for the MXU, biases f32 as (c_out, 1) columns
    return w.astype(jnp.bfloat16), b.reshape(-1, 1).astype(jnp.float32)


def make_face_dec_params(dim_fuse, key):
    keys = jax.random.split(key, 5)
    c_pad = _round_up(dim_fuse, 8)
    layers = [(dim_fuse, 512, True, c_pad, None),
              (512, 512, True, None, None),
              (512, 256, True, None, None),
              (256, 128, True, None, None),
              (128, OUT_C, False, None, OUT_PAD)]
    return [_make_layer(k, ci, co, bn, kp, mp)
            for k, (ci, co, bn, kp, mp) in zip(keys, layers)]


# ----------------------------------------------------------------------------
# Pure-JAX reference with the same bf16-in / f32-accumulate arithmetic.
# ----------------------------------------------------------------------------
def face_dec_reference(x_ncw, params):
    B, C, N = x_ncw.shape
    h = jnp.transpose(x_ncw, (0, 2, 1)).reshape(B * N, C)
    k = params[0][0].shape[1]
    if C < k:
        h = jnp.pad(h, ((0, 0), (0, k - C)))
    for i, (w, b) in enumerate(params):
        h = jnp.dot(h.astype(jnp.bfloat16), w.T,
                    preferred_element_type=jnp.float32) + b[:, 0][None, :]
        if i < len(params) - 1:
            h = jnp.maximum(h, 0.0)
    return h[:, :OUT_C].reshape(B, N, OUT_C)


if __name__ == "__main__":
    key = jax.random.PRNGKey(0)
    k_x, k_p = jax.random.split(key)

    # Small shapes that exercise both padding paths:
    # dim_fuse not a multiple of 8, N not a multiple of 128.
    B, dim_fuse, N = 2, 60, 200
    x = jax.random.normal(k_x, (B, dim_fuse, N), jnp.float32)
    params = make_face_dec_params(dim_fuse, k_p)

    out = jax.block_until_ready(face_dec_forward(x, params))
    ref = face_dec_reference(x, params)

    assert out.shape == (B, N, 3), out.shape
    max_err = float(jnp.max(jnp.abs(out - ref)))
    assert jnp.allclose(out, ref, atol=2e-2, rtol=2e-2), max_err

    print("KERNEL_OK")
</pallas_src>

<mosaic_0001>
module attributes {stable_mosaic.version = 11 : i64} {
  func.func @_face_dec_kernel(%arg0: i32, %arg1: i32, %arg2: memref<1x64x256xf32, #tpu.memory_space<vmem>>, %arg3: memref<512x64xbf16, #tpu.memory_space<vmem>>, %arg4: memref<512x1xf32, #tpu.memory_space<vmem>>, %arg5: memref<512x512xbf16, #tpu.memory_space<vmem>>, %arg6: memref<512x1xf32, #tpu.memory_space<vmem>>, %arg7: memref<256x512xbf16, #tpu.memory_space<vmem>>, %arg8: memref<256x1xf32, #tpu.memory_space<vmem>>, %arg9: memref<128x256xbf16, #tpu.memory_space<vmem>>, %arg10: memref<128x1xf32, #tpu.memory_space<vmem>>, %arg11: memref<8x128xbf16, #tpu.memory_space<vmem>>, %arg12: memref<8x1xf32, #tpu.memory_space<vmem>>, %arg13: memref<1x8x256xf32, #tpu.memory_space<vmem>>) attributes {dimension_semantics = [#tpu.dimension_semantics<parallel>, #tpu.dimension_semantics<parallel>], iteration_bounds = array<i64: 2, 1>, scalar_prefetch = 0 : i64, scratch_operands = 0 : i64, tpu.core_type = #tpu.core_type<tc>, window_params = [{transform_indices = @transform_0, window_bounds = array<i64: 1, 64, 256>}, {pipeline_mode = #tpu.pipeline_mode<synchronous>, transform_indices = @transform_1, window_bounds = array<i64: 512, 64>}, {pipeline_mode = #tpu.pipeline_mode<synchronous>, transform_indices = @transform_2, window_bounds = array<i64: 512, 1>}, {pipeline_mode = #tpu.pipeline_mode<synchronous>, transform_indices = @transform_3, window_bounds = array<i64: 512, 512>}, {pipeline_mode = #tpu.pipeline_mode<synchronous>, transform_indices = @transform_4, window_bounds = array<i64: 512, 1>}, {pipeline_mode = #tpu.pipeline_mode<synchronous>, transform_indices = @transform_5, window_bounds = array<i64: 256, 512>}, {pipeline_mode = #tpu.pipeline_mode<synchronous>, transform_indices = @transform_6, window_bounds = array<i64: 256, 1>}, {pipeline_mode = #tpu.pipeline_mode<synchronous>, transform_indices = @transform_7, window_bounds = array<i64: 128, 256>}, {pipeline_mode = #tpu.pipeline_mode<synchronous>, transform_indices = @transform_8, window_bounds = array<i64: 128, 1>}, {pipeline_mode = #tpu.pipeline_mode<synchronous>, transform_indices = @transform_9, window_bounds = array<i64: 8, 128>}, {pipeline_mode = #tpu.pipeline_mode<synchronous>, transform_indices = @transform_10, window_bounds = array<i64: 8, 1>}, {transform_indices = @transform_11, window_bounds = array<i64: 1, 8, 256>}]} {
    %c0 = arith.constant 0 : index
    %c0_0 = arith.constant 0 : index
    %c0_1 = arith.constant 0 : index
    %0 = vector.load %arg2[%c0, %c0_0, %c0_1] : memref<1x64x256xf32, #tpu.memory_space<vmem>>, vector<1x64x256xf32>
    %1 = vector.shape_cast %0 : vector<1x64x256xf32> to vector<64x256xf32>
    %2 = arith.truncf %1 : vector<64x256xf32> to vector<64x256xbf16>
    %c0_2 = arith.constant 0 : index
    %c0_3 = arith.constant 0 : index
    %3 = vector.load %arg3[%c0_2, %c0_3] : memref<512x64xbf16, #tpu.memory_space<vmem>>, vector<512x64xbf16>
    %cst = arith.constant dense<0.000000e+00> : vector<512x256xf32>
    %4 = tpu.matmul %3, %2, %cst {dimension_numbers = #tpu.dot_dimension_numbers<[1], [0], [0], [1], [0, 0, 1, 1], [], []>} : vector<512x64xbf16>, vector<64x256xbf16>, vector<512x256xf32> -> vector<512x256xf32>
    %c0_4 = arith.constant 0 : index
    %c0_5 = arith.constant 0 : index
    %5 = vector.load %arg4[%c0_4, %c0_5] : memref<512x1xf32, #tpu.memory_space<vmem>>, vector<512x1xf32>
    %6 = vector.broadcast %5 : vector<512x1xf32> to vector<512x256xf32>
    %7 = arith.addf %4, %6 : vector<512x256xf32>
    %cst_6 = arith.constant 0.000000e+00 : f32
    %8 = vector.broadcast %cst_6 : f32 to vector<512x256xf32>
    %9 = arith.maximumf %7, %8 : vector<512x256xf32>
    %c0_7 = arith.constant 0 : index
    %c0_8 = arith.constant 0 : index
    %10 = vector.load %arg5[%c0_7, %c0_8] : memref<512x512xbf16, #tpu.memory_space<vmem>>, vector<512x512xbf16>
    %11 = arith.truncf %9 : vector<512x256xf32> to vector<512x256xbf16>
    %cst_9 = arith.constant dense<0.000000e+00> : vector<512x256xf32>
    %12 = tpu.matmul %10, %11, %cst_9 {dimension_numbers = #tpu.dot_dimension_numbers<[1], [0], [0], [1], [0, 0, 1, 1], [], []>} : vector<512x512xbf16>, vector<512x256xbf16>, vector<512x256xf32> -> vector<512x256xf32>
    %c0_10 = arith.constant 0 : index
    %c0_11 = arith.constant 0 : index
    %13 = vector.load %arg6[%c0_10, %c0_11] : memref<512x1xf32, #tpu.memory_space<vmem>>, vector<512x1xf32>
    %14 = vector.broadcast %13 : vector<512x1xf32> to vector<512x256xf32>
    %15 = arith.addf %12, %14 : vector<512x256xf32>
    %cst_12 = arith.constant 0.000000e+00 : f32
    %16 = vector.broadcast %cst_12 : f32 to vector<512x256xf32>
    %17 = arith.maximumf %15, %16 : vector<512x256xf32>
    %c0_13 = arith.constant 0 : index
    %c0_14 = arith.constant 0 : index
    %18 = vector.load %arg7[%c0_13, %c0_14] : memref<256x512xbf16, #tpu.memory_space<vmem>>, vector<256x512xbf16>
    %19 = arith.truncf %17 : vector<512x256xf32> to vector<512x256xbf16>
    %cst_15 = arith.constant dense<0.000000e+00> : vector<256x256xf32>
    %20 = tpu.matmul %18, %19, %cst_15 {dimension_numbers = #tpu.dot_dimension_numbers<[1], [0], [0], [1], [0, 0, 1, 1], [], []>} : vector<256x512xbf16>, vector<512x256xbf16>, vector<256x256xf32> -> vector<256x256xf32>
    %c0_16 = arith.constant 0 : index
    %c0_17 = arith.constant 0 : index
    %21 = vector.load %arg8[%c0_16, %c0_17] : memref<256x1xf32, #tpu.memory_space<vmem>>, vector<256x1xf32>
    %22 = vector.broadcast %21 : vector<256x1xf32> to vector<256x256xf32>
    %23 = arith.addf %20, %22 : vector<256x256xf32>
    %cst_18 = arith.constant 0.000000e+00 : f32
    %24 = vector.broadcast %cst_18 : f32 to vector<256x256xf32>
    %25 = arith.maximumf %23, %24 : vector<256x256xf32>
    %c0_19 = arith.constant 0 : index
    %c0_20 = arith.constant 0 : index
    %26 = vector.load %arg9[%c0_19, %c0_20] : memref<128x256xbf16, #tpu.memory_space<vmem>>, vector<128x256xbf16>
    %27 = arith.truncf %25 : vector<256x256xf32> to vector<256x256xbf16>
    %cst_21 = arith.constant dense<0.000000e+00> : vector<128x256xf32>
    %28 = tpu.matmul %26, %27, %cst_21 {dimension_numbers = #tpu.dot_dimension_numbers<[1], [0], [0], [1], [0, 0, 1, 1], [], []>} : vector<128x256xbf16>, vector<256x256xbf16>, vector<128x256xf32> -> vector<128x256xf32>
    %c0_22 = arith.constant 0 : index
    %c0_23 = arith.constant 0 : index
    %29 = vector.load %arg10[%c0_22, %c0_23] : memref<128x1xf32, #tpu.memory_space<vmem>>, vector<128x1xf32>
    %30 = vector.broadcast %29 : vector<128x1xf32> to vector<128x256xf32>
    %31 = arith.addf %28, %30 : vector<128x256xf32>
    %cst_24 = arith.constant 0.000000e+00 : f32
    %32 = vector.broadcast %cst_24 : f32 to vector<128x256xf32>
    %33 = arith.maximumf %31, %32 : vector<128x256xf32>
    %c0_25 = arith.constant 0 : index
    %c0_26 = arith.constant 0 : index
    %34 = vector.load %arg11[%c0_25, %c0_26] : memref<8x128xbf16, #tpu.memory_space<vmem>>, vector<8x128xbf16>
    %35 = arith.truncf %33 : vector<128x256xf32> to vector<128x256xbf16>
    %cst_27 = arith.constant dense<0.000000e+00> : vector<8x256xf32>
    %36 = tpu.matmul %34, %35, %cst_27 {dimension_numbers = #tpu.dot_dimension_numbers<[1], [0], [0], [1], [0, 0, 1, 1], [], []>} : vector<8x128xbf16>, vector<128x256xbf16>, vector<8x256xf32> -> vector<8x256xf32>
    %c0_28 = arith.constant 0 : index
    %c0_29 = arith.constant 0 : index
    %37 = vector.load %arg12[%c0_28, %c0_29] : memref<8x1xf32, #tpu.memory_space<vmem>>, vector<8x1xf32>
    %38 = vector.broadcast %37 : vector<8x1xf32> to vector<8x256xf32>
    %39 = arith.addf %36, %38 : vector<8x256xf32>
    %c0_30 = arith.constant 0 : index
    %c0_31 = arith.constant 0 : index
    %c0_32 = arith.constant 0 : index
    %40 = vector.load %arg13[%c0_30, %c0_31, %c0_32] : memref<1x8x256xf32, #tpu.memory_space<vmem>>, vector<1x8x256xf32>
    %41 = vector.shape_cast %40 : vector<1x8x256xf32> to vector<8x256xf32>
    %42 = vector.shape_cast %39 : vector<8x256xf32> to vector<1x8x256xf32>
    tpu.vector_store %arg13[%c0_30, %c0_31, %c0_32], %42 {strides = array<i32>} : memref<1x8x256xf32, #tpu.memory_space<vmem>>, vector<1x8x256xf32>,
    return
  }
  func.func @transform_0(%arg0: i32, %arg1: i32) -> (i32, i32, i32) {
    %c0_i32 = arith.constant 0 : i32
    %c0_i32_0 = arith.constant 0 : i32
    return %arg0, %c0_i32, %arg1 : i32, i32, i32
  }
  func.func @transform_1(%arg0: i32, %arg1: i32) -> (i32, i32) {
    %c0_i32 = arith.constant 0 : i32
    %c0_i32_0 = arith.constant 0 : i32
    %c0_i32_1 = arith.constant 0 : i32
    return %c0_i32, %c0_i32_0 : i32, i32
  }
  func.func @transform_2(%arg0: i32, %arg1: i32) -> (i32, i32) {
    %c0_i32 = arith.constant 0 : i32
    %c0_i32_0 = arith.constant 0 : i32
    %c0_i32_1 = arith.constant 0 : i32
    return %c0_i32, %c0_i32_0 : i32, i32
  }
  func.func @transform_3(%arg0: i32, %arg1: i32) -> (i32, i32) {
    %c0_i32 = arith.constant 0 : i32
    %c0_i32_0 = arith.constant 0 : i32
    %c0_i32_1 = arith.constant 0 : i32
    return %c0_i32, %c0_i32_0 : i32, i32
  }
  func.func @transform_4(%arg0: i32, %arg1: i32) -> (i32, i32) {
    %c0_i32 = arith.constant 0 : i32
    %c0_i32_0 = arith.constant 0 : i32
    %c0_i32_1 = arith.constant 0 : i32
    return %c0_i32, %c0_i32_0 : i32, i32
  }
  func.func @transform_5(%arg0: i32, %arg1: i32) -> (i32, i32) {
    %c0_i32 = arith.constant 0 : i32
    %c0_i32_0 = arith.constant 0 : i32
    %c0_i32_1 = arith.constant 0 : i32
    return %c0_i32, %c0_i32_0 : i32, i32
  }
  func.func @transform_6(%arg0: i32, %arg1: i32) -> (i32, i32) {
    %c0_i32 = arith.constant 0 : i32
    %c0_i32_0 = arith.constant 0 : i32
    %c0_i32_1 = arith.constant 0 : i32
    return %c0_i32, %c0_i32_0 : i32, i32
  }
  func.func @transform_7(%arg0: i32, %arg1: i32) -> (i32, i32) {
    %c0_i32 = arith.constant 0 : i32
    %c0_i32_0 = arith.constant 0 : i32
    %c0_i32_1 = arith.constant 0 : i32
    return %c0_i32, %c0_i32_0 : i32, i32
  }
  func.func @transform_8(%arg0: i32, %arg1: i32) -> (i32, i32) {
    %c0_i32 = arith.constant 0 : i32
    %c0_i32_0 = arith.constant 0 : i32
    %c0_i32_1 = arith.constant 0 : i32
    return %c0_i32, %c0_i32_0 : i32, i32
  }
  func.func @transform_9(%arg0: i32, %arg1: i32) -> (i32, i32) {
    %c0_i32 = arith.constant 0 : i32
    %c0_i32_0 = arith.constant 0 : i32
    %c0_i32_1 = arith.constant 0 : i32
    return %c0_i32, %c0_i32_0 : i32, i32
  }
  func.func @transform_10(%arg0: i32, %arg1: i32) -> (i32, i32) {
    %c0_i32 = arith.constant 0 : i32
    %c0_i32_0 = arith.constant 0 : i32
    %c0_i32_1 = arith.constant 0 : i32
    return %c0_i32, %c0_i32_0 : i32, i32
  }
  func.func @transform_11(%arg0: i32, %arg1: i32) -> (i32, i32, i32) {
    %c0_i32 = arith.constant 0 : i32
    %c0_i32_0 = arith.constant 0 : i32
    return %arg0, %c0_i32, %arg1 : i32, i32, i32
  }
}

</mosaic_0001>

<bundles_post_ra>
// kernel: face_dec_forward.1
= control target key start
LH: loop header
LB: loop body
LE: loop exit
PB: predicated region body
PF: predicated region fallthrough
CT: control target
= control target key end

     0   :  { %s8091_s0 = inlined_call_operand.hbm [shape: f32[2,64,256], index: 0, kind: input, shape index: {}]   ;;  %s8092_s1 = inlined_call_operand.hbm [shape: bf16[512,64], index: 1, kind: input, shape index: {}]   ;;  %s8093_s2 = inlined_call_operand.hbm [shape: f32[512,1], index: 2, kind: input, shape index: {}]   ;;  %s8094_s3 = inlined_call_operand.hbm [shape: bf16[512,512], index: 3, kind: input, shape index: {}]   ;;  %s8095_s4 = inlined_call_operand.hbm [shape: f32[512,1], index: 4, kind: input, shape index: {}]   ;;  %s8096_s5 = inlined_call_operand.hbm [shape: bf16[256,512], index: 5, kind: input, shape index: {}]   ;;  %s8097_s6 = inlined_call_operand.hbm [shape: f32[256,1], index: 6, kind: input, shape index: {}]   ;;  %s8098_s7 = inlined_call_operand.hbm [shape: bf16[128,256], index: 7, kind: input, shape index: {}]   ;;  %s8099_s8 = inlined_call_operand.hbm [shape: f32[128,1], index: 8, kind: input, shape index: {}]   ;;  %s8100_s9 = inlined_call_operand.hbm [shape: bf16[8,128], index: 9, kind: input, shape index: {}]   ;;  %s8101_s10 = inlined_call_operand.hbm [shape: f32[8,1], index: 10, kind: input, shape index: {}]   ;;  %s8102_s11 = inlined_call_operand.hbm [shape: f32[2,8,256], index: 11, kind: output, shape index: {}]  }
   0x1   :  { %8117 = sst [smem:[#allocation33_spill]] %s8091_s0 }
   0x2   :  { %8118 = sst [smem:[#allocation34_spill]] %s8092_s1 }
   0x3   :  { %8119 = sst [smem:[#allocation35_spill]] %s8094_s3 }
   0x4   :  { %8120 = sst [smem:[#allocation36_spill]] %s8102_s11 }
   0x5   :  { %16 = vsyncpa [#allocation3], 0 }
   0x6   :  { %18 = vsyncpa [#allocation3 + $0x1], 0 }
   0x7   :  { %19 = vsyncpa [#allocation6], 0 }
   0x8   :  { %20 = vsyncpa [#allocation9], 0 }
   0x9   :  { %21 = vsyncpa [#allocation12], 0 }
   0xa   :  { %22 = vsyncpa [#allocation15], 0 }
   0xb   :  { %23 = vsyncpa [#allocation18], 0 }
   0xc   :  { %24 = vsyncpa [#allocation4], 0 }
   0xd   :  { %26 = vsyncpa [#allocation4 + $0x1], 0  ;;  %s7250_s17 = smov 0   ;;  %s7252_s18 = smov 0  }
   0xe   :  { %s7254_s19 = smov 0   ;;  %s7256_s20 = smov 0  }
   0xf   :  { %s7258_s21 = smov 0   ;;  %s7260_s22 = smov 0  }
  0x10 LB: > { %8121 = sst [smem:[#allocation28_spill]] %s7161_s20  ;;  %s8103_s23 = sadd.s32 4294967295, %s7169_s22   ;;  %s7169_s22 = sphi %s7260_s22, %s32_s22   ;;  %s7165_s21 = sphi %s7258_s21, %s8158_s21   ;;  %s7161_s20 = sphi %s7256_s20, %s8157_s20   ;;  %s7157_s19 = sphi %s7254_s19, %s8156_s19   ;;  %s7153_s18 = sphi %s7252_s18, %s8155_s18   ;;  %s7149_s17 = sphi %s7250_s17, %s8154_s17  }
  0x11   : > { %p5550_p0 = scmp.ge.s32.totalorder %s7169_s22, 1  ;;  %p7284_p1 = scmp.eq.s32.totalorder %s8103_s23, 0 }
  0x12   : > { %p315_p2 = scmp.lt.s32.totalorder %s7169_s22, 3  ;;  %s7171_s26 = smov [#allocation5]  }
  0x13   : > { %s8122_s24 = scalar_select %p7284_p1, 1, 0 }
  0x14   : > { %p7289_p3 = pnand %p5550_p0, %p315_p2  ;;  %s327_s27 = sshll.u32 %s7171_s26, 4  ;;  %s7293_s27 = int_to_ptr.vmem [resolvable:$true] %s327_s27 }
  0x15   : > { %s7172_s29 = smov [#allocation8]   ;;  %s8126_s1 = sld [smem:[#allocation34_spill]] }
  0x16   : > { %s8123_s25 = scalar_select %p7289_p3, 1, 0 }
  0x17   : > { %p6285_p4 = pneg %p7289_p3  ;;  %s353_s30 = sshll.u32 %s7172_s29, 4  ;;  %s7304_s30 = int_to_ptr.vmem [resolvable:$true] %s353_s30 }
  0x18   : > { %8124 = sst [smem:[#allocation29_spill]] %s8123_s25 }
  0x19   : > { %p7300_p6 = pnand %p6285_p4, %p7284_p1 }
  0x1b   : > { %s6757_s14 = scalar_lea.hbm %s8126_s1, 4096  ;;  %p7314_p8 = pneg %p7300_p6 }
  0x1c   : > { %p6758_p7 = scmp.ne.s32.totalorder %s8126_s1, %s6757_s14  ;;  %p6764_p11 = scmp.lt.u32.totalorder %s6757_s14, %s8126_s1 }
  0x1e   : > { %p6760_p9 = pnand %p7314_p8, %p6758_p7 }
  0x20   : > { %p6761_p10 = pneg %p6760_p9 }
  0x22   : > { %p6766_p12 = pnand %p6764_p11, %p6761_p10 }
  0x24   : > { %6769 = shalt.err (!%p6766_p12)
}
  0x25   : > { %s6770_s12 = scalar_lea.vmem %s7293_s27, 4096  ;;  %p6778_p4 = scmp.lt.s32.totalorder %s7293_s27, %s7293_s27 }
  0x26   : > { %p6771_p13 = scmp.ne.s32.totalorder %s7293_s27, %s6770_s12  ;;  %p6779_p5 = scmp.lt.s32.totalorder %s6770_s12, %s6770_s12 }
  0x28   : > { %p6773_p0 = pnand %p6771_p13, %p7314_p8  ;;  %p6780_p7 = por %p6779_p5, %p6778_p4 }
  0x2a   : > { %p6774_p2 = pneg %p6773_p0 }
  0x2c   : > { %p6781_p9 = pnand %p6780_p7, %p6774_p2 }
  0x2e   : > { %6784 = shalt.err (!%p6781_p9)
}
  0x2f   : > { %s7173_s13 = smov 64   ;;  %s7174_s23 = smov 4  }
  0x30   : > { %6288 = dma.hbm_to_vmem [thread:$0]  (!%p7300_p6), %s8126_s1, 4096, %s7293_s27, [#allocation6], %s7173_s13, %s7173_s13, %s7174_s23  }
  0x31   : > { %s8128_s3 = sld [smem:[#allocation35_spill]] }
  0x37   : > { %s6785_s11 = scalar_lea.hbm %s8128_s3, 16384 }
  0x38   : > { %p6786_p5 = scmp.ne.s32.totalorder %s8128_s3, %s6785_s11  ;;  %p6792_p12 = scmp.lt.u32.totalorder %s6785_s11, %s8128_s3 }
  0x3a   : > { %p6788_p10 = pnand %p6786_p5, %p7314_p8 }
  0x3c   : > { %p6789_p11 = pneg %p6788_p10 }
  0x3e   : > { %p6794_p13 = pnand %p6792_p12, %p6789_p11 }
  0x40   : > { %6797 = shalt.err (!%p6794_p13)
}
  0x41   : > { %s6798_s27 = scalar_lea.vmem %s7304_s30, 16384  ;;  %p6806_p7 = scmp.lt.s32.totalorder %s7304_s30, %s7304_s30 }
  0x42   : > { %p6799_p0 = scmp.ne.s32.totalorder %s7304_s30, %s6798_s27  ;;  %p6807_p9 = scmp.lt.s32.totalorder %s6798_s27, %s6798_s27 }
  0x44   : > { %p6801_p2 = pnand %p6799_p0, %p7314_p8  ;;  %p6808_p5 = por %p6807_p9, %p6806_p7 }
  0x46   : > { %p6802_p4 = pneg %p6801_p2 }
  0x48   : > { %p6809_p10 = pnand %p6808_p5, %p6802_p4 }
  0x4a   : > { %6812 = shalt.err (!%p6809_p10)
}
  0x4b   : > { %s8110_s20 = smov 256   ;;  %s8111_s0 = smov 16  }
  0x4c   : > { %6294 = dma.hbm_to_vmem [thread:$0]  (!%p7300_p6), %s8128_s3, 16384, %s7304_s30, [#allocation9], %s8110_s20, %s8110_s20, %s8111_s0  }
  0x4d   : > { %s7177_s13 = smov [#allocation11]   ;;  %s6813_s16 = scalar_lea.hbm %s8096_s5, 8192 }
  0x4e   : > { %s379_s23 = sshll.u32 %s7177_s13, 4  ;;  %p6814_p11 = scmp.ne.s32.totalorder %s8096_s5, %s6813_s16  ;;  %s380_s23 = int_to_ptr.vmem [resolvable:$true] %s379_s23 }
  0x4f   : > { %p6820_p0 = scmp.lt.u32.totalorder %s6813_s16, %s8096_s5 }
  0x50   : > { %p6816_p12 = pnand %p6814_p11, %p7314_p8 }
  0x52   : > { %p6817_p13 = pneg %p6816_p12 }
  0x54   : > { %p6822_p2 = pnand %p6820_p0, %p6817_p13 }
  0x56   : > { %6825 = shalt.err (!%p6822_p2)
}
  0x57   : > { %s6826_s30 = scalar_lea.vmem %s380_s23, 8192  ;;  %p6834_p5 = scmp.lt.s32.totalorder %s380_s23, %s380_s23 }
  0x58   : > { %p6827_p4 = scmp.ne.s32.totalorder %s380_s23, %s6826_s30  ;;  %p6835_p10 = scmp.lt.s32.totalorder %s6826_s30, %s6826_s30 }
  0x5a   : > { %p6829_p7 = pnand %p6827_p4, %p7314_p8  ;;  %p6836_p3 = por %p6835_p10, %p6834_p5 }
  0x5c   : > { %p6830_p9 = pneg %p6829_p7 }
  0x5e   : > { %p6837_p1 = pnand %p6836_p3, %p6830_p9 }
  0x60   : > { %6840 = shalt.err (!%p6837_p1)
}
  0x61   : > { %6300 = dma.hbm_to_vmem [thread:$0]  (!%p7300_p6), %s8096_s5, 8192, %s380_s23, [#allocation12], %s8110_s20, %s8110_s20, %s8111_s0  }
  0x62   : > { %s7178_s25 = smov [#allocation14]   ;;  %s7179_s14 = smov [#allocation17]  }
  0x63   : > { %s405_s13 = sshll.u32 %s7178_s25, 4  ;;  %s432_s15 = sshll.u32 %s7179_s14, 4  ;;  %s406_s13 = int_to_ptr.vmem [resolvable:$true] %s405_s13  ;;  %s433_s15 = int_to_ptr.vmem [resolvable:$true] %s432_s15 }
  0x64   : > { %s6841_s12 = scalar_lea.hbm %s8098_s7, 2048 }
  0x65   : > { %p6842_p1 = scmp.ne.s32.totalorder %s8098_s7, %s6841_s12  ;;  %p6848_p12 = scmp.lt.u32.totalorder %s6841_s12, %s8098_s7 }
  0x67   : > { %p6844_p3 = pnand %p6842_p1, %p7314_p8 }
  0x69   : > { %p6845_p11 = pneg %p6844_p3 }
  0x6b   : > { %p6850_p13 = pnand %p6848_p12, %p6845_p11 }
  0x6d   : > { %6853 = shalt.err (!%p6850_p13)
}
  0x6e   : > { %s6854_s23 = scalar_lea.vmem %s406_s13, 2048  ;;  %p6862_p7 = scmp.lt.s32.totalorder %s406_s13, %s406_s13 }
  0x6f   : > { %p6855_p0 = scmp.ne.s32.totalorder %s406_s13, %s6854_s23  ;;  %p6863_p9 = scmp.lt.s32.totalorder %s6854_s23, %s6854_s23 }
  0x71   : > { %p6857_p2 = pnand %p6855_p0, %p7314_p8  ;;  %p6864_p5 = por %p6863_p9, %p6862_p7 }
  0x73   : > { %p6858_p4 = pneg %p6857_p2 }
  0x75   : > { %p6865_p10 = pnand %p6864_p5, %p6858_p4 }
  0x77   : > { %6868 = shalt.err (!%p6865_p10)
}
  0x78   : > { %s7180_s11 = smov 128   ;;  %s7181_s25 = smov 8  }
  0x79   : > { %6306 = dma.hbm_to_vmem [thread:$0]  (!%p7300_p6), %s8098_s7, 2048, %s406_s13, [#allocation15], %s7180_s11, %s7180_s11, %s7181_s25  }
  0x7a   : > { %s6869_s12 = scalar_lea.hbm %s8100_s9, 64 }
  0x7b   : > { %p6870_p1 = scmp.ne.s32.totalorder %s8100_s9, %s6869_s12  ;;  %p6876_p12 = scmp.lt.u32.totalorder %s6869_s12, %s8100_s9 }
  0x7d   : > { %p6872_p3 = pnand %p6870_p1, %p7314_p8 }
  0x7f   : > { %p6873_p11 = pneg %p6872_p3 }
  0x81   : > { %p6878_p13 = pnand %p6876_p12, %p6873_p11 }
  0x83   : > { %6881 = shalt.err (!%p6878_p13)
}
  0x84   : > { %s6882_s3 = scalar_lea.vmem %s433_s15, 64  ;;  %p6890_p7 = scmp.lt.s32.totalorder %s433_s15, %s433_s15 }
  0x85   : > { %p6883_p0 = scmp.ne.s32.totalorder %s433_s15, %s6882_s3  ;;  %p6891_p9 = scmp.lt.s32.totalorder %s6882_s3, %s6882_s3 }
  0x87   : > { %p6885_p2 = pnand %p6883_p0, %p7314_p8  ;;  %p6892_p5 = por %p6891_p9, %p6890_p7 }
  0x89   : > { %p6886_p4 = pneg %p6885_p2 }
  0x8b   : > { %p6893_p10 = pnand %p6892_p5, %p6886_p4 }
  0x8d   : > { %6896 = shalt.err (!%p6893_p10)
}
  0x8e   : > { %6312 = dma.hbm_to_vmem [thread:$0]  (!%p7300_p6), %s8100_s9, 64, %s433_s15, [#allocation18]  }
  0x8f   : > { %s7182_s16 = smov [#allocation7]   ;;  %s7183_s12 = smov [#allocation10]  }
  0x90   : > { %s340_s29 = sshll.u32 %s7182_s16, 4  ;;  %s366_s27 = sshll.u32 %s7183_s12, 4  ;;  %s341_s29 = int_to_ptr.vmem [resolvable:$true] %s340_s29  ;;  %s367_s27 = int_to_ptr.vmem [resolvable:$true] %s366_s27 }
  0x91   : > { %s6897_s23 = scalar_lea.hbm %s8093_s2, 8192 }
  0x92   : > { %p6898_p1 = scmp.ne.s32.totalorder %s8093_s2, %s6897_s23  ;;  %p6904_p12 = scmp.lt.u32.totalorder %s6897_s23, %s8093_s2 }
  0x94   : > { %p6900_p3 = pnand %p6898_p1, %p7314_p8 }
  0x96   : > { %p6901_p11 = pneg %p6900_p3 }
  0x98   : > { %p6906_p13 = pnand %p6904_p12, %p6901_p11 }
  0x9a   : > { %6909 = shalt.err (!%p6906_p13)
}
  0x9b   : > { %s6910_s15 = scalar_lea.vmem %s341_s29, 8192  ;;  %p6918_p7 = scmp.lt.s32.totalorder %s341_s29, %s341_s29 }
  0x9c   : > { %p6911_p0 = scmp.ne.s32.totalorder %s341_s29, %s6910_s15  ;;  %p6919_p9 = scmp.lt.s32.totalorder %s6910_s15, %s6910_s15 }
  0x9e   : > { %p6913_p2 = pnand %p6911_p0, %p7314_p8  ;;  %p6920_p5 = por %p6919_p9, %p6918_p7 }
  0xa0   : > { %p6914_p4 = pneg %p6913_p2 }
  0xa2   : > { %p6921_p10 = pnand %p6920_p5, %p6914_p4 }
  0xa4   : > { %6924 = shalt.err (!%p6921_p10)
}
  0xa5   : > { %6291 = dma.hbm_to_vmem [thread:$0]  (!%p7300_p6), %s8093_s2, 8192, %s341_s29, [#allocation6], %s7180_s11, %s7180_s11, %s7181_s25  }
  0xa6   : > { %s6925_s12 = scalar_lea.hbm %s8095_s4, 8192 }
  0xa7   : > { %p6926_p1 = scmp.ne.s32.totalorder %s8095_s4, %s6925_s12  ;;  %p6932_p12 = scmp.lt.u32.totalorder %s6925_s12, %s8095_s4 }
  0xa9   : > { %p6928_p3 = pnand %p6926_p1, %p7314_p8 }
  0xab   : > { %p6929_p11 = pneg %p6928_p3 }
  0xad   : > { %p6934_p13 = pnand %p6932_p12, %p6929_p11 }
  0xaf   : > { %6937 = shalt.err (!%p6934_p13)
}
  0xb0   : > { %s6938_s13 = scalar_lea.vmem %s367_s27, 8192  ;;  %p6946_p7 = scmp.lt.s32.totalorder %s367_s27, %s367_s27 }
  0xb1   : > { %p6939_p0 = scmp.ne.s32.totalorder %s367_s27, %s6938_s13  ;;  %p6947_p9 = scmp.lt.s32.totalorder %s6938_s13, %s6938_s13 }
  0xb3   : > { %p6941_p2 = pnand %p6939_p0, %p7314_p8  ;;  %p6948_p5 = por %p6947_p9, %p6946_p7 }
  0xb5   : > { %p6942_p4 = pneg %p6941_p2 }
  0xb7   : > { %p6949_p10 = pnand %p6948_p5, %p6942_p4 }
  0xb9   : > { %6952 = shalt.err (!%p6949_p10)
}
  0xba   : > { %6297 = dma.hbm_to_vmem [thread:$0]  (!%p7300_p6), %s8095_s4, 8192, %s367_s27, [#allocation9], %s7180_s11, %s7180_s11, %s7181_s25  }
  0xbb   : > { %s7184_s20 = smov [#allocation13]   ;;  %s7185_s14 = smov [#allocation16]  }
  0xbc   : > { %s392_s0 = sshll.u32 %s7184_s20, 4  ;;  %s418_s16 = sshll.u32 %s7185_s14, 4  ;;  %s393_s0 = int_to_ptr.vmem [resolvable:$true] %s392_s0  ;;  %s419_s16 = int_to_ptr.vmem [resolvable:$true] %s418_s16 }
  0xbd   : > { %s6953_s1 = scalar_lea.hbm %s8097_s6, 4096 }
  0xbe   : > { %p6954_p1 = scmp.ne.s32.totalorder %s8097_s6, %s6953_s1  ;;  %p6960_p12 = scmp.lt.u32.totalorder %s6953_s1, %s8097_s6 }
  0xc0   : > { %p6956_p3 = pnand %p6954_p1, %p7314_p8 }
  0xc2   : > { %p6957_p11 = pneg %p6956_p3 }
  0xc4   : > { %p6962_p13 = pnand %p6960_p12, %p6957_p11 }
  0xc6   : > { %6965 = shalt.err (!%p6962_p13)
}
  0xc7   : > { %s6966_s27 = scalar_lea.vmem %s393_s0, 4096  ;;  %p6974_p7 = scmp.lt.s32.totalorder %s393_s0, %s393_s0 }
  0xc8   : > { %p6967_p0 = scmp.ne.s32.totalorder %s393_s0, %s6966_s27  ;;  %p6975_p9 = scmp.lt.s32.totalorder %s6966_s27, %s6966_s27 }
  0xca   : > { %p6969_p2 = pnand %p6967_p0, %p7314_p8  ;;  %p6976_p5 = por %p6975_p9, %p6974_p7 }
  0xcc   : > { %p6970_p4 = pneg %p6969_p2 }
  0xce   : > { %p6977_p10 = pnand %p6976_p5, %p6970_p4 }
  0xd0   : > { %6980 = shalt.err (!%p6977_p10)
}
  0xd1   : > { %6303 = dma.hbm_to_vmem [thread:$0]  (!%p7300_p6), %s8097_s6, 4096, %s393_s0, [#allocation12], %s7180_s11, %s7180_s11, %s7181_s25  }
  0xd2   : > { %s6981_s30 = scalar_lea.hbm %s8099_s8, 2048 }
  0xd3   : > { %p6982_p1 = scmp.ne.s32.totalorder %s8099_s8, %s6981_s30  ;;  %p6988_p12 = scmp.lt.u32.totalorder %s6981_s30, %s8099_s8 }
  0xd5   : > { %p6984_p3 = pnand %p6982_p1, %p7314_p8 }
  0xd7   : > { %p6985_p11 = pneg %p6984_p3 }
  0xd9   : > { %p6990_p13 = pnand %p6988_p12, %p6985_p11 }
  0xdb   : > { %6993 = shalt.err (!%p6990_p13)
}
  0xdc   : > { %s6994_s29 = scalar_lea.vmem %s419_s16, 2048  ;;  %p7002_p7 = scmp.lt.s32.totalorder %s419_s16, %s419_s16 }
  0xdd   : > { %p6995_p0 = scmp.ne.s32.totalorder %s419_s16, %s6994_s29  ;;  %p7003_p9 = scmp.lt.s32.totalorder %s6994_s29, %s6994_s29 }
  0xdf   : > { %p6997_p2 = pnand %p6995_p0, %p7314_p8  ;;  %p7004_p5 = por %p7003_p9, %p7002_p7 }
  0xe1   : > { %p6998_p4 = pneg %p6997_p2 }
  0xe3   : > { %p7005_p10 = pnand %p7004_p5, %p6998_p4 }
  0xe5   : > { %7008 = shalt.err (!%p7005_p10)
}
  0xe6   : > { %6309 = dma.hbm_to_vmem [thread:$0]  (!%p7300_p6), %s8099_s8, 2048, %s419_s16, [#allocation15], %s7180_s11, %s7180_s11, %s7181_s25  }
  0xe7   : > { %s7186_s15 = smov [#allocation19]   ;;  %s7009_s30 = scalar_lea.hbm %s8101_s10, 128 }
  0xe8   : > { %s443_s20 = sshll.u32 %s7186_s15, 4  ;;  %p7010_p1 = scmp.ne.s32.totalorder %s8101_s10, %s7009_s30  ;;  %s444_s20 = int_to_ptr.vmem [resolvable:$true] %s443_s20 }
  0xe9   : > { %p7016_p12 = scmp.lt.u32.totalorder %s7009_s30, %s8101_s10 }
  0xea   : > { %p7012_p3 = pnand %p7010_p1, %p7314_p8 }
  0xec   : > { %p7013_p11 = pneg %p7012_p3 }
  0xee   : > { %p7018_p13 = pnand %p7016_p12, %p7013_p11 }
  0xf0   : > { %7021 = shalt.err (!%p7018_p13)
}
  0xf1   : > { %s7022_s11 = scalar_lea.vmem %s444_s20, 128  ;;  %p7030_p7 = scmp.lt.s32.totalorder %s444_s20, %s444_s20 }
  0xf2   : > { %p7023_p0 = scmp.ne.s32.totalorder %s444_s20, %s7022_s11  ;;  %p7031_p9 = scmp.lt.s32.totalorder %s7022_s11, %s7022_s11 }
  0xf4   : > { %p7025_p2 = pnand %p7023_p0, %p7314_p8  ;;  %p7032_p5 = por %p7031_p9, %p7030_p7 }
  0xf6   : > { %p7026_p4 = pneg %p7025_p2 }
  0xf8   : > { %p7033_p10 = pnand %p7032_p5, %p7026_p4 }
  0xfa   : > { %7036 = shalt.err (!%p7033_p10)
}
  0xfb   : > { %6315 = dma.hbm_to_vmem [thread:$0]  (!%p7300_p6), %s8101_s10, 128, %s444_s20, [#allocation18]  }
  0xfc   : > { %s5549_s26 = sadd.s32 4294967294, %s7169_s22   ;;  %s44_s29 = sadd.s32 1, %s7165_s21 }
  0xfd   : > { %p46_p8 = scmp.ge.s32.totalorder %s44_s29, 2  ;;  %s53_s28 = sadd.s32 1, %s7157_s19 }
  0xfe   : > { %p60_p1 = scmp.ne.s32.totalorder %s7157_s19, %s7153_s18  ;;  %p61_p3 = scmp.eq.s32.totalorder %s7169_s22, 0 }
  0xff   : > { %s8160_s29 = smov (%p46_p8, %s44_s29), 0  ;;  %p66_p12 = scmp.ne.s32.totalorder %s7153_s18, %s7149_s17 }
 0x100   : > { %p7531_p11 = por %p61_p3, %p60_p1  ;;  %s48_s27 = ssub.s32 %s7165_s21, %s8160_s29 }
 0x101   : > { %s8130_s15 = sadd.s32 4294967295, %s7169_s22   ;;  %p51_p13 = scmp.eq.s32.totalorder %s48_s27, 0 }
 0x102   : > { %p302_p6 = scmp.eq.s32.totalorder %s8130_s15, 1  ;;  %p8131_p0 = scmp.ne.s32.totalorder %s8122_s24, 0 }
 0x103   : > { %p308_p7 = scmp.eq.s32.totalorder %s5549_s26, 1  ;;  %p6334_p5 = scmp.lt.s32.totalorder %s7169_s22, 2 }
 0x104   : > { %p7543_p2 = por %p8131_p0, %p66_p12  ;;  %p7547_p4 = por %p302_p6, %p60_p1 }
 0x105   : > { %s7552_s12 = scalar_select %p51_p13, %s7157_s19, %s53_s28  }
 0x106   : > { %s8133_s14 = scalar_select %p7547_p4, 1, 0 }
 0x107   : > { %p7554_p9 = por %p308_p7, %p66_p12  ;;  %s454_s1 = sand.u32 1, %s7157_s19  }
 0x108   : > { %s5855_s23 = sshll.u32 %s7165_s21, 11  ;;  %s5562_s3 = sshll.u32 %s454_s1, 7 }
 0x109   : > { %s8134_s30 = scalar_select %p7554_p9, 1, 0 }
 0x10a   : > { %s8135_s25 = sld [smem:[#allocation33_spill]]  ;;  %s458_s26 = scalar_lea.vmem [#allocation2], %s5562_s3 }
 0x10b   : > { %s467_s28 = sshll.u32 %s458_s26, 4  ;;  %p7568_p10 = pnand %p6334_p5, %p7531_p11  ;;  %s7572_s28 = int_to_ptr.vmem [resolvable:$true] %s467_s28 }
 0x10c   : > { %s7574_s15 = scalar_lea.sflag [#allocation3], %s454_s1 }
 0x10d   : > { %p7039_p1 = pneg %p7568_p10 }
 0x110   : > { %s7564_s16 = scalar_lea.hbm %s8135_s25, %s5855_s23  ;;  %s7042_s3 = scalar_lea.hbm %s8135_s25, 4096 }
 0x111   : > { %s7037_s13 = scalar_lea.hbm %s7564_s16, 2048  ;;  %p7043_p11 = scmp.lt.u32.totalorder %s7564_s16, %s8135_s25 }
 0x112   : > { %p7038_p8 = scmp.ne.s32.totalorder %s7564_s16, %s7037_s13  ;;  %p7044_p6 = scmp.lt.u32.totalorder %s7042_s3, %s7037_s13 }
 0x113   : > { %p7046_p0 = scmp.lt.u32.totalorder %s7037_s13, %s7564_s16 }
 0x114   : > { %p7040_p3 = pnand %p7039_p1, %p7038_p8  ;;  %p7045_p13 = por %p7044_p6, %p7043_p11 }
 0x116   : > { %p7041_p12 = pneg %p7040_p3  ;;  %p7047_p7 = por %p7046_p0, %p7045_p13 }
 0x118   : > { %p7048_p5 = pnand %p7047_p7, %p7041_p12 }
 0x11a   : > { %7051 = shalt.err (!%p7048_p5)
}
 0x11b   : > { %s7052_s1 = scalar_lea.vmem %s7572_s28, 2048  ;;  %s7187_s23 = smov [#allocation2]  }
 0x11c   : > { %p7053_p8 = scmp.ne.s32.totalorder %s7572_s28, %s7052_s1  ;;  %s7057_s0 = sshll.u32 %s7187_s23, 4  ;;  %s7058_s0 = int_to_ptr.vmem [resolvable:$false] %s7057_s0 }
 0x11d   : > { %s7059_s11 = scalar_lea.vmem %s7058_s0, 4096  ;;  %p7060_p4 = scmp.lt.s32.totalorder %s7572_s28, %s7058_s0 }
 0x11e   : > { %p7055_p3 = pnand %p7053_p8, %p7039_p1  ;;  %p7061_p11 = scmp.lt.s32.totalorder %s7059_s11, %s7052_s1 }
 0x120   : > { %p7056_p9 = pneg %p7055_p3  ;;  %p7062_p6 = por %p7061_p11, %p7060_p4 }
 0x122   : > { %p7063_p13 = pnand %p7062_p6, %p7056_p9 }
 0x124   : > { %7066 = shalt.err (!%p7063_p13)
}
 0x125   : > { %s8137_s13 = smov 16   ;;  %s8138_s3 = smov 256  }
 0x126   : > { %6319 = dma.hbm_to_vmem [thread:$0]  (!%p7568_p10), %s7564_s16, 2048, %s7572_s28, %s7574_s15, %s8138_s3, %s8138_s3, %s8137_s13  }
 0x127   : > { %s8139_s26 = sld [smem:[#allocation29_spill]] }
 0x12d   : > { %p8140_p1 = scmp.ne.s32.totalorder %s8139_s26, 0 }
 0x12f   : > { %479 = sbr.rel (%p8140_p1) target bundleno = 2274 (0x8e2), region = 64 }
 0x136   : > { %s7608_s23 = sand.u32 1, %s7153_s18  }
 0x137   : > { %s5566_s1 = sshll.u32 %s7608_s23, 7  ;;  %s482_s0 = scalar_lea.sflag [#allocation3], %s7608_s23 }
 0x138   : > { %s7612_s11 = scalar_lea.vmem [#allocation2], %s5566_s1 }
 0x139   : > { %7120 = dma.done.wait (%p7543_p2), %s482_s0, 2048  }
 0x13a   : > { %7122 = vsyncadd (%p7543_p2), %s482_s0, 4294965248  ;;  %p8141_p4 = scmp.ne.s32.totalorder %s8122_s24, 0 }
 0x13c   : > { %7124 = dma.done.wait (%p8141_p4), [#allocation6], 12288  }
 0x13d   : > { %7126 = vsyncadd (%p8141_p4), [#allocation6], 4294955008 }
 0x13e   : > { %7128 = dma.done.wait (%p8141_p4), [#allocation9], 24576  }
 0x13f   : > { %7130 = vsyncadd (%p8141_p4), [#allocation9], 4294942720 }
 0x140   : > { %7132 = dma.done.wait (%p8141_p4), [#allocation12], 12288  }
 0x141   : > { %7134 = vsyncadd (%p8141_p4), [#allocation12], 4294955008 }
 0x142   : > { %7136 = dma.done.wait (%p8141_p4), [#allocation15], 4096  }
 0x143   : > { %7138 = vsyncadd (%p8141_p4), [#allocation15], 4294963200 }
 0x144   : > { %7140 = dma.done.wait (%p8141_p4), [#allocation18], 192  }
 0x145   : > { %7142 = vsyncadd (%p8141_p4), [#allocation18], 4294967104  ;;  %v8113_v0 = vmov 0   ;;  %v657_v1 = vld [vmem:[#allocation7 + $0x10] sm:$0xff]  ;;  %v655_v2 = vld [vmem:[#allocation7] sm:$0xff]  ;;  %vm1199_vm0 = vcmask 523264  }
 0x146   : > { %6412 = vset.pattern.permute.xlu1 %v8113_v0  ;;  %6411 = vset.pattern.permute.xlu0 %v8113_v0  ;;  %v568_v3 = vld [vmem:[%s7612_s11 + $0x8] sm:$0xff]  ;;  %v570_v4 = vld [vmem:[%s7612_s11 + $0x18] sm:$0xff]  ;;  %v567_v5 = vld [vmem:[%s7612_s11] sm:$0xff]  ;;  %s8149_s24 = sld [smem:[#allocation28_spill]]  ;;  %s5577_s20 = sshll.u32 %s7608_s23, 4 }
 0x147   : > { %1328 = vmatprep.mubr.bf16.mxu0 %v8113_v0  ;;  %731 = vperm.xlu1 %6412, %v657_v1   ;;  %v569_v6 = vld [vmem:[%s7612_s11 + $0x10] sm:$0xff]  ;;  %v584_v7 = vpack.c.bf16 %v570_v4, %v568_v3  ;;  %v658_v9 = vld [vmem:[#allocation7 + $0x18] sm:$0xff]  ;;  %v656_v10 = vld [vmem:[#allocation7 + $0x8] sm:$0xff]  ;;  %s563_s28 = scalar_lea.vmem [#allocation20], %s5577_s20  ;;  %s8150_s3 = sld [smem:[#allocation36_spill]] }
 0x148   : > { %721 = vperm.xlu0 %6411, %v655_v2   ;;  %v583_v8 = vpack.c.bf16 %v569_v6, %v567_v5  ;;  %v572_v11 = vld [vmem:[%s7612_s11 + $0x28] sm:$0xff]  ;;  %v574_v12 = vld [vmem:[%s7612_s11 + $0x38] sm:$0xff]  ;;  %v571_v13 = vld [vmem:[%s7612_s11 + $0x20] sm:$0xff]  ;;  %s5369_s27 = sshll.u32 %s563_s28, 4  ;;  %s5353_s1 = scalar_lea.sflag [#allocation4], %s7608_s23  ;;  %s8044_s27 = int_to_ptr.vmem [resolvable:$true] %s5369_s27 }
 0x149   : > { %v573_v14 = vld [vmem:[%s7612_s11 + $0x30] sm:$0xff]  ;;  %1296 = vmatprep.subr.bf16.mxu0 %v584_v7  ;;  %v586_v15 = vpack.c.bf16 %v574_v12, %v572_v11  ;;  %v576_v16 = vld [vmem:[%s7612_s11 + $0x48] sm:$0xff]  ;;  %v578_v18 = vld [vmem:[%s7612_s11 + $0x58] sm:$0xff]  ;;  %s7067_s0 = scalar_lea.vmem %s8044_s27, 256  ;;  %p8151_p9 = scmp.ne.s32.totalorder %s8133_s14, 0 }
 0x14a   : > { %1297 = vmatpush1.bf16.msra.mxu0 %v583_v8  ;;  %v585_v17 = vpack.c.bf16 %v573_v14, %v571_v13  ;;  %v660_v19 = vld [vmem:[#allocation7 + $0x28] sm:$0xff]  ;;  %v588_v20 = vpack.c.bf16 %v578_v18, %v576_v16  ;;  %v575_v21 = vld [vmem:[%s7612_s11 + $0x40] sm:$0xff]  ;;  %v577_v22 = vld [vmem:[%s7612_s11 + $0x50] sm:$0xff]  ;;  %p7068_p2 = scmp.ne.s32.totalorder %s8044_s27, %s7067_s0 }
 0x14b   : > { %736 = vperm.xlu1 %6412, %v658_v9   ;;  %1298 = vmatprep.subr.bf16.mxu0 %v586_v15  ;;  %v659_v23 = vld [vmem:[#allocation7 + $0x20] sm:$0xff]  ;;  %v580_v24 = vld [vmem:[%s7612_s11 + $0x68] sm:$0xff]  ;;  %v582_v25 = vld [vmem:[%s7612_s11 + $0x78] sm:$0xff]  ;;  %v587_v26 = vpack.c.bf16 %v577_v22, %v575_v21 }
 0x14c   : > { %726 = vperm.xlu0 %6411, %v656_v10   ;;  %v662_v27 = vld [vmem:[#allocation7 + $0x38] sm:$0xff]  ;;  %v590_v28 = vpack.c.bf16 %v582_v25, %v580_v24  ;;  %v579_v29 = vld [vmem:[%s7612_s11 + $0x60] sm:$0xff]  ;;  %v581_v30 = vld [vmem:[%s7612_s11 + $0x70] sm:$0xff]  ;;  %s5856_s16 = sshll.u32 %s8149_s24, 8  ;;  %p7069_p10 = pnand %p7068_p2, %p8151_p9 }
 0x14d   : > { %v661_v31 = vld [vmem:[#allocation7 + $0x30] sm:$0xff]  ;;  %v589_v32 = vpack.c.bf16 %v581_v30, %v579_v29  ;;  %v664_v33 = vld [vmem:[#allocation7 + $0x48] sm:$0xff]  ;;  %v663_v34 = vld [vmem:[#allocation7 + $0x40] sm:$0xff]  ;;  %s8042_s26 = scalar_lea.hbm %s8150_s3, %s5856_s16  ;;  %s7189_s11 = smov [#allocation20]  }
 0x14e   : > { %1299 = vmatpush1.bf16.msra.mxu0 %v585_v17  ;;  %v6413_v35 = vld [vmem:[#allocation5] sm:$0xff]   ;;  %v666_v36 = vld [vmem:[#allocation7 + $0x58] sm:$0xff]  ;;  %v665_v37 = vld [vmem:[#allocation7 + $0x50] sm:$0xff]  ;;  %p7070_p12 = pneg %p7069_p10  ;;  %s7071_s24 = sshll.u32 %s7189_s11, 4  ;;  %s7072_s24 = int_to_ptr.vmem [resolvable:$false] %s7071_s24 }
 0x14f   : > { %746 = vperm.xlu1 %6412, %v660_v19   ;;  %1300 = vmatprep.subr.bf16.mxu0 %v588_v20  ;;  %v668_v38 = vld [vmem:[#allocation7 + $0x68] sm:$0xff]  ;;  %v667_v39 = vld [vmem:[#allocation7 + $0x60] sm:$0xff]  ;;  %v670_v41 = vld [vmem:[#allocation7 + $0x78] sm:$0xff]  ;;  %s7073_s20 = scalar_lea.vmem %s7072_s24, 512  ;;  %p7074_p0 = scmp.lt.s32.totalorder %s8044_s27, %s7072_s24 }
 0x150   : > { %741 = vperm.xlu0 %6411, %v659_v23   ;;  %v6414_v40 = vld [vmem:[#allocation5 + $0x8] sm:$0xff]   ;;  %v669_v42 = vld [vmem:[#allocation7 + $0x70] sm:$0xff]  ;;  %v671_v44 = vld [vmem:[#allocation7 + $0x80] sm:$0xff]  ;;  %p7075_p7 = scmp.lt.s32.totalorder %s7073_s20, %s7067_s0 }
 0x151   : > { %v672_v43 = vld [vmem:[#allocation7 + $0x88] sm:$0xff]  ;;  %v6415_v45 = vld [vmem:[#allocation5 + $0x10] sm:$0xff]   ;;  %v674_v46 = vld [vmem:[#allocation7 + $0x98] sm:$0xff] }
 0x152   : > { %1301 = vmatpush1.bf16.msra.mxu0 %v587_v26  ;;  %v673_v47 = vld [vmem:[#allocation7 + $0x90] sm:$0xff]  ;;  %v676_v48 = vld [vmem:[#allocation7 + $0xa8] sm:$0xff]  ;;  %v675_v49 = vld [vmem:[#allocation7 + $0xa0] sm:$0xff]  ;;  %p7076_p5 = por %p7075_p7, %p7074_p0 }
 0x153   : > { %756 = vperm.xlu1 %6412, %v662_v27   ;;  %1302 = vmatprep.subr.bf16.mxu0 %v590_v28  ;;  %v6416_v50 = vld [vmem:[#allocation5 + $0x18] sm:$0xff]   ;;  %v677_v52 = vld [vmem:[#allocation7 + $0xb0] sm:$0xff]  ;;  %v680_v53 = vld [vmem:[#allocation7 + $0xc8] sm:$0xff] }
 0x154   : > { %751 = vperm.xlu0 %6411, %v661_v31   ;;  %v678_v51 = vld [vmem:[#allocation7 + $0xb8] sm:$0xff]  ;;  %v679_v54 = vld [vmem:[#allocation7 + $0xc0] sm:$0xff]  ;;  %v681_v57 = vld [vmem:[#allocation7 + $0xd0] sm:$0xff]  ;;  %p7077_p8 = pnand %p7076_p5, %p7070_p12 }
 0x155   : > { %v6417_v55 = vld [vmem:[#allocation5 + $0x20] sm:$0xff]   ;;  %v682_v56 = vld [vmem:[#allocation7 + $0xd8] sm:$0xff]  ;;  %v684_v58 = vld [vmem:[#allocation7 + $0xe8] sm:$0xff] }
 0x156   : > { %1303 = vmatpush1.bf16.msra.mxu0 %v589_v32  ;;  %v683_v59 = vld [vmem:[#allocation7 + $0xe0] sm:$0xff]  ;;  %v6418_v60 = vld [vmem:[#allocation5 + $0x28] sm:$0xff]   ;;  %v686_v61 = vld [vmem:[#allocation7 + $0xf8] sm:$0xff] }
 0x157   : > { %766 = vperm.xlu1 %6412, %v664_v33   ;;  %v685_v62 = vld [vmem:[#allocation7 + $0xf0] sm:$0xff]  ;;  %v688_v63 = vld [vmem:[#allocation7 + $0x108] sm:$0xff]  ;;  %v687_v1 = vld [vmem:[#allocation7 + $0x100] sm:$0xff] }
 0x158   : > { %761 = vperm.xlu0 %6411, %v663_v34   ;;  %v6419_v2 = vld [vmem:[#allocation5 + $0x30] sm:$0xff]   ;;  %v690_v3 = vld [vmem:[#allocation7 + $0x118] sm:$0xff]  ;;  %v692_v5 = vld [vmem:[#allocation7 + $0x128] sm:$0xff] }
 0x159   : > { %5610 = vmatmul.mubr.msk.bf16.vlgmr.msra.gmra.mrb[0].mxu0 %vm1199_vm0, %v6413_v35  ;;  %v689_v4 = vld [vmem:[#allocation7 + $0x110] sm:$0xff]  ;;  %v691_v6 = vld [vmem:[#allocation7 + $0x120] sm:$0xff]  ;;  %v6420_v7 = vld [vmem:[#allocation5 + $0x38] sm:$0xff]  }
 0x15a   : > { %1338 = vmatprep.mubr.bf16.mxu0 %v8113_v0  ;;  %v694_v8 = vld [vmem:[#allocation7 + $0x138] sm:$0xff]  ;;  %v693_v9 = vld [vmem:[#allocation7 + $0x130] sm:$0xff]  ;;  %v696_v10 = vld [vmem:[#allocation7 + $0x148] sm:$0xff] }
 0x15b   : > { %776 = vperm.xlu1 %6412, %v666_v36   ;;  %v695_v11 = vld [vmem:[#allocation7 + $0x140] sm:$0xff]  ;;  %v698_v13 = vld [vmem:[#allocation7 + $0x158] sm:$0xff]  ;;  %v697_v14 = vld [vmem:[#allocation7 + $0x150] sm:$0xff] }
 0x15c   : > { %771 = vperm.xlu0 %6411, %v665_v37   ;;  %v6421_v12 = vld [vmem:[#allocation5 + $0x40] sm:$0xff]   ;;  %v700_v15 = vld [vmem:[#allocation7 + $0x168] sm:$0xff]  ;;  %v702_v18 = vld [vmem:[#allocation7 + $0x178] sm:$0xff] }
 0x15d   : > { %v699_v16 = vld [vmem:[#allocation7 + $0x160] sm:$0xff]  ;;  %v6422_v17 = vld [vmem:[#allocation5 + $0x48] sm:$0xff]   ;;  %v701_v19 = vld [vmem:[#allocation7 + $0x170] sm:$0xff] }
 0x15e   : > { %v704_v20 = vld [vmem:[#allocation7 + $0x188] sm:$0xff]  ;;  %v703_v21 = vld [vmem:[#allocation7 + $0x180] sm:$0xff]  ;;  %v6423_v22 = vld [vmem:[#allocation5 + $0x50] sm:$0xff]  }
 0x15f   : > { %786 = vperm.xlu1 %6412, %v668_v38   ;;  %v706_v23 = vld [vmem:[#allocation7 + $0x198] sm:$0xff]  ;;  %v705_v24 = vld [vmem:[#allocation7 + $0x190] sm:$0xff]  ;;  %v708_v25 = vld [vmem:[#allocation7 + $0x1a8] sm:$0xff] }
 0x160   : > { %781 = vperm.xlu0 %6411, %v667_v39   ;;  %v707_v26 = vld [vmem:[#allocation7 + $0x1a0] sm:$0xff]  ;;  %v6424_v27 = vld [vmem:[#allocation5 + $0x58] sm:$0xff]   ;;  %v709_v29 = vld [vmem:[#allocation7 + $0x1b0] sm:$0xff] }
 0x161   : > { %5611 = vmatmul.mubr.msk.bf16.gmra.mrb[4].mxu0 %vm1199_vm0, %v6414_v40  ;;  %v710_v28 = vld [vmem:[#allocation7 + $0x1b8] sm:$0xff]  ;;  %v712_v30 = vld [vmem:[#allocation7 + $0x1c8] sm:$0xff]  ;;  %v711_v31 = vld [vmem:[#allocation7 + $0x1c0] sm:$0xff] }
 0x162   : > { %1348 = vmatprep.mubr.bf16.mxu0 %v8113_v0  ;;  %v6425_v32 = vld [vmem:[#allocation5 + $0x60] sm:$0xff]   ;;  %v714_v33 = vld [vmem:[#allocation7 + $0x1d8] sm:$0xff]  ;;  %v713_v34 = vld [vmem:[#allocation7 + $0x1d0] sm:$0xff] }
 0x163   : > { %796 = vperm.xlu1 %6412, %v670_v41   ;;  %v716_v35 = vld [vmem:[#allocation7 + $0x1e8] sm:$0xff]  ;;  %v715_v36 = vld [vmem:[#allocation7 + $0x1e0] sm:$0xff]  ;;  %v718_v38 = vld [vmem:[#allocation7 + $0x1f8] sm:$0xff] }
 0x164   : > { %791 = vperm.xlu0 %6411, %v669_v42   ;;  %v6426_v37 = vld [vmem:[#allocation5 + $0x68] sm:$0xff]   ;;  %v717_v39 = vld [vmem:[#allocation7 + $0x1f0] sm:$0xff]  ;;  %v1969_v41 = vld [vmem:[#allocation10] sm:$0xff] }
 0x165   : > { %v1970_v40 = vld [vmem:[#allocation10 + $0x8] sm:$0xff]  ;;  %v6427_v42 = vld [vmem:[#allocation5 + $0x70] sm:$0xff]  }
 0x167   : > { %806 = vperm.xlu1 %6412, %v672_v43  }
 0x168   : > { %801 = vperm.xlu0 %6411, %v671_v44  }
 0x169   : > { %5612 = vmatmul.mubr.msk.bf16.gmra.mrb[8].mxu0 %vm1199_vm0, %v6415_v45  ;;  %v1972_v45 = vld [vmem:[#allocation10 + $0x18] sm:$0xff] }
 0x16a   : > { %1358 = vmatprep.mubr.bf16.mxu0 %v8113_v0 }
 0x16b   : > { %816 = vperm.xlu1 %6412, %v674_v46   ;;  %v1971_v46 = vld [vmem:[#allocation10 + $0x10] sm:$0xff] }
 0x16c   : > { %811 = vperm.xlu0 %6411, %v673_v47  }
 0x16f   : > { %826 = vperm.xlu1 %6412, %v676_v48  }
 0x170   : > { %821 = vperm.xlu0 %6411, %v675_v49   ;;  %v1974_v49 = vld [vmem:[#allocation10 + $0x28] sm:$0xff] }
 0x171   : > { %5613 = vmatmul.mubr.msk.bf16.gmra.mrb[12].mxu0 %vm1199_vm0, %v6416_v50  ;;  %v1973_v50 = vld [vmem:[#allocation10 + $0x20] sm:$0xff] }
 0x172   : > { %1368 = vmatprep.mubr.bf16.mxu0 %v8113_v0 }
 0x173   : > { %836 = vperm.xlu1 %6412, %v678_v51   ;;  %v6428_v51 = vld [vmem:[#allocation5 + $0x78] sm:$0xff]  }
 0x174   : > { %831 = vperm.xlu0 %6411, %v677_v52  }
 0x177   : > { %846 = vperm.xlu1 %6412, %v680_v53  }
 0x178   : > { %841 = vperm.xlu0 %6411, %v679_v54   ;;  %v1976_v54 = vld [vmem:[#allocation10 + $0x38] sm:$0xff] }
 0x179   : > { %5614 = vmatmul.mubr.msk.bf16.gmra.mrb[16].mxu0 %vm1199_vm0, %v6417_v55  ;;  %v1975_v55 = vld [vmem:[#allocation10 + $0x30] sm:$0xff] }
 0x17a   : > { %1378 = vmatprep.mubr.bf16.mxu0 %v8113_v0 }
 0x17b   : > { %856 = vperm.xlu1 %6412, %v682_v56  }
 0x17c   : > { %851 = vperm.xlu0 %6411, %v681_v57  }
 0x17f   : > { %866 = vperm.xlu1 %6412, %v684_v58   ;;  %v1978_v58 = vld [vmem:[#allocation10 + $0x48] sm:$0xff] }
 0x180   : > { %861 = vperm.xlu0 %6411, %v683_v59   ;;  %v1977_v59 = vld [vmem:[#allocation10 + $0x40] sm:$0xff] }
 0x181   : > { %5615 = vmatmul.mubr.msk.bf16.gmra.mrb[20].mxu0 %vm1199_vm0, %v6418_v60  ;;  %v6429_v60 = vld [vmem:[#allocation5 + $0x80] sm:$0xff]  }
 0x182   : > { %1388 = vmatprep.mubr.bf16.mxu0 %v8113_v0 }
 0x183   : > { %876 = vperm.xlu1 %6412, %v686_v61  }
 0x184   : > { %871 = vperm.xlu0 %6411, %v685_v62  }
 0x187   : > { %886 = vperm.xlu1 %6412, %v688_v63   ;;  %v1980_v63 = vld [vmem:[#allocation10 + $0x58] sm:$0xff] }
 0x188   : > { %881 = vperm.xlu0 %6411, %v687_v1   ;;  %v1979_v1 = vld [vmem:[#allocation10 + $0x50] sm:$0xff] }
 0x189   : > { %5616 = vmatmul.mubr.msk.bf16.gmra.mrb[24].mxu0 %vm1199_vm0, %v6419_v2  ;;  %v1982_v2 = vld [vmem:[#allocation10 + $0x68] sm:$0xff] }
 0x18a   : > { %1398 = vmatprep.mubr.bf16.mxu0 %v8113_v0 }
 0x18b   : > { %896 = vperm.xlu1 %6412, %v690_v3   ;;  %v1981_v3 = vld [vmem:[#allocation10 + $0x60] sm:$0xff] }
 0x18c   : > { %891 = vperm.xlu0 %6411, %v689_v4  }
 0x18f   : > { %906 = vperm.xlu1 %6412, %v692_v5   ;;  %v6430_v5 = vld [vmem:[#allocation5 + $0x88] sm:$0xff]  }
 0x190   : > { %901 = vperm.xlu0 %6411, %v691_v6  }
 0x191   : > { %5617 = vmatmul.mubr.msk.bf16.gmra.mrb[28].mxu0 %vm1199_vm0, %v6420_v7  ;;  %v1984_v7 = vld [vmem:[#allocation10 + $0x78] sm:$0xff] }
 0x192   : > { %1408 = vmatprep.mubr.bf16.mxu0 %v8113_v0 }
 0x193   : > { %916 = vperm.xlu1 %6412, %v694_v8   ;;  %v1983_v8 = vld [vmem:[#allocation10 + $0x70] sm:$0xff] }
 0x194   : > { %911 = vperm.xlu0 %6411, %v693_v9  }
 0x197   : > { %926 = vperm.xlu1 %6412, %v696_v10  }
 0x198   : > { %921 = vperm.xlu0 %6411, %v695_v11   ;;  %v1986_v11 = vld [vmem:[#allocation10 + $0x88] sm:$0xff] }
 0x199   : > { %5618 = vmatmul.mubr.msk.bf16.gmra.mrb[32].mxu0 %vm1199_vm0, %v6421_v12  ;;  %v1985_v12 = vld [vmem:[#allocation10 + $0x80] sm:$0xff] }
 0x19a   : > { %1418 = vmatprep.mubr.bf16.mxu0 %v8113_v0 }
 0x19b   : > { %936 = vperm.xlu1 %6412, %v698_v13   ;;  %v6431_v13 = vld [vmem:[#allocation5 + $0x90] sm:$0xff]  }
 0x19c   : > { %931 = vperm.xlu0 %6411, %v697_v14  }
 0x19f   : > { %946 = vperm.xlu1 %6412, %v700_v15   ;;  %v1988_v15 = vld [vmem:[#allocation10 + $0x98] sm:$0xff] }
 0x1a0   : > { %941 = vperm.xlu0 %6411, %v699_v16  }
 0x1a1   : > { %5619 = vmatmul.mubr.msk.bf16.gmra.mrb[36].mxu0 %vm1199_vm0, %v6422_v17  ;;  %v1987_v17 = vld [vmem:[#allocation10 + $0x90] sm:$0xff] }
 0x1a2   : > { %1428 = vmatprep.mubr.bf16.mxu0 %v8113_v0 }
 0x1a3   : > { %956 = vperm.xlu1 %6412, %v702_v18   ;;  %v1990_v18 = vld [vmem:[#allocation10 + $0xa8] sm:$0xff] }
 0x1a4   : > { %951 = vperm.xlu0 %6411, %v701_v19   ;;  %v1989_v19 = vld [vmem:[#allocation10 + $0xa0] sm:$0xff] }
 0x1a7   : > { %966 = vperm.xlu1 %6412, %v704_v20  }
 0x1a8   : > { %961 = vperm.xlu0 %6411, %v703_v21   ;;  %v6432_v21 = vld [vmem:[#allocation5 + $0x98] sm:$0xff]  }
 0x1a9   : > { %5620 = vmatmul.mubr.msk.bf16.gmra.mrb[40].mxu0 %vm1199_vm0, %v6423_v22 }
 0x1aa   : > { %1438 = vmatprep.mubr.bf16.mxu0 %v8113_v0 }
 0x1ab   : > { %976 = vperm.xlu1 %6412, %v706_v23   ;;  %v1992_v23 = vld [vmem:[#allocation10 + $0xb8] sm:$0xff] }
 0x1ac   : > { %971 = vperm.xlu0 %6411, %v705_v24   ;;  %v1991_v24 = vld [vmem:[#allocation10 + $0xb0] sm:$0xff] }
 0x1af   : > { %986 = vperm.xlu1 %6412, %v708_v25  }
 0x1b0   : > { %981 = vperm.xlu0 %6411, %v707_v26   ;;  %v1994_v26 = vld [vmem:[#allocation10 + $0xc8] sm:$0xff] }
 0x1b1   : > { %5621 = vmatmul.mubr.msk.bf16.gmra.mrb[44].mxu0 %vm1199_vm0, %v6424_v27 }
 0x1b2   : > { %1448 = vmatprep.mubr.bf16.mxu0 %v8113_v0 }
 0x1b3   : > { %996 = vperm.xlu1 %6412, %v710_v28   ;;  %v1993_v28 = vld [vmem:[#allocation10 + $0xc0] sm:$0xff] }
 0x1b4   : > { %991 = vperm.xlu0 %6411, %v709_v29   ;;  %v6433_v29 = vld [vmem:[#allocation5 + $0xa0] sm:$0xff]  }
 0x1b7   : > { %1006 = vperm.xlu1 %6412, %v712_v30   ;;  %v1996_v30 = vld [vmem:[#allocation10 + $0xd8] sm:$0xff] }
 0x1b8   : > { %1001 = vperm.xlu0 %6411, %v711_v31   ;;  %v1995_v31 = vld [vmem:[#allocation10 + $0xd0] sm:$0xff] }
 0x1b9   : > { %5622 = vmatmul.mubr.msk.bf16.gmra.mrb[48].mxu0 %vm1199_vm0, %v6425_v32 }
 0x1ba   : > { %1458 = vmatprep.mubr.bf16.mxu0 %v8113_v0 }
 0x1bb   : > { %1016 = vperm.xlu1 %6412, %v714_v33  }
 0x1bc   : > { %1011 = vperm.xlu0 %6411, %v713_v34   ;;  %v1998_v34 = vld [vmem:[#allocation10 + $0xe8] sm:$0xff] }
 0x1bf   : > { %1026 = vperm.xlu1 %6412, %v716_v35   ;;  %v1997_v35 = vld [vmem:[#allocation10 + $0xe0] sm:$0xff] }
 0x1c0   : > { %1021 = vperm.xlu0 %6411, %v715_v36   ;;  %v6434_v36 = vld [vmem:[#allocation5 + $0xa8] sm:$0xff]  }
 0x1c1   : > { %5623 = vmatmul.mubr.msk.bf16.gmra.mrb[52].mxu0 %vm1199_vm0, %v6426_v37 }
 0x1c2   : > { %1468 = vmatprep.mubr.bf16.mxu0 %v8113_v0 }
 0x1c3   : > { %1036 = vperm.xlu1 %6412, %v718_v38   ;;  %v2000_v38 = vld [vmem:[#allocation10 + $0xf8] sm:$0xff] }
 0x1c4   : > { %1031 = vperm.xlu0 %6411, %v717_v39  }
 0x1c6   : > { %v7685_v43 = vpop.permute.xlu1 %731 }
 0x1c7   : > { %v7687_v44 = vpop.permute.xlu0 %721  ;;  %2040 = vperm.xlu1 %6412, %v1970_v40   ;;  %v1999_v40 = vld [vmem:[#allocation10 + $0xf0] sm:$0xff] }
 0x1c8   : > { %2035 = vperm.xlu0 %6411, %v1969_v41   ;;  %v2002_v41 = vld [vmem:[#allocation10 + $0x108] sm:$0xff] }
 0x1c9   : > { %5624 = vmatmul.mubr.msk.bf16.gmra.mrb[56].mxu0 %vm1199_vm0, %v6427_v42  ;;  %v2001_v42 = vld [vmem:[#allocation10 + $0x100] sm:$0xff] }
 0x1ca   : > { %v7690_v47 = vpop.permute.xlu1 %736  ;;  %1478 = vmatprep.mubr.bf16.mxu0 %v8113_v0 }
 0x1cb   : > { %v7692_v48 = vpop.permute.xlu0 %726  ;;  %2050 = vperm.xlu1 %6412, %v1972_v45  }
 0x1cc   : > { %2045 = vperm.xlu0 %6411, %v1971_v46   ;;  %v6435_v46 = vld [vmem:[#allocation5 + $0xb0] sm:$0xff]  }
 0x1ce   : > { %v7695_v52 = vpop.permute.xlu1 %746 }
 0x1cf   : > { %v7697_v53 = vpop.permute.xlu0 %741  ;;  %2060 = vperm.xlu1 %6412, %v1974_v49  }
 0x1d0   : > { %2055 = vperm.xlu0 %6411, %v1973_v50   ;;  %v2004_v50 = vld [vmem:[#allocation10 + $0x118] sm:$0xff] }
 0x1d1   : > { %5625 = vmatmul.mubr.msk.bf16.gmra.mrb[60].mxu0 %vm1199_vm0, %v6428_v51  ;;  %v2003_v51 = vld [vmem:[#allocation10 + $0x110] sm:$0xff] }
 0x1d2   : > { %v7700_v56 = vpop.permute.xlu1 %756  ;;  %1488 = vmatprep.mubr.bf16.mxu0 %v8113_v0 }
 0x1d3   : > { %v7702_v57 = vpop.permute.xlu0 %751  ;;  %2070 = vperm.xlu1 %6412, %v1976_v54  }
 0x1d4   : > { %2065 = vperm.xlu0 %6411, %v1975_v55   ;;  %v2006_v55 = vld [vmem:[#allocation10 + $0x128] sm:$0xff] }
 0x1d6   : > { %v7705_v61 = vpop.permute.xlu1 %766 }
 0x1d7   : > { %v7707_v62 = vpop.permute.xlu0 %761  ;;  %2080 = vperm.xlu1 %6412, %v1978_v58  }
 0x1d8   : > { %2075 = vperm.xlu0 %6411, %v1977_v59   ;;  %v2005_v59 = vld [vmem:[#allocation10 + $0x120] sm:$0xff] }
 0x1d9   : > { %5626 = vmatmul.mubr.msk.bf16.gmra.mrb[64].mxu0 %vm1199_vm0, %v6429_v60  ;;  %v6436_v60 = vld [vmem:[#allocation5 + $0xb8] sm:$0xff]  }
 0x1da   : > { %1498 = vmatprep.mubr.bf16.mxu0 %v8113_v0  ;;  %v7713_v6 = vpop.permute.xlu1 %776 }
 0x1db   : > { %2090 = vperm.xlu1 %6412, %v1980_v63   ;;  %v7711_v4 = vpop.permute.xlu0 %771  ;;  %v2008_v63 = vld [vmem:[#allocation10 + $0x138] sm:$0xff] }
 0x1dc   : > { %2085 = vperm.xlu0 %6411, %v1979_v1   ;;  %v2007_v1 = vld [vmem:[#allocation10 + $0x130] sm:$0xff] }
 0x1de   : > { %v7718_v10 = vpop.permute.xlu1 %786 }
 0x1df   : > { %2100 = vperm.xlu1 %6412, %v1982_v2   ;;  %v7715_v9 = vpop.permute.xlu0 %781 }
 0x1e0   : > { %2095 = vperm.xlu0 %6411, %v1981_v3  }
 0x1e1   : > { %5627 = vmatmul.mubr.msk.bf16.gmra.mrb[68].mxu0 %vm1199_vm0, %v6430_v5  ;;  %v2010_v5 = vld [vmem:[#allocation10 + $0x148] sm:$0xff] }
 0x1e2   : > { %1508 = vmatprep.mubr.bf16.mxu0 %v8113_v0  ;;  %v7723_v16 = vpop.permute.xlu1 %796 }
 0x1e3   : > { %2110 = vperm.xlu1 %6412, %v1984_v7   ;;  %v7721_v14 = vpop.permute.xlu0 %791  ;;  %v2009_v7 = vld [vmem:[#allocation10 + $0x140] sm:$0xff] }
 0x1e4   : > { %2105 = vperm.xlu0 %6411, %v1983_v8   ;;  %v6437_v8 = vld [vmem:[#allocation5 + $0xc0] sm:$0xff]  }
 0x1e6   : > { %v7729_v22 = vpop.permute.xlu1 %806 }
 0x1e7   : > { %2120 = vperm.xlu1 %6412, %v1986_v11   ;;  %v7727_v20 = vpop.permute.xlu0 %801 }
 0x1e8   : > { %2115 = vperm.xlu0 %6411, %v1985_v12   ;;  %v2012_v12 = vld [vmem:[#allocation10 + $0x158] sm:$0xff] }
 0x1e9   : > { %5628 = vmatmul.mubr.msk.bf16.gmra.mrb[72].mxu0 %vm1199_vm0, %v6431_v13 }
 0x1ea   : > { %1518 = vmatprep.mubr.bf16.mxu0 %v8113_v0  ;;  %v7735_v27 = vpop.permute.xlu1 %816 }
 0x1eb   : > { %2130 = vperm.xlu1 %6412, %v1988_v15   ;;  %v7733_v25 = vpop.permute.xlu0 %811  ;;  %v2011_v15 = vld [vmem:[#allocation10 + $0x150] sm:$0xff] }
 0x1ec   : > { %2125 = vperm.xlu0 %6411, %v1987_v17   ;;  %v2014_v17 = vld [vmem:[#allocation10 + $0x168] sm:$0xff] }
 0x1ee   : > { %v7740_v33 = vpop.permute.xlu1 %826 }
 0x1ef   : > { %2140 = vperm.xlu1 %6412, %v1990_v18   ;;  %v7737_v32 = vpop.permute.xlu0 %821  ;;  %v2013_v18 = vld [vmem:[#allocation10 + $0x160] sm:$0xff] }
 0x1f0   : > { %2135 = vperm.xlu0 %6411, %v1989_v19  }
 0x1f1   : > { %5629 = vmatmul.mubr.msk.bf16.gmra.mrb[76].mxu0 %vm1199_vm0, %v6432_v21  ;;  %v6438_v21 = vld [vmem:[#allocation5 + $0xc8] sm:$0xff]  }
 0x1f2   : > { %1528 = vmatprep.mubr.bf16.mxu0 %v8113_v0  ;;  %v7745_v39 = vpop.permute.xlu1 %836 }
 0x1f3   : > { %2150 = vperm.xlu1 %6412, %v1992_v23   ;;  %v7743_v37 = vpop.permute.xlu0 %831 }
 0x1f4   : > { %2145 = vperm.xlu0 %6411, %v1991_v24   ;;  %v2016_v24 = vld [vmem:[#allocation10 + $0x178] sm:$0xff] }
 0x1f6   : > { %v7751_v49 = vpop.permute.xlu1 %846 }
 0x1f7   : > { %2160 = vperm.xlu1 %6412, %v1994_v26   ;;  %v7749_v45 = vpop.permute.xlu0 %841  ;;  %v2015_v26 = vld [vmem:[#allocation10 + $0x170] sm:$0xff] }
 0x1f8   : > { %2155 = vperm.xlu0 %6411, %v1993_v28  }
 0x1f9   : > { %5630 = vmatmul.mubr.msk.bf16.gmra.mrb[80].mxu0 %vm1199_vm0, %v6433_v29  ;;  %v2018_v29 = vld [vmem:[#allocation10 + $0x188] sm:$0xff] }
 0x1fa   : > { %1538 = vmatprep.mubr.bf16.mxu0 %v8113_v0  ;;  %v7757_v58 = vpop.permute.xlu1 %856 }
 0x1fb   : > { %2170 = vperm.xlu1 %6412, %v1996_v30   ;;  %v7755_v54 = vpop.permute.xlu0 %851 }
 0x1fc   : > { %2165 = vperm.xlu0 %6411, %v1995_v31   ;;  %v2017_v31 = vld [vmem:[#allocation10 + $0x180] sm:$0xff] }
 0x1fe   : > { %v7762_v3 = vpop.permute.xlu1 %866 }
 0x1ff   : > { %2180 = vperm.xlu1 %6412, %v1998_v34   ;;  %v7759_v2 = vpop.permute.xlu0 %861  ;;  %v6439_v34 = vld [vmem:[#allocation5 + $0xd0] sm:$0xff]  }
 0x200   : > { %2175 = vperm.xlu0 %6411, %v1997_v35   ;;  %v2020_v35 = vld [vmem:[#allocation10 + $0x198] sm:$0xff] }
 0x201   : > { %5631 = vmatmul.mubr.msk.bf16.gmra.mrb[84].mxu0 %vm1199_vm0, %v6434_v36  ;;  %v2019_v36 = vld [vmem:[#allocation10 + $0x190] sm:$0xff] }
 0x202   : > { %1548 = vmatprep.mubr.bf16.mxu0 %v8113_v0  ;;  %v7767_v13 = vpop.permute.xlu1 %876 }
 0x203   : > { %2190 = vperm.xlu1 %6412, %v2000_v38   ;;  %v7765_v11 = vpop.permute.xlu0 %871 }
 0x204   : > { %2185 = vperm.xlu0 %6411, %v1999_v40  }
 0x206   : > { %v7773_v23 = vpop.permute.xlu1 %886 }
 0x207   : > { %2200 = vperm.xlu1 %6412, %v2002_v41   ;;  %v7771_v19 = vpop.permute.xlu0 %881  ;;  %v2022_v41 = vld [vmem:[#allocation10 + $0x1a8] sm:$0xff] }
 0x208   : > { %2195 = vperm.xlu0 %6411, %v2001_v42  }
 0x209   : > { %5632 = vmatmul.mubr.msk.bf16.gmra.mrb[88].mxu0 %vm1199_vm0, %v6435_v46  ;;  %v2021_v46 = vld [vmem:[#allocation10 + $0x1a0] sm:$0xff] }
 0x20a   : > { %1558 = vmatprep.mubr.bf16.mxu0 %v8113_v0  ;;  %v7779_v30 = vpop.permute.xlu1 %896 }
 0x20b   : > { %2210 = vperm.xlu1 %6412, %v2004_v50   ;;  %v7777_v28 = vpop.permute.xlu0 %891 }
 0x20c   : > { %2205 = vperm.xlu0 %6411, %v2003_v51  }
 0x20e   : > { %v7784_v40 = vpop.permute.xlu1 %906 }
 0x20f   : > { %2220 = vperm.xlu1 %6412, %v2006_v55   ;;  %v7781_v38 = vpop.permute.xlu0 %901  ;;  %v6440_v55 = vld [vmem:[#allocation5 + $0xd8] sm:$0xff]  }
 0x210   : > { %2215 = vperm.xlu0 %6411, %v2005_v59  }
 0x211   : > { %5633 = vmatmul.mubr.msk.bf16.gmra.mrb[92].mxu0 %vm1199_vm0, %v6436_v60 }
 0x212   : > { %1568 = vmatprep.mubr.bf16.mxu0 %v8113_v0 }
 0x213   : > { %2230 = vperm.xlu1 %6412, %v2008_v63   ;;  %v7789_v63 = vpop.permute.xlu0 %911 }
 0x214   : > { %2225 = vperm.xlu0 %6411, %v2007_v1  }
 0x217   : > { %2240 = vperm.xlu1 %6412, %v2010_v5  }
 0x218   : > { %2235 = vperm.xlu0 %6411, %v2009_v7   ;;  %v2024_v7 = vld [vmem:[#allocation10 + $0x1b8] sm:$0xff] }
 0x219   : > { %5634 = vmatmul.mubr.msk.bf16.gmra.mrb[96].mxu0 %vm1199_vm0, %v6437_v8  ;;  %v6447_v8 = vld [vmem:[#allocation8 + $0x4] ss:$16 sps:$4 sm:$0xff]  }
 0x21a   : > { %1578 = vmatprep.mubr.bf16.mxu0 %v8113_v0  ;;  %3025 = vmatprep.mubr.bf16.mxu1 %v6447_v8 }
 0x21b   : > { %2250 = vperm.xlu1 %6412, %v2012_v12   ;;  %v7792_v12 = vpop.permute.xlu1 %916 }
 0x21c   : > { %2245 = vperm.xlu0 %6411, %v2011_v15  }
 0x21f   : > { %2260 = vperm.xlu1 %6412, %v2014_v17   ;;  %v2023_v17 = vld [vmem:[#allocation10 + $0x1b0] sm:$0xff] }
 0x220   : > { %2255 = vperm.xlu0 %6411, %v2013_v18  }
 0x221   : > { %5635 = vmatmul.mubr.msk.bf16.gmra.mrb[100].mxu0 %vm1199_vm0, %v6438_v21 }
 0x222   : > { %1588 = vmatprep.mubr.bf16.mxu0 %v8113_v0 }
 0x223   : > { %2270 = vperm.xlu1 %6412, %v2016_v24  }
 0x224   : > { %2265 = vperm.xlu0 %6411, %v2015_v26   ;;  %v2026_v26 = vld [vmem:[#allocation10 + $0x1c8] sm:$0xff] }
 0x227   : > { %2280 = vperm.xlu1 %6412, %v2018_v29  }
 0x228   : > { %2275 = vperm.xlu0 %6411, %v2017_v31  }
 0x229   : > { %5636 = vmatmul.mubr.msk.bf16.gmra.mrb[104].mxu0 %vm1199_vm0, %v6439_v34 }
 0x22a   : > { %1598 = vmatprep.mubr.bf16.mxu0 %v8113_v0 }
 0x22b   : > { %2290 = vperm.xlu1 %6412, %v2020_v35   ;;  %v2025_v35 = vld [vmem:[#allocation10 + $0x1c0] sm:$0xff] }
 0x22c   : > { %2285 = vperm.xlu0 %6411, %v2019_v36   ;;  %v1330_v42 = vpop.f32.mrb[0].mxu0  ;;  %v7797_v36 = vpop.permute.xlu0 %921 }
 0x22d   : > { %v1331_v50 = vadd.f32 %v1330_v42, %v7687_v44  ;;  %v1332_v51 = vpop.f32.mrb[1].mxu0  ;;  %v6441_v42 = vld [vmem:[#allocation5 + $0xe0] sm:$0xff]  }
 0x22e   : > { %v1333_v59 = vadd.f32 %v1332_v51, %v7687_v44  ;;  %v1334_v60 = vpop.f32.mrb[2].mxu0 }
 0x22f   : > { %2300 = vperm.xlu1 %6412, %v2022_v41   ;;  %v1335_v1 = vadd.f32 %v1334_v60, %v7692_v48  ;;  %v1336_v5 = vpop.f32.mrb[3].mxu0  ;;  %v1649_v18 = vmax.f32 %v1331_v50, 0.0  ;;  %v2028_v60 = vld [vmem:[#allocation10 + $0x1d8] sm:$0xff] }
 0x230   : > { %2295 = vperm.xlu0 %6411, %v2021_v46   ;;  %v1337_v15 = vadd.f32 %v1336_v5, %v7692_v48  ;;  %v1650_v44 = vmax.f32 %v1333_v59, 0.0  ;;  %v7800_v46 = vpop.permute.xlu1 %926  ;;  %v2027_v5 = vld [vmem:[#allocation10 + $0x1d0] sm:$0xff] }
 0x231   : > { %v1651_v21 = vmax.f32 %v1335_v1, 0.0  ;;  %5637 = vmatmul.mubr.msk.bf16.gmra.mrb[108].mxu0 %vm1199_vm0, %v6440_v55 }
 0x232   : > { %v1652_v24 = vmax.f32 %v1337_v15, 0.0  ;;  %1608 = vmatprep.mubr.bf16.mxu0 %v8113_v0 }
 0x233   : > { %2310 = vperm.xlu1 %6412, %v2024_v7   ;;  %v1905_v29 = vpack.c.bf16 %v1651_v21, %v1649_v18  ;;  %v2030_v21 = vld [vmem:[#allocation10 + $0x1e8] sm:$0xff] }
 0x234   : > { %2305 = vperm.xlu0 %6411, %v2023_v17   ;;  %v1340_v31 = vpop.f32.mrb[4].mxu0  ;;  %v1906_v34 = vpack.c.bf16 %v1652_v24, %v1650_v44  ;;  %v7809_v44 = vpop.permute.xlu1 %936 }
 0x235   : > { %v1341_v48 = vadd.f32 %v1340_v31, %v7685_v43  ;;  %v1342_v41 = vpop.f32.mrb[5].mxu0 }
 0x236   : > { %v1343_v50 = vadd.f32 %v1342_v41, %v7685_v43  ;;  %v1344_v51 = vpop.f32.mrb[6].mxu0  ;;  %2993 = vmatprep.subr.bf16.mxu1 %v1906_v34  ;;  %v7807_v43 = vpop.permute.xlu0 %931  ;;  %v6442_v34 = vld [vmem:[#allocation5 + $0xe8] sm:$0xff]  }
 0x237   : > { %2320 = vperm.xlu1 %6412, %v2026_v26   ;;  %v1345_v55 = vadd.f32 %v1344_v51, %v7690_v47  ;;  %v1346_v59 = vpop.f32.mrb[7].mxu0  ;;  %2994 = vmatpush1.bf16.msra.mxu1 %v1905_v29  ;;  %v1653_v7 = vmax.f32 %v1341_v48, 0.0 }
 0x238   : > { %2315 = vperm.xlu0 %6411, %v2025_v35   ;;  %v1347_v1 = vadd.f32 %v1346_v59, %v7690_v47  ;;  %v1654_v15 = vmax.f32 %v1343_v50, 0.0  ;;  %v2029_v47 = vld [vmem:[#allocation10 + $0x1e0] sm:$0xff]  ;;  %v2032_v50 = vld [vmem:[#allocation10 + $0x1f8] sm:$0xff] }
 0x239   : > { %v1655_v8 = vmax.f32 %v1345_v55, 0.0  ;;  %5638 = vmatmul.mubr.msk.bf16.gmra.mrb[112].mxu0 %vm1199_vm0, %v6441_v42  ;;  %v2031_v55 = vld [vmem:[#allocation10 + $0x1f0] sm:$0xff] }
 0x23a   : > { %v1656_v17 = vmax.f32 %v1347_v1, 0.0  ;;  %1618 = vmatprep.mubr.bf16.mxu0 %v8113_v0  ;;  %v7815_v59 = vpop.permute.xlu0 %941 }
 0x23b   : > { %2330 = vperm.xlu1 %6412, %v2028_v60   ;;  %v1907_v18 = vpack.c.bf16 %v1655_v8, %v1653_v7 }
 0x23c   : > { %2325 = vperm.xlu0 %6411, %v2027_v5   ;;  %v1908_v24 = vpack.c.bf16 %v1656_v17, %v1654_v15  ;;  %v1350_v26 = vpop.f32.mrb[8].mxu0  ;;  %v7818_v5 = vpop.permute.xlu1 %946  ;;  %v3956_v15 = vld [vmem:[#allocation13 + $0x8] sm:$0xff] }
 0x23d   : > { %v1351_v29 = vadd.f32 %v1350_v26, %v7697_v53  ;;  %v1352_v31 = vpop.f32.mrb[9].mxu0  ;;  %v6443_v26 = vld [vmem:[#allocation5 + $0xf0] sm:$0xff]  }
 0x23e   : > { %v1353_v35 = vadd.f32 %v1352_v31, %v7697_v53  ;;  %v1354_v48 = vpop.f32.mrb[10].mxu0  ;;  %2995 = vmatprep.subr.bf16.mxu1 %v1908_v24  ;;  %v7823_v31 = vpop.permute.xlu0 %951 }
 0x23f   : > { %2340 = vperm.xlu1 %6412, %v2030_v21   ;;  %v1355_v41 = vadd.f32 %v1354_v48, %v7695_v52  ;;  %v1356_v42 = vpop.f32.mrb[11].mxu0  ;;  %2996 = vmatpush1.bf16.msra.mxu1 %v1907_v18  ;;  %v1657_v60 = vmax.f32 %v1351_v29, 0.0  ;;  %v3958_v48 = vld [vmem:[#allocation13 + $0x18] sm:$0xff] }
 0x240   : > { %2335 = vperm.xlu0 %6411, %v2029_v47   ;;  %v1357_v51 = vadd.f32 %v1356_v42, %v7695_v52  ;;  %v1658_v53 = vmax.f32 %v1353_v35, 0.0  ;;  %v3955_v52 = vld [vmem:[#allocation13] sm:$0xff] }
 0x241   : > { %v1659_v1 = vmax.f32 %v1355_v41, 0.0  ;;  %5639 = vmatmul.mubr.msk.bf16.gmra.mrb[116].mxu0 %vm1199_vm0, %v6442_v34  ;;  %v7826_v41 = vpop.permute.xlu1 %956 }
 0x242   : > { %v1660_v7 = vmax.f32 %v1357_v51, 0.0  ;;  %1628 = vmatprep.mubr.bf16.mxu0 %v8113_v0 }
 0x243   : > { %2350 = vperm.xlu1 %6412, %v2032_v50   ;;  %v1909_v8 = vpack.c.bf16 %v1659_v1, %v1657_v60  ;;  %v3957_v50 = vld [vmem:[#allocation13 + $0x10] sm:$0xff] }
 0x244   : > { %2345 = vperm.xlu0 %6411, %v2031_v55   ;;  %v1910_v17 = vpack.c.bf16 %v1660_v7, %v1658_v53  ;;  %v1360_v18 = vpop.f32.mrb[12].mxu0  ;;  %v3960_v53 = vld [vmem:[#allocation13 + $0x28] sm:$0xff] }
 0x245   : > { %v1361_v21 = vadd.f32 %v1360_v18, %v7702_v57  ;;  %v1362_v24 = vpop.f32.mrb[13].mxu0 }
 0x246   : > { %v1363_v47 = vadd.f32 %v1362_v24, %v7702_v57  ;;  %v1364_v29 = vpop.f32.mrb[14].mxu0  ;;  %2997 = vmatprep.subr.bf16.mxu1 %v1910_v17  ;;  %v7831_v17 = vpop.permute.xlu0 %961 }
 0x247   : > { %3994 = vperm.xlu1 %6412, %v3956_v15   ;;  %v1365_v34 = vadd.f32 %v1364_v29, %v7700_v56  ;;  %v1366_v35 = vpop.f32.mrb[15].mxu0  ;;  %2998 = vmatpush1.bf16.msra.mxu1 %v1909_v8  ;;  %v1661_v51 = vmax.f32 %v1361_v21, 0.0  ;;  %v3959_v15 = vld [vmem:[#allocation13 + $0x20] sm:$0xff]  ;;  %v7834_v21 = vpop.permute.xlu1 %966 }
 0x248   : > { %3989 = vperm.xlu0 %6411, %v3955_v52   ;;  %v1367_v42 = vadd.f32 %v1366_v35, %v7700_v56  ;;  %v1662_v57 = vmax.f32 %v1363_v47, 0.0  ;;  %v6444_v52 = vld [vmem:[#allocation5 + $0xf8] sm:$0xff]  }
 0x249   : > { %v1663_v55 = vmax.f32 %v1365_v34, 0.0  ;;  %5640 = vmatmul.mubr.msk.bf16.gmra.mrb[120].mxu0 %vm1199_vm0, %v6443_v26  ;;  %v3962_v34 = vld [vmem:[#allocation13 + $0x38] sm:$0xff] }
 0x24a   : > { %v1664_v60 = vmax.f32 %v1367_v42, 0.0  ;;  %1638 = vmatprep.mubr.bf16.mxu0 %v8113_v0 }
 0x24b   : > { %4004 = vperm.xlu1 %6412, %v3958_v48   ;;  %v1911_v1 = vpack.c.bf16 %v1663_v55, %v1661_v51  ;;  %v3961_v48 = vld [vmem:[#allocation13 + $0x30] sm:$0xff] }
 0x24c   : > { %3999 = vperm.xlu0 %6411, %v3957_v50   ;;  %v1912_v7 = vpack.c.bf16 %v1664_v60, %v1662_v57  ;;  %v1370_v8 = vpop.f32.mrb[16].mxu0  ;;  %v3964_v60 = vld [vmem:[#allocation13 + $0x48] sm:$0xff] }
 0x24d   : > { %v1371_v56 = vadd.f32 %v1370_v8, %v7707_v62  ;;  %v1372_v18 = vpop.f32.mrb[17].mxu0  ;;  %v3963_v8 = vld [vmem:[#allocation13 + $0x40] sm:$0xff] }
 0x24e   : > { %v1373_v24 = vadd.f32 %v1372_v18, %v7707_v62  ;;  %v1374_v26 = vpop.f32.mrb[18].mxu0  ;;  %2999 = vmatprep.subr.bf16.mxu1 %v1912_v7  ;;  %v7840_v62 = vpop.permute.xlu0 %971 }
 0x24f   : > { %4014 = vperm.xlu1 %6412, %v3960_v53   ;;  %v1375_v47 = vadd.f32 %v1374_v26, %v7705_v61  ;;  %v1376_v29 = vpop.f32.mrb[19].mxu0  ;;  %3000 = vmatpush1.bf16.msra.mxu1 %v1911_v1  ;;  %v1665_v42 = vmax.f32 %v1371_v56, 0.0  ;;  %v7842_v53 = vpop.permute.xlu1 %976  ;;  %v3966_v26 = vld [vmem:[#allocation13 + $0x58] sm:$0xff] }
 0x250   : > { %4009 = vperm.xlu0 %6411, %v3959_v15   ;;  %v1377_v35 = vadd.f32 %v1376_v29, %v7705_v61  ;;  %v1666_v51 = vmax.f32 %v1373_v24, 0.0  ;;  %v3965_v29 = vld [vmem:[#allocation13 + $0x50] sm:$0xff] }
 0x251   : > { %v1667_v50 = vmax.f32 %v1375_v47, 0.0  ;;  %5641 = vmatmul.mubr.msk.bf16.gmra.mrb[124].mxu0 %vm1199_vm0, %v6444_v52 }
 0x252   : > { %v1668_v55 = vmax.f32 %v1377_v35, 0.0 }
 0x253   : > { %4024 = vperm.xlu1 %6412, %v3962_v34   ;;  %v1913_v57 = vpack.c.bf16 %v1667_v50, %v1665_v42  ;;  %v7848_v34 = vpop.permute.xlu0 %981  ;;  %v7850_v42 = vpop.permute.xlu1 %986 }
 0x254   : > { %4019 = vperm.xlu0 %6411, %v3961_v48   ;;  %v1914_v7 = vpack.c.bf16 %v1668_v55, %v1666_v51  ;;  %v1380_v1 = vpop.f32.mrb[20].mxu0  ;;  %v3968_v55 = vld [vmem:[#allocation13 + $0x68] sm:$0xff] }
 0x255   : > { %v1381_v61 = vadd.f32 %v1380_v1, %v7711_v4  ;;  %v1382_v15 = vpop.f32.mrb[21].mxu0  ;;  %v3967_v1 = vld [vmem:[#allocation13 + $0x60] sm:$0xff] }
 0x256   : > { %v1383_v56 = vadd.f32 %v1382_v15, %v7711_v4  ;;  %v1384_v18 = vpop.f32.mrb[22].mxu0  ;;  %3001 = vmatprep.subr.bf16.mxu1 %v1914_v7 }
 0x257   : > { %4034 = vperm.xlu1 %6412, %v3964_v60   ;;  %v1385_v52 = vadd.f32 %v1384_v18, %v7713_v6  ;;  %v1386_v24 = vpop.f32.mrb[23].mxu0  ;;  %3002 = vmatpush1.bf16.msra.mxu1 %v1913_v57  ;;  %v1669_v35 = vmax.f32 %v1381_v61, 0.0  ;;  %v7854_v61 = vpop.permute.xlu0 %991 }
 0x258   : > { %4029 = vperm.xlu0 %6411, %v3963_v8   ;;  %v1387_v47 = vadd.f32 %v1386_v24, %v7713_v6  ;;  %v1670_v50 = vmax.f32 %v1383_v56, 0.0  ;;  %v7857_v24 = vpop.permute.xlu1 %996 }
 0x259   : > { %v1671_v48 = vmax.f32 %v1385_v52, 0.0  ;;  %v3970_v52 = vld [vmem:[#allocation13 + $0x78] sm:$0xff] }
 0x25a   : > { %v1672_v4 = vmax.f32 %v1387_v47, 0.0  ;;  %v3969_v47 = vld [vmem:[#allocation13 + $0x70] sm:$0xff] }
 0x25b   : > { %4044 = vperm.xlu1 %6412, %v3966_v26   ;;  %v1915_v51 = vpack.c.bf16 %v1671_v48, %v1669_v35 }
 0x25c   : > { %4039 = vperm.xlu0 %6411, %v3965_v29   ;;  %v1916_v60 = vpack.c.bf16 %v1672_v4, %v1670_v50  ;;  %v1390_v7 = vpop.f32.mrb[24].mxu0  ;;  %v3972_v4 = vld [vmem:[#allocation13 + $0x88] sm:$0xff] }
 0x25d   : > { %v1391_v57 = vadd.f32 %v1390_v7, %v7715_v9  ;;  %v1392_v8 = vpop.f32.mrb[25].mxu0  ;;  %v3971_v7 = vld [vmem:[#allocation13 + $0x80] sm:$0xff] }
 0x25e   : > { %v1393_v6 = vadd.f32 %v1392_v8, %v7715_v9  ;;  %v1394_v15 = vpop.f32.mrb[26].mxu0  ;;  %3003 = vmatprep.subr.bf16.mxu1 %v1916_v60 }
 0x25f   : > { %4054 = vperm.xlu1 %6412, %v3968_v55   ;;  %v1395_v56 = vadd.f32 %v1394_v15, %v7718_v10  ;;  %v1396_v18 = vpop.f32.mrb[27].mxu0  ;;  %3004 = vmatpush1.bf16.msra.mxu1 %v1915_v51  ;;  %v1673_v29 = vmax.f32 %v1391_v57, 0.0  ;;  %v7863_v15 = vpop.permute.xlu1 %1006 }
 0x260   : > { %4049 = vperm.xlu0 %6411, %v3967_v1   ;;  %v1397_v26 = vadd.f32 %v1396_v18, %v7718_v10  ;;  %v1674_v48 = vmax.f32 %v1393_v6, 0.0  ;;  %v7860_v1 = vpop.permute.xlu0 %1001  ;;  %v3974_v18 = vld [vmem:[#allocation13 + $0x98] sm:$0xff] }
 0x261   : > { %v1675_v35 = vmax.f32 %v1395_v56, 0.0 }
 0x262   : > { %v1676_v9 = vmax.f32 %v1397_v26, 0.0  ;;  %v3973_v26 = vld [vmem:[#allocation13 + $0x90] sm:$0xff] }
 0x263   : > { %4064 = vperm.xlu1 %6412, %v3970_v52   ;;  %v1917_v50 = vpack.c.bf16 %v1675_v35, %v1673_v29 }
 0x264   : > { %4059 = vperm.xlu0 %6411, %v3969_v47   ;;  %v1918_v55 = vpack.c.bf16 %v1676_v9, %v1674_v48  ;;  %v1400_v60 = vpop.f32.mrb[28].mxu0  ;;  %v7868_v9 = vpop.permute.xlu0 %1011 }
 0x265   : > { %v1401_v51 = vadd.f32 %v1400_v60, %v7721_v14  ;;  %v1402_v8 = vpop.f32.mrb[29].mxu0 }
 0x266   : > { %v1403_v10 = vadd.f32 %v1402_v8, %v7721_v14  ;;  %v1404_v57 = vpop.f32.mrb[30].mxu0  ;;  %3005 = vmatprep.subr.bf16.mxu1 %v1918_v55  ;;  %v3976_v55 = vld [vmem:[#allocation13 + $0xa8] sm:$0xff]  ;;  %v3975_v8 = vld [vmem:[#allocation13 + $0xa0] sm:$0xff] }
 0x267   : > { %4074 = vperm.xlu1 %6412, %v3972_v4   ;;  %v1405_v6 = vadd.f32 %v1404_v57, %v7723_v16  ;;  %v1406_v56 = vpop.f32.mrb[31].mxu0  ;;  %3006 = vmatpush1.bf16.msra.mxu1 %v1917_v50  ;;  %v1677_v47 = vmax.f32 %v1401_v51, 0.0  ;;  %v7870_v4 = vpop.permute.xlu1 %1016 }
 0x268   : > { %4069 = vperm.xlu0 %6411, %v3971_v7   ;;  %v1407_v52 = vadd.f32 %v1406_v56, %v7723_v16  ;;  %v1678_v35 = vmax.f32 %v1403_v10, 0.0  ;;  %v3978_v56 = vld [vmem:[#allocation13 + $0xb8] sm:$0xff] }
 0x269   : > { %v1679_v29 = vmax.f32 %v1405_v6, 0.0 }
 0x26a   : > { %v1680_v48 = vmax.f32 %v1407_v52, 0.0  ;;  %v3977_v52 = vld [vmem:[#allocation13 + $0xb0] sm:$0xff] }
 0x26b   : > { %4084 = vperm.xlu1 %6412, %v3974_v18   ;;  %v1919_v14 = vpack.c.bf16 %v1679_v29, %v1677_v47 }
 0x26c   : > { %4079 = vperm.xlu0 %6411, %v3973_v26   ;;  %v1920_v60 = vpack.c.bf16 %v1680_v48, %v1678_v35  ;;  %v1410_v7 = vpop.f32.mrb[32].mxu0  ;;  %v7876_v26 = vpop.permute.xlu0 %1021 }
 0x26d   : > { %v1411_v50 = vadd.f32 %v1410_v7, %v7727_v20  ;;  %v1412_v57 = vpop.f32.mrb[33].mxu0  ;;  %v7878_v35 = vpop.permute.xlu1 %1026 }
 0x26e   : > { %v1413_v16 = vadd.f32 %v1412_v57, %v7727_v20  ;;  %v1414_v51 = vpop.f32.mrb[34].mxu0  ;;  %3007 = vmatprep.subr.bf16.mxu1 %v1920_v60  ;;  %v3979_v57 = vld [vmem:[#allocation13 + $0xc0] sm:$0xff] }
 0x26f   : > { %4094 = vperm.xlu1 %6412, %v3976_v55   ;;  %v1415_v10 = vadd.f32 %v1414_v51, %v7729_v22  ;;  %v1416_v6 = vpop.f32.mrb[35].mxu0  ;;  %3008 = vmatpush1.bf16.msra.mxu1 %v1919_v14  ;;  %v1681_v47 = vmax.f32 %v1411_v50, 0.0  ;;  %v3980_v55 = vld [vmem:[#allocation13 + $0xc8] sm:$0xff] }
 0x270   : > { %4089 = vperm.xlu0 %6411, %v3975_v8   ;;  %v1417_v18 = vadd.f32 %v1416_v6, %v7729_v22  ;;  %v1682_v48 = vmax.f32 %v1413_v16, 0.0  ;;  %v7882_v50 = vpop.permute.xlu0 %1031 }
 0x271   : > { %v1683_v29 = vmax.f32 %v1415_v10, 0.0 }
 0x272   : > { %v1684_v20 = vmax.f32 %v1417_v18, 0.0  ;;  %v7885_v18 = vpop.permute.xlu1 %1036 }
 0x273   : > { %4104 = vperm.xlu1 %6412, %v3978_v56   ;;  %v1921_v60 = vpack.c.bf16 %v1683_v29, %v1681_v47  ;;  %v3982_v56 = vld [vmem:[#allocation13 + $0xd8] sm:$0xff]  ;;  %8142 = vst [vmem:[#allocation30_spill] sm:$0xff] %v7885_v18  ;;  %v3981_v47 = vld [vmem:[#allocation13 + $0xd0] sm:$0xff] }
 0x274   : > { %4099 = vperm.xlu0 %6411, %v3977_v52   ;;  %v1922_v7 = vpack.c.bf16 %v1684_v20, %v1682_v48  ;;  %v1420_v8 = vpop.f32.mrb[36].mxu0 }
 0x275   : > { %v1421_v14 = vadd.f32 %v1420_v8, %v7733_v25  ;;  %v1422_v51 = vpop.f32.mrb[37].mxu0 }
 0x276   : > { %v1423_v22 = vadd.f32 %v1422_v51, %v7733_v25  ;;  %v1424_v6 = vpop.f32.mrb[38].mxu0  ;;  %3009 = vmatprep.subr.bf16.mxu1 %v1922_v7  ;;  %v7891_v18 = vpop.permute.xlu1 %2040 }
 0x277   : > { %4114 = vperm.xlu1 %6412, %v3980_v55   ;;  %v1425_v16 = vadd.f32 %v1424_v6, %v7735_v27  ;;  %v1426_v10 = vpop.f32.mrb[39].mxu0  ;;  %3010 = vmatpush1.bf16.msra.mxu1 %v1921_v60  ;;  %v1685_v29 = vmax.f32 %v1421_v14, 0.0  ;;  %v3984_v55 = vld [vmem:[#allocation13 + $0xe8] sm:$0xff]  ;;  %v3983_v6 = vld [vmem:[#allocation13 + $0xe0] sm:$0xff] }
 0x278   : > { %4109 = vperm.xlu0 %6411, %v3979_v57   ;;  %v1427_v52 = vadd.f32 %v1426_v10, %v7735_v27  ;;  %v1686_v20 = vmax.f32 %v1423_v22, 0.0  ;;  %v7888_v57 = vpop.permute.xlu0 %2035  ;;  %v3986_v10 = vld [vmem:[#allocation13 + $0xf8] sm:$0xff] }
 0x279   : > { %v1687_v48 = vmax.f32 %v1425_v16, 0.0 }
 0x27a   : > { %v1688_v25 = vmax.f32 %v1427_v52, 0.0  ;;  %v3985_v52 = vld [vmem:[#allocation13 + $0xf0] sm:$0xff] }
 0x27b   : > { %4124 = vperm.xlu1 %6412, %v3982_v56   ;;  %v1923_v7 = vpack.c.bf16 %v1687_v48, %v1685_v29 }
 0x27c   : > { %4119 = vperm.xlu0 %6411, %v3981_v47   ;;  %v1924_v8 = vpack.c.bf16 %v1688_v25, %v1686_v20  ;;  %v1430_v51 = vpop.f32.mrb[40].mxu0  ;;  %v7896_v25 = vpop.permute.xlu0 %2045 }
 0x27d   : > { %v1431_v60 = vadd.f32 %v1430_v51, %v7737_v32  ;;  %v1432_v0 = vpop.f32.mrb[41].mxu0 }
 0x27e   : > { %v1433_v27 = vadd.f32 %v1432_v0, %v7737_v32  ;;  %v1434_v14 = vpop.f32.mrb[42].mxu0  ;;  %3011 = vmatprep.subr.bf16.mxu1 %v1924_v8  ;;  %v4966_v32 = vld [vmem:[#allocation16 + $0x8] sm:$0xff] }
 0x27f   : > { %4134 = vperm.xlu1 %6412, %v3984_v55   ;;  %v1435_v22 = vadd.f32 %v1434_v14, %v7740_v33  ;;  %v1436_v16 = vpop.f32.mrb[43].mxu0  ;;  %3012 = vmatpush1.bf16.msra.mxu1 %v1923_v7  ;;  %v1689_v47 = vmax.f32 %v1431_v60, 0.0  ;;  %v7898_v55 = vpop.permute.xlu1 %2050 }
 0x280   : > { %4129 = vperm.xlu0 %6411, %v3983_v6   ;;  %v1437_v56 = vadd.f32 %v1436_v16, %v7740_v33  ;;  %v1690_v48 = vmax.f32 %v1433_v27, 0.0  ;;  %v4965_v6 = vld [vmem:[#allocation16] sm:$0xff]  ;;  %v4968_v16 = vld [vmem:[#allocation16 + $0x18] sm:$0xff] }
 0x281   : > { %v1691_v29 = vmax.f32 %v1435_v22, 0.0 }
 0x282   : > { %v1692_v20 = vmax.f32 %v1437_v56, 0.0  ;;  %v4967_v56 = vld [vmem:[#allocation16 + $0x10] sm:$0xff] }
 0x283   : > { %4144 = vperm.xlu1 %6412, %v3986_v10   ;;  %v1925_v0 = vpack.c.bf16 %v1691_v29, %v1689_v47 }
 0x284   : > { %4139 = vperm.xlu0 %6411, %v3985_v52   ;;  %v1926_v8 = vpack.c.bf16 %v1692_v20, %v1690_v48  ;;  %v1440_v51 = vpop.f32.mrb[44].mxu0  ;;  %v7904_v52 = vpop.permute.xlu0 %2055 }
 0x285   : > { %v1441_v7 = vadd.f32 %v1440_v51, %v7743_v37  ;;  %v1442_v14 = vpop.f32.mrb[45].mxu0  ;;  %v7906_v48 = vpop.permute.xlu1 %2060 }
 0x286   : > { %v1443_v33 = vadd.f32 %v1442_v14, %v7743_v37  ;;  %v1444_v60 = vpop.f32.mrb[46].mxu0  ;;  %3013 = vmatprep.subr.bf16.mxu1 %v1926_v8  ;;  %v4969_v14 = vld [vmem:[#allocation16 + $0x20] sm:$0xff] }
 0x287   : > { %4988 = vperm.xlu1 %6412, %v4966_v32   ;;  %v1445_v27 = vadd.f32 %v1444_v60, %v7745_v39  ;;  %v1446_v22 = vpop.f32.mrb[47].mxu0  ;;  %3014 = vmatpush1.bf16.msra.mxu1 %v1925_v0  ;;  %v1693_v47 = vmax.f32 %v1441_v7, 0.0  ;;  %v4970_v32 = vld [vmem:[#allocation16 + $0x28] sm:$0xff] }
 0x288   : > { %4983 = vperm.xlu0 %6411, %v4965_v6   ;;  %v1447_v10 = vadd.f32 %v1446_v22, %v7745_v39  ;;  %v1694_v20 = vmax.f32 %v1443_v33, 0.0  ;;  %v7910_v7 = vpop.permute.xlu0 %2065 }
 0x289   : > { %v1695_v29 = vmax.f32 %v1445_v27, 0.0  ;;  %8143 = vst [vmem:[#allocation31_spill] sm:$0xff] %v7910_v7 }
 0x28a   : > { %v1696_v37 = vmax.f32 %v1447_v10, 0.0  ;;  %v7913_v10 = vpop.permute.xlu1 %2070 }
 0x28b   : > { %4998 = vperm.xlu1 %6412, %v4968_v16   ;;  %v1927_v8 = vpack.c.bf16 %v1695_v29, %v1693_v47  ;;  %v4972_v16 = vld [vmem:[#allocation16 + $0x38] sm:$0xff]  ;;  %8144 = vst [vmem:[#allocation32_spill] sm:$0xff] %v7913_v10  ;;  %v4971_v47 = vld [vmem:[#allocation16 + $0x30] sm:$0xff] }
 0x28c   : > { %4993 = vperm.xlu0 %6411, %v4967_v56   ;;  %v1928_v51 = vpack.c.bf16 %v1696_v37, %v1694_v20  ;;  %v1450_v6 = vpop.f32.mrb[48].mxu0 }
 0x28d   : > { %v1451_v0 = vadd.f32 %v1450_v6, %v7749_v45  ;;  %v1452_v60 = vpop.f32.mrb[49].mxu0 }
 0x28e   : > { %v1453_v39 = vadd.f32 %v1452_v60, %v7749_v45  ;;  %v1454_v22 = vpop.f32.mrb[50].mxu0  ;;  %3015 = vmatprep.subr.bf16.mxu1 %v1928_v51  ;;  %v7919_v10 = vpop.permute.xlu1 %2080 }
 0x28f   : > { %5008 = vperm.xlu1 %6412, %v4970_v32   ;;  %v1455_v33 = vadd.f32 %v1454_v22, %v7751_v49  ;;  %v1456_v27 = vpop.f32.mrb[51].mxu0  ;;  %3016 = vmatpush1.bf16.msra.mxu1 %v1927_v8  ;;  %v1697_v29 = vmax.f32 %v1451_v0, 0.0  ;;  %v4974_v32 = vld [vmem:[#allocation16 + $0x48] sm:$0xff]  ;;  %v4973_v22 = vld [vmem:[#allocation16 + $0x40] sm:$0xff] }
 0x290   : > { %5003 = vperm.xlu0 %6411, %v4969_v14   ;;  %v1457_v56 = vadd.f32 %v1456_v27, %v7751_v49  ;;  %v1698_v37 = vmax.f32 %v1453_v39, 0.0  ;;  %v7916_v14 = vpop.permute.xlu0 %2075  ;;  %v4976_v27 = vld [vmem:[#allocation16 + $0x58] sm:$0xff] }
 0x291   : > { %v1699_v20 = vmax.f32 %v1455_v33, 0.0 }
 0x292   : > { %v1700_v45 = vmax.f32 %v1457_v56, 0.0  ;;  %v4975_v56 = vld [vmem:[#allocation16 + $0x50] sm:$0xff] }
 0x293   : > { %5018 = vperm.xlu1 %6412, %v4972_v16   ;;  %v1929_v51 = vpack.c.bf16 %v1699_v20, %v1697_v29 }
 0x294   : > { %5013 = vperm.xlu0 %6411, %v4971_v47   ;;  %v1930_v6 = vpack.c.bf16 %v1700_v45, %v1698_v37  ;;  %v1460_v60 = vpop.f32.mrb[52].mxu0  ;;  %v7924_v45 = vpop.permute.xlu0 %2085 }
 0x295   : > { %v1461_v8 = vadd.f32 %v1460_v60, %v7755_v54  ;;  %v1462_v7 = vpop.f32.mrb[53].mxu0 }
 0x296   : > { %v1463_v49 = vadd.f32 %v1462_v7, %v7755_v54  ;;  %v1464_v0 = vpop.f32.mrb[54].mxu0  ;;  %3017 = vmatprep.subr.bf16.mxu1 %v1930_v6  ;;  %v4978_v7 = vld [vmem:[#allocation16 + $0x68] sm:$0xff] }
 0x297   : > { %5028 = vperm.xlu1 %6412, %v4974_v32   ;;  %v1465_v39 = vadd.f32 %v1464_v0, %v7757_v58  ;;  %v1466_v33 = vpop.f32.mrb[55].mxu0  ;;  %3018 = vmatpush1.bf16.msra.mxu1 %v1929_v51  ;;  %v1701_v47 = vmax.f32 %v1461_v8, 0.0  ;;  %v7926_v32 = vpop.permute.xlu1 %2090 }
 0x298   : > { %5023 = vperm.xlu0 %6411, %v4973_v22   ;;  %v1467_v16 = vadd.f32 %v1466_v33, %v7757_v58  ;;  %v1702_v20 = vmax.f32 %v1463_v49, 0.0  ;;  %v4977_v22 = vld [vmem:[#allocation16 + $0x60] sm:$0xff]  ;;  %v4980_v33 = vld [vmem:[#allocation16 + $0x78] sm:$0xff] }
 0x299   : > { %v1703_v29 = vmax.f32 %v1465_v39, 0.0 }
 0x29a   : > { %v1704_v37 = vmax.f32 %v1467_v16, 0.0  ;;  %v4979_v16 = vld [vmem:[#allocation16 + $0x70] sm:$0xff] }
 0x29b   : > { %5038 = vperm.xlu1 %6412, %v4976_v27   ;;  %v1931_v54 = vpack.c.bf16 %v1703_v29, %v1701_v47 }
 0x29c   : > { %5033 = vperm.xlu0 %6411, %v4975_v56   ;;  %v1932_v6 = vpack.c.bf16 %v1704_v37, %v1702_v20  ;;  %v1470_v60 = vpop.f32.mrb[56].mxu0  ;;  %v7932_v56 = vpop.permute.xlu0 %2095 }
 0x29d   : > { %v1471_v51 = vadd.f32 %v1470_v60, %v7759_v2  ;;  %v1472_v0 = vpop.f32.mrb[57].mxu0  ;;  %v7934_v20 = vpop.permute.xlu1 %2100 }
 0x29e   : > { %v1473_v58 = vadd.f32 %v1472_v0, %v7759_v2  ;;  %v1474_v8 = vpop.f32.mrb[58].mxu0  ;;  %3019 = vmatprep.subr.bf16.mxu1 %v1932_v6 }
 0x29f   : > { %5048 = vperm.xlu1 %6412, %v4978_v7   ;;  %v1475_v49 = vadd.f32 %v1474_v8, %v7762_v3  ;;  %v1476_v39 = vpop.f32.mrb[59].mxu0  ;;  %3020 = vmatpush1.bf16.msra.mxu1 %v1931_v54  ;;  %v1705_v47 = vmax.f32 %v1471_v51, 0.0 }
 0x2a0   : > { %5043 = vperm.xlu0 %6411, %v4977_v22   ;;  %v1477_v27 = vadd.f32 %v1476_v39, %v7762_v3  ;;  %v1706_v37 = vmax.f32 %v1473_v58, 0.0  ;;  %v5303_v22 = vld [vmem:[#allocation19] sm:$0xff]  ;;  %v7938_v39 = vpop.permute.xlu0 %2105 }
 0x2a1   : > { %v1707_v29 = vmax.f32 %v1475_v49, 0.0 }
 0x2a2   : > { %v1708_v2 = vmax.f32 %v1477_v27, 0.0 }
 0x2a3   : > { %5058 = vperm.xlu1 %6412, %v4980_v33   ;;  %v1933_v6 = vpack.c.bf16 %v1707_v29, %v1705_v47 }
 0x2a4   : > { %5053 = vperm.xlu0 %6411, %v4979_v16   ;;  %v1934_v7 = vpack.c.bf16 %v1708_v2, %v1706_v37  ;;  %v1480_v60 = vpop.f32.mrb[60].mxu0 }
 0x2a5   : > { %v1481_v54 = vadd.f32 %v1480_v60, %v7765_v11  ;;  %v1482_v0 = vpop.f32.mrb[61].mxu0 }
 0x2a6   : > { %v1483_v3 = vadd.f32 %v1482_v0, %v7765_v11  ;;  %v1484_v8 = vpop.f32.mrb[62].mxu0  ;;  %3021 = vmatprep.subr.bf16.mxu1 %v1934_v7 }
 0x2a7   : > { %v1485_v51 = vadd.f32 %v1484_v8, %v7767_v13  ;;  %v1486_v58 = vpop.f32.mrb[63].mxu0  ;;  %3022 = vmatpush1.bf16.msra.mxu1 %v1933_v6  ;;  %v1709_v33 = vmax.f32 %v1481_v54, 0.0  ;;  %v6445_v8 = vld [vmem:[#allocation8] ss:$16 sps:$4 sm:$0xff]  }
 0x2a8   : > { %5306 = vperm.xlu0 %6411, %v5303_v22   ;;  %v1487_v49 = vadd.f32 %v1486_v58, %v7767_v13  ;;  %v1710_v16 = vmax.f32 %v1483_v3, 0.0  ;;  %v6448_v13 = vld [vmem:[#allocation8 + $0x24] ss:$16 sps:$4 sm:$0xff]  }
 0x2a9   : > { %v1711_v27 = vmax.f32 %v1485_v51, 0.0 }
 0x2aa   : > { %v1712_v47 = vmax.f32 %v1487_v49, 0.0 }
 0x2ab   : > { %v1935_v29 = vpack.c.bf16 %v1711_v27, %v1709_v33 }
 0x2ac   : > { %v1936_v37 = vpack.c.bf16 %v1712_v47, %v1710_v16  ;;  %v1490_v2 = vpop.f32.mrb[64].mxu0 }
 0x2ad   : > { %v1491_v11 = vadd.f32 %v1490_v2, %v7771_v19  ;;  %v1492_v60 = vpop.f32.mrb[65].mxu0 }
 0x2ae   : > { %v1493_v7 = vadd.f32 %v1492_v60, %v7771_v19  ;;  %v1494_v0 = vpop.f32.mrb[66].mxu0  ;;  %3023 = vmatprep.subr.bf16.mxu1 %v1936_v37 }
 0x2af   : > { %v1495_v22 = vadd.f32 %v1494_v0, %v7773_v23  ;;  %v1496_v6 = vpop.f32.mrb[67].mxu0  ;;  %3024 = vmatpush1.bf16.msra.mxu1 %v1935_v29  ;;  %v1713_v3 = vmax.f32 %v1491_v11, 0.0  ;;  %v6450_v29 = vld [vmem:[#allocation8 + $0x20] ss:$16 sps:$4 sm:$0xff]   ;;  %v6451_v11 = vld [vmem:[#allocation8 + $0x44] ss:$16 sps:$4 sm:$0xff]  }
 0x2b0   : > { %v1497_v54 = vadd.f32 %v1496_v6, %v7773_v23  ;;  %v1714_v58 = vmax.f32 %v1493_v7, 0.0 }
 0x2b1   : > { %v1715_v51 = vmax.f32 %v1495_v22, 0.0 }
 0x2b2   : > { %v1716_v49 = vmax.f32 %v1497_v54, 0.0  ;;  %3026 = vmatmul.mubr.bf16.vlgmr.msra.gmra.mrb[0].mxu1 %v6445_v8 }
 0x2b3   : > { %v1937_v33 = vpack.c.bf16 %v1715_v51, %v1713_v3  ;;  %3035 = vmatprep.mubr.bf16.mxu1 %v6448_v13 }
 0x2b4   : > { %v1938_v27 = vpack.c.bf16 %v1716_v49, %v1714_v58  ;;  %v1500_v16 = vpop.f32.mrb[68].mxu0 }
 0x2b5   : > { %v1501_v19 = vadd.f32 %v1500_v16, %v7777_v28  ;;  %v1502_v47 = vpop.f32.mrb[69].mxu0  ;;  %v6454_v16 = vld [vmem:[#allocation8 + $0x64] ss:$16 sps:$4 sm:$0xff]  }
 0x2b6   : > { %v1503_v37 = vadd.f32 %v1502_v47, %v7777_v28  ;;  %v1504_v2 = vpop.f32.mrb[70].mxu0  ;;  %3346 = vmatprep.subr.bf16.mxu1 %v1938_v27 }
 0x2b7   : > { %v1505_v60 = vadd.f32 %v1504_v2, %v7779_v30  ;;  %v1506_v23 = vpop.f32.mrb[71].mxu0  ;;  %3347 = vmatpush1.bf16.msra.mxu1 %v1937_v33  ;;  %v1717_v0 = vmax.f32 %v1501_v19, 0.0  ;;  %v6453_v33 = vld [vmem:[#allocation8 + $0x40] ss:$16 sps:$4 sm:$0xff]  }
 0x2b8   : > { %v1507_v7 = vadd.f32 %v1506_v23, %v7779_v30  ;;  %v1718_v22 = vmax.f32 %v1503_v37, 0.0 }
 0x2b9   : > { %v1719_v8 = vmax.f32 %v1505_v60, 0.0 }
 0x2ba   : > { %v1720_v6 = vmax.f32 %v1507_v7, 0.0  ;;  %3036 = vmatmul.mubr.bf16.gmra.mrb[4].mxu1 %v6450_v29 }
 0x2bb   : > { %v1939_v13 = vpack.c.bf16 %v1719_v8, %v1717_v0  ;;  %3045 = vmatprep.mubr.bf16.mxu1 %v6451_v11 }
 0x2bc   : > { %v1940_v54 = vpack.c.bf16 %v1720_v6, %v1718_v22  ;;  %v1510_v3 = vpop.f32.mrb[72].mxu0  ;;  %v6456_v22 = vld [vmem:[#allocation8 + $0x60] ss:$16 sps:$4 sm:$0xff]  }
 0x2bd   : > { %v1511_v28 = vadd.f32 %v1510_v3, %v7781_v38  ;;  %v1512_v51 = vpop.f32.mrb[73].mxu0 }
 0x2be   : > { %v1513_v58 = vadd.f32 %v1512_v51, %v7781_v38  ;;  %v1514_v49 = vpop.f32.mrb[74].mxu0  ;;  %3348 = vmatprep.subr.bf16.mxu1 %v1940_v54 }
 0x2bf   : > { %v1515_v27 = vadd.f32 %v1514_v49, %v7784_v40  ;;  %v1516_v30 = vpop.f32.mrb[75].mxu0  ;;  %3349 = vmatpush1.bf16.msra.mxu1 %v1939_v13  ;;  %v1721_v47 = vmax.f32 %v1511_v28, 0.0  ;;  %v6457_v13 = vld [vmem:[#allocation8 + $0x84] ss:$16 sps:$4 sm:$0xff]  }
 0x2c0   : > { %v1517_v19 = vadd.f32 %v1516_v30, %v7784_v40  ;;  %v1722_v2 = vmax.f32 %v1513_v58, 0.0 }
 0x2c1   : > { %v1723_v37 = vmax.f32 %v1515_v27, 0.0 }
 0x2c2   : > { %v1724_v29 = vmax.f32 %v1517_v19, 0.0  ;;  %3046 = vmatmul.mubr.bf16.gmra.mrb[8].mxu1 %v6453_v33 }
 0x2c3   : > { %v1941_v60 = vpack.c.bf16 %v1723_v37, %v1721_v47  ;;  %3055 = vmatprep.mubr.bf16.mxu1 %v6454_v16  ;;  %v6459_v47 = vld [vmem:[#allocation8 + $0x80] ss:$16 sps:$4 sm:$0xff]  }
 0x2c4   : > { %v1942_v23 = vpack.c.bf16 %v1724_v29, %v1722_v2  ;;  %v1520_v11 = vpop.f32.mrb[76].mxu0  ;;  %v6460_v2 = vld [vmem:[#allocation8 + $0xa4] ss:$16 sps:$4 sm:$0xff]  }
 0x2c5   : > { %v1521_v38 = vadd.f32 %v1520_v11, %v7789_v63  ;;  %v1522_v7 = vpop.f32.mrb[77].mxu0 }
 0x2c6   : > { %v1523_v0 = vadd.f32 %v1522_v7, %v7789_v63  ;;  %v1524_v8 = vpop.f32.mrb[78].mxu0  ;;  %3350 = vmatprep.subr.bf16.mxu1 %v1942_v23 }
 0x2c7   : > { %v1525_v6 = vadd.f32 %v1524_v8, %v7792_v12  ;;  %v1526_v40 = vpop.f32.mrb[79].mxu0  ;;  %3351 = vmatpush1.bf16.msra.mxu1 %v1941_v60  ;;  %v1725_v3 = vmax.f32 %v1521_v38, 0.0 }
 0x2c8   : > { %v1527_v54 = vadd.f32 %v1526_v40, %v7792_v12  ;;  %v1726_v51 = vmax.f32 %v1523_v0, 0.0 }
 0x2c9   : > { %v1727_v28 = vmax.f32 %v1525_v6, 0.0 }
 0x2ca   : > { %v1728_v58 = vmax.f32 %v1527_v54, 0.0  ;;  %3056 = vmatmul.mubr.bf16.gmra.mrb[12].mxu1 %v6456_v22 }
 0x2cb   : > { %v1943_v49 = vpack.c.bf16 %v1727_v28, %v1725_v3  ;;  %3065 = vmatprep.mubr.bf16.mxu1 %v6457_v13  ;;  %v6462_v13 = vld [vmem:[#allocation8 + $0xa0] ss:$16 sps:$4 sm:$0xff]   ;;  %v6463_v3 = vld [vmem:[#allocation8 + $0xc4] ss:$16 sps:$4 sm:$0xff]  }
 0x2cc   : > { %v1944_v33 = vpack.c.bf16 %v1728_v58, %v1726_v51  ;;  %v1530_v27 = vpop.f32.mrb[80].mxu0 }
 0x2cd   : > { %v1531_v63 = vadd.f32 %v1530_v27, %v7797_v36  ;;  %v1532_v30 = vpop.f32.mrb[81].mxu0 }
 0x2ce   : > { %v1533_v16 = vadd.f32 %v1532_v30, %v7797_v36  ;;  %v1534_v19 = vpop.f32.mrb[82].mxu0  ;;  %3352 = vmatprep.subr.bf16.mxu1 %v1944_v33 }
 0x2cf   : > { %v1535_v37 = vadd.f32 %v1534_v19, %v7800_v46  ;;  %v1536_v12 = vpop.f32.mrb[83].mxu0  ;;  %3353 = vmatpush1.bf16.msra.mxu1 %v1943_v49  ;;  %v1729_v60 = vmax.f32 %v1531_v63, 0.0 }
 0x2d0   : > { %v1537_v29 = vadd.f32 %v1536_v12, %v7800_v46  ;;  %v1730_v11 = vmax.f32 %v1533_v16, 0.0 }
 0x2d1   : > { %v1731_v23 = vmax.f32 %v1535_v37, 0.0  ;;  %v6465_v37 = vld [vmem:[#allocation8 + $0xc0] ss:$16 sps:$4 sm:$0xff]  }
 0x2d2   : > { %v1732_v38 = vmax.f32 %v1537_v29, 0.0  ;;  %3066 = vmatmul.mubr.bf16.gmra.mrb[16].mxu1 %v6459_v47 }
 0x2d3   : > { %v1945_v7 = vpack.c.bf16 %v1731_v23, %v1729_v60  ;;  %3075 = vmatprep.mubr.bf16.mxu1 %v6460_v2  ;;  %v6466_v2 = vld [vmem:[#allocation8 + $0xe4] ss:$16 sps:$4 sm:$0xff]  }
 0x2d4   : > { %v1946_v0 = vpack.c.bf16 %v1732_v38, %v1730_v11  ;;  %v1540_v8 = vpop.f32.mrb[84].mxu0 }
 0x2d5   : > { %v1541_v36 = vadd.f32 %v1540_v8, %v7807_v43  ;;  %v1542_v22 = vpop.f32.mrb[85].mxu0 }
 0x2d6   : > { %v1543_v6 = vadd.f32 %v1542_v22, %v7807_v43  ;;  %v1544_v40 = vpop.f32.mrb[86].mxu0  ;;  %3354 = vmatprep.subr.bf16.mxu1 %v1946_v0 }
 0x2d7   : > { %v1545_v54 = vadd.f32 %v1544_v40, %v7809_v44  ;;  %v1546_v46 = vpop.f32.mrb[87].mxu0  ;;  %3355 = vmatpush1.bf16.msra.mxu1 %v1945_v7  ;;  %v1733_v51 = vmax.f32 %v1541_v36, 0.0  ;;  %v6468_v40 = vld [vmem:[#allocation8 + $0xe0] ss:$16 sps:$4 sm:$0xff]  }
 0x2d8   : > { %v1547_v28 = vadd.f32 %v1546_v46, %v7809_v44  ;;  %v1734_v49 = vmax.f32 %v1543_v6, 0.0 }
 0x2d9   : > { %v1735_v58 = vmax.f32 %v1545_v54, 0.0  ;;  %v6469_v54 = vld [vmem:[#allocation8 + $0x104] ss:$16 sps:$4 sm:$0xff]  }
 0x2da   : > { %v1736_v33 = vmax.f32 %v1547_v28, 0.0  ;;  %3076 = vmatmul.mubr.bf16.gmra.mrb[20].mxu1 %v6462_v13 }
 0x2db   : > { %v1947_v27 = vpack.c.bf16 %v1735_v58, %v1733_v51  ;;  %3085 = vmatprep.mubr.bf16.mxu1 %v6463_v3 }
 0x2dc   : > { %v1948_v63 = vpack.c.bf16 %v1736_v33, %v1734_v49  ;;  %v1550_v30 = vpop.f32.mrb[88].mxu0 }
 0x2dd   : > { %v1551_v43 = vadd.f32 %v1550_v30, %v7815_v59  ;;  %v1552_v16 = vpop.f32.mrb[89].mxu0 }
 0x2de   : > { %v1553_v19 = vadd.f32 %v1552_v16, %v7815_v59  ;;  %v1554_v47 = vpop.f32.mrb[90].mxu0  ;;  %3356 = vmatprep.subr.bf16.mxu1 %v1948_v63  ;;  %v6471_v16 = vld [vmem:[#allocation8 + $0x100] ss:$16 sps:$4 sm:$0xff]  }
 0x2df   : > { %v1555_v12 = vadd.f32 %v1554_v47, %v7818_v5  ;;  %v1556_v44 = vpop.f32.mrb[91].mxu0  ;;  %3357 = vmatpush1.bf16.msra.mxu1 %v1947_v27  ;;  %v1737_v60 = vmax.f32 %v1551_v43, 0.0  ;;  %v6472_v47 = vld [vmem:[#allocation8 + $0x124] ss:$16 sps:$4 sm:$0xff]  }
 0x2e0   : > { %v1557_v29 = vadd.f32 %v1556_v44, %v7818_v5  ;;  %v1738_v11 = vmax.f32 %v1553_v19, 0.0 }
 0x2e1   : > { %v1739_v23 = vmax.f32 %v1555_v12, 0.0 }
 0x2e2   : > { %v1740_v38 = vmax.f32 %v1557_v29, 0.0  ;;  %3086 = vmatmul.mubr.bf16.gmra.mrb[24].mxu1 %v6465_v37 }
 0x2e3   : > { %v1949_v7 = vpack.c.bf16 %v1739_v23, %v1737_v60  ;;  %3095 = vmatprep.mubr.bf16.mxu1 %v6466_v2 }
 0x2e4   : > { %v1950_v0 = vpack.c.bf16 %v1740_v38, %v1738_v11  ;;  %v1560_v8 = vpop.f32.mrb[92].mxu0 }
 0x2e5   : > { %v1561_v59 = vadd.f32 %v1560_v8, %v7823_v31  ;;  %v1562_v36 = vpop.f32.mrb[93].mxu0  ;;  %v6474_v8 = vld [vmem:[#allocation8 + $0x120] ss:$16 sps:$4 sm:$0xff]  }
 0x2e6   : > { %v1563_v22 = vadd.f32 %v1562_v36, %v7823_v31  ;;  %v1564_v6 = vpop.f32.mrb[94].mxu0  ;;  %3358 = vmatprep.subr.bf16.mxu1 %v1950_v0  ;;  %v6475_v36 = vld [vmem:[#allocation8 + $0x144] ss:$16 sps:$4 sm:$0xff]  }
 0x2e7   : > { %v1565_v13 = vadd.f32 %v1564_v6, %v7826_v41  ;;  %v1566_v5 = vpop.f32.mrb[95].mxu0  ;;  %3359 = vmatpush1.bf16.msra.mxu1 %v1949_v7  ;;  %v1741_v3 = vmax.f32 %v1561_v59, 0.0 }
 0x2e8   : > { %v1567_v46 = vadd.f32 %v1566_v5, %v7826_v41  ;;  %v1742_v51 = vmax.f32 %v1563_v22, 0.0 }
 0x2e9   : > { %v1743_v28 = vmax.f32 %v1565_v13, 0.0 }
 0x2ea   : > { %v1744_v58 = vmax.f32 %v1567_v46, 0.0  ;;  %3096 = vmatmul.mubr.bf16.gmra.mrb[28].mxu1 %v6468_v40 }
 0x2eb   : > { %v1951_v49 = vpack.c.bf16 %v1743_v28, %v1741_v3  ;;  %3105 = vmatprep.mubr.bf16.mxu1 %v6469_v54 }
 0x2ec   : > { %v1952_v33 = vpack.c.bf16 %v1744_v58, %v1742_v51  ;;  %v1570_v27 = vpop.f32.mrb[96].mxu0 }
 0x2ed   : > { %v1571_v31 = vadd.f32 %v1570_v27, %v7831_v17  ;;  %v1572_v63 = vpop.f32.mrb[97].mxu0  ;;  %v6478_v27 = vld [vmem:[#allocation8 + $0x164] ss:$16 sps:$4 sm:$0xff]  }
 0x2ee   : > { %v1573_v30 = vadd.f32 %v1572_v63, %v7831_v17  ;;  %v1574_v43 = vpop.f32.mrb[98].mxu0  ;;  %3360 = vmatprep.subr.bf16.mxu1 %v1952_v33 }
 0x2ef   : > { %v1575_v19 = vadd.f32 %v1574_v43, %v7834_v21  ;;  %v1576_v41 = vpop.f32.mrb[99].mxu0  ;;  %3361 = vmatpush1.bf16.msra.mxu1 %v1951_v49  ;;  %v1745_v12 = vmax.f32 %v1571_v31, 0.0  ;;  %v6477_v49 = vld [vmem:[#allocation8 + $0x140] ss:$16 sps:$4 sm:$0xff]  }
 0x2f0   : > { %v1577_v37 = vadd.f32 %v1576_v41, %v7834_v21  ;;  %v1746_v2 = vmax.f32 %v1573_v30, 0.0 }
 0x2f1   : > { %v1747_v44 = vmax.f32 %v1575_v19, 0.0 }
 0x2f2   : > { %v1748_v29 = vmax.f32 %v1577_v37, 0.0  ;;  %3106 = vmatmul.mubr.bf16.gmra.mrb[32].mxu1 %v6471_v16 }
 0x2f3   : > { %v1953_v60 = vpack.c.bf16 %v1747_v44, %v1745_v12  ;;  %3115 = vmatprep.mubr.bf16.mxu1 %v6472_v47 }
 0x2f4   : > { %v1954_v23 = vpack.c.bf16 %v1748_v29, %v1746_v2  ;;  %v1580_v11 = vpop.f32.mrb[100].mxu0  ;;  %v6480_v2 = vld [vmem:[#allocation8 + $0x160] ss:$16 sps:$4 sm:$0xff]  }
 0x2f5   : > { %v1581_v17 = vadd.f32 %v1580_v11, %v7840_v62  ;;  %v1582_v38 = vpop.f32.mrb[101].mxu0 }
 0x2f6   : > { %v1583_v7 = vadd.f32 %v1582_v38, %v7840_v62  ;;  %v1584_v0 = vpop.f32.mrb[102].mxu0  ;;  %3362 = vmatprep.subr.bf16.mxu1 %v1954_v23 }
 0x2f7   : > { %v1585_v59 = vadd.f32 %v1584_v0, %v7842_v53  ;;  %v1586_v21 = vpop.f32.mrb[103].mxu0  ;;  %3363 = vmatpush1.bf16.msra.mxu1 %v1953_v60  ;;  %v1749_v6 = vmax.f32 %v1581_v17, 0.0  ;;  %v6481_v60 = vld [vmem:[#allocation8 + $0x184] ss:$16 sps:$4 sm:$0xff]  }
 0x2f8   : > { %v1587_v22 = vadd.f32 %v1586_v21, %v7842_v53  ;;  %v1750_v13 = vmax.f32 %v1583_v7, 0.0 }
 0x2f9   : > { %v1751_v40 = vmax.f32 %v1585_v59, 0.0 }
 0x2fa   : > { %v1752_v5 = vmax.f32 %v1587_v22, 0.0  ;;  %3116 = vmatmul.mubr.bf16.gmra.mrb[36].mxu1 %v6474_v8 }
 0x2fb   : > { %v1955_v54 = vpack.c.bf16 %v1751_v40, %v1749_v6  ;;  %3125 = vmatprep.mubr.bf16.mxu1 %v6475_v36  ;;  %v6483_v6 = vld [vmem:[#allocation8 + $0x180] ss:$16 sps:$4 sm:$0xff]  }
 0x2fc   : > { %v1956_v46 = vpack.c.bf16 %v1752_v5, %v1750_v13  ;;  %v1590_v3 = vpop.f32.mrb[104].mxu0  ;;  %v6484_v13 = vld [vmem:[#allocation8 + $0x1a4] ss:$16 sps:$4 sm:$0xff]  }
 0x2fd   : > { %v1591_v62 = vadd.f32 %v1590_v3, %v7848_v34  ;;  %v1592_v28 = vpop.f32.mrb[105].mxu0 }
 0x2fe   : > { %v1593_v51 = vadd.f32 %v1592_v28, %v7848_v34  ;;  %v1594_v58 = vpop.f32.mrb[106].mxu0  ;;  %3364 = vmatprep.subr.bf16.mxu1 %v1956_v46 }
 0x2ff   : > { %v1595_v33 = vadd.f32 %v1594_v58, %v7850_v42  ;;  %v1596_v53 = vpop.f32.mrb[107].mxu0  ;;  %3365 = vmatpush1.bf16.msra.mxu1 %v1955_v54  ;;  %v1753_v63 = vmax.f32 %v1591_v62, 0.0 }
 0x300   : > { %v1597_v31 = vadd.f32 %v1596_v53, %v7850_v42  ;;  %v1754_v43 = vmax.f32 %v1593_v51, 0.0 }
 0x301   : > { %v1755_v30 = vmax.f32 %v1595_v33, 0.0 }
 0x302   : > { %v1756_v16 = vmax.f32 %v1597_v31, 0.0  ;;  %3126 = vmatmul.mubr.bf16.gmra.mrb[40].mxu1 %v6477_v49 }
 0x303   : > { %v1957_v19 = vpack.c.bf16 %v1755_v30, %v1753_v63  ;;  %3135 = vmatprep.mubr.bf16.mxu1 %v6478_v27  ;;  %v6486_v27 = vld [vmem:[#allocation8 + $0x1a0] ss:$16 sps:$4 sm:$0xff]   ;;  %v6487_v63 = vld [vmem:[#allocation8 + $0x1c4] ss:$16 sps:$4 sm:$0xff]  }
 0x304   : > { %v1958_v41 = vpack.c.bf16 %v1756_v16, %v1754_v43  ;;  %v1600_v47 = vpop.f32.mrb[108].mxu0 }
 0x305   : > { %v1601_v34 = vadd.f32 %v1600_v47, %v7854_v61  ;;  %v1602_v37 = vpop.f32.mrb[109].mxu0 }
 0x306   : > { %v1603_v12 = vadd.f32 %v1602_v37, %v7854_v61  ;;  %v1604_v44 = vpop.f32.mrb[110].mxu0  ;;  %3366 = vmatprep.subr.bf16.mxu1 %v1958_v41 }
 0x307   : > { %v1605_v29 = vadd.f32 %v1604_v44, %v7857_v24  ;;  %v1606_v42 = vpop.f32.mrb[111].mxu0  ;;  %3367 = vmatpush1.bf16.msra.mxu1 %v1957_v19  ;;  %v1757_v11 = vmax.f32 %v1601_v34, 0.0 }
 0x308   : > { %v1607_v23 = vadd.f32 %v1606_v42, %v7857_v24  ;;  %v1758_v38 = vmax.f32 %v1603_v12, 0.0 }
 0x309   : > { %v1759_v17 = vmax.f32 %v1605_v29, 0.0  ;;  %v6489_v29 = vld [vmem:[#allocation8 + $0x1c0] ss:$16 sps:$4 sm:$0xff]  }
 0x30a   : > { %v1760_v7 = vmax.f32 %v1607_v23, 0.0  ;;  %3136 = vmatmul.mubr.bf16.gmra.mrb[44].mxu1 %v6480_v2 }
 0x30b   : > { %v1959_v0 = vpack.c.bf16 %v1759_v17, %v1757_v11  ;;  %3145 = vmatprep.mubr.bf16.mxu1 %v6481_v60  ;;  %v6490_v60 = vld [vmem:[#allocation8 + $0x1e4] ss:$16 sps:$4 sm:$0xff]  }
 0x30c   : > { %v1960_v8 = vpack.c.bf16 %v1760_v7, %v1758_v38  ;;  %v1610_v59 = vpop.f32.mrb[112].mxu0 }
 0x30d   : > { %v1611_v61 = vadd.f32 %v1610_v59, %v7860_v1  ;;  %v1612_v21 = vpop.f32.mrb[113].mxu0 }
 0x30e   : > { %v1613_v36 = vadd.f32 %v1612_v21, %v7860_v1  ;;  %v1614_v22 = vpop.f32.mrb[114].mxu0  ;;  %3368 = vmatprep.subr.bf16.mxu1 %v1960_v8 }
 0x30f   : > { %v1615_v40 = vadd.f32 %v1614_v22, %v7863_v15  ;;  %v1616_v24 = vpop.f32.mrb[115].mxu0  ;;  %3369 = vmatpush1.bf16.msra.mxu1 %v1959_v0  ;;  %v1761_v54 = vmax.f32 %v1611_v61, 0.0  ;;  %v6492_v22 = vld [vmem:[#allocation8 + $0x1e0] ss:$16 sps:$4 sm:$0xff]  }
 0x310   : > { %v1617_v5 = vadd.f32 %v1616_v24, %v7863_v15  ;;  %v1762_v3 = vmax.f32 %v1613_v36, 0.0  ;;  %v6493_v24 = vld [vmem:[#allocation8 + $0x204] ss:$16 sps:$4 sm:$0xff]  }
 0x311   : > { %v1763_v46 = vmax.f32 %v1615_v40, 0.0 }
 0x312   : > { %v1764_v62 = vmax.f32 %v1617_v5, 0.0  ;;  %3146 = vmatmul.mubr.bf16.gmra.mrb[48].mxu1 %v6483_v6  ;;  %v8145_v6 = vld [vmem:[#allocation30_spill] sm:$0xff] }
 0x313   : > { %v1961_v28 = vpack.c.bf16 %v1763_v46, %v1761_v54  ;;  %3155 = vmatprep.mubr.bf16.mxu1 %v6484_v13 }
 0x314   : > { %v1962_v51 = vpack.c.bf16 %v1764_v62, %v1762_v3  ;;  %v1620_v58 = vpop.f32.mrb[116].mxu0 }
 0x315   : > { %v1621_v1 = vadd.f32 %v1620_v58, %v7868_v9  ;;  %v1622_v49 = vpop.f32.mrb[117].mxu0  ;;  %v6498_v58 = vld [vmem:[#allocation8 + $0x220] ss:$16 sps:$4 sm:$0xff]  }
 0x316   : > { %v1623_v33 = vadd.f32 %v1622_v49, %v7868_v9  ;;  %v1624_v53 = vpop.f32.mrb[118].mxu0  ;;  %3370 = vmatprep.subr.bf16.mxu1 %v1962_v51  ;;  %v6496_v51 = vld [vmem:[#allocation8 + $0x224] ss:$16 sps:$4 sm:$0xff]   ;;  %v6501_v49 = vld [vmem:[#allocation8 + $0x240] ss:$16 sps:$4 sm:$0xff]  }
 0x317   : > { %v1625_v31 = vadd.f32 %v1624_v53, %v7870_v4  ;;  %v1626_v15 = vpop.f32.mrb[119].mxu0  ;;  %3371 = vmatpush1.bf16.msra.mxu1 %v1961_v28  ;;  %v1765_v43 = vmax.f32 %v1621_v1, 0.0  ;;  %v6499_v1 = vld [vmem:[#allocation8 + $0x244] ss:$16 sps:$4 sm:$0xff]   ;;  %v6504_v53 = vld [vmem:[#allocation8 + $0x260] ss:$16 sps:$4 sm:$0xff]  }
 0x318   : > { %v1627_v30 = vadd.f32 %v1626_v15, %v7870_v4  ;;  %v1766_v19 = vmax.f32 %v1623_v33, 0.0  ;;  %v6502_v33 = vld [vmem:[#allocation8 + $0x264] ss:$16 sps:$4 sm:$0xff]  }
 0x319   : > { %v1767_v16 = vmax.f32 %v1625_v31, 0.0  ;;  %v6507_v31 = vld [vmem:[#allocation8 + $0x280] ss:$16 sps:$4 sm:$0xff]   ;;  %v6508_v15 = vld [vmem:[#allocation8 + $0x2a4] ss:$16 sps:$4 sm:$0xff]  }
 0x31a   : > { %v1768_v41 = vmax.f32 %v1627_v30, 0.0  ;;  %3156 = vmatmul.mubr.bf16.gmra.mrb[52].mxu1 %v6486_v27  ;;  %v6505_v27 = vld [vmem:[#allocation8 + $0x284] ss:$16 sps:$4 sm:$0xff]  }
 0x31b   : > { %v1963_v47 = vpack.c.bf16 %v1767_v16, %v1765_v43  ;;  %3165 = vmatprep.mubr.bf16.mxu1 %v6487_v63  ;;  %v6510_v63 = vld [vmem:[#allocation8 + $0x2a0] ss:$16 sps:$4 sm:$0xff]   ;;  %v6511_v30 = vld [vmem:[#allocation8 + $0x2c4] ss:$16 sps:$4 sm:$0xff]  }
 0x31c   : > { %v1964_v34 = vpack.c.bf16 %v1768_v41, %v1766_v19  ;;  %v1630_v37 = vpop.f32.mrb[120].mxu0  ;;  %v6513_v43 = vld [vmem:[#allocation8 + $0x2c0] ss:$16 sps:$4 sm:$0xff]   ;;  %v6514_v16 = vld [vmem:[#allocation8 + $0x2e4] ss:$16 sps:$4 sm:$0xff]  }
 0x31d   : > { %v1631_v9 = vadd.f32 %v1630_v37, %v7876_v26  ;;  %v1632_v12 = vpop.f32.mrb[121].mxu0  ;;  %v6516_v19 = vld [vmem:[#allocation8 + $0x2e0] ss:$16 sps:$4 sm:$0xff]   ;;  %v6517_v41 = vld [vmem:[#allocation8 + $0x304] ss:$16 sps:$4 sm:$0xff]  }
 0x31e   : > { %v1633_v44 = vadd.f32 %v1632_v12, %v7876_v26  ;;  %v1634_v2 = vpop.f32.mrb[122].mxu0  ;;  %3372 = vmatprep.subr.bf16.mxu1 %v1964_v34  ;;  %v6520_v34 = vld [vmem:[#allocation8 + $0x324] ss:$16 sps:$4 sm:$0xff]   ;;  %v6522_v37 = vld [vmem:[#allocation8 + $0x320] ss:$16 sps:$4 sm:$0xff]  }
 0x31f   : > { %v1635_v42 = vadd.f32 %v1634_v2, %v7878_v35  ;;  %v1636_v4 = vpop.f32.mrb[123].mxu0  ;;  %3373 = vmatpush1.bf16.msra.mxu1 %v1963_v47  ;;  %v1769_v11 = vmax.f32 %v1631_v9, 0.0  ;;  %v6519_v47 = vld [vmem:[#allocation8 + $0x300] ss:$16 sps:$4 sm:$0xff]   ;;  %v6523_v9 = vld [vmem:[#allocation8 + $0x344] ss:$16 sps:$4 sm:$0xff]  }
 0x320   : > { %v1637_v23 = vadd.f32 %v1636_v4, %v7878_v35  ;;  %v1770_v38 = vmax.f32 %v1633_v44, 0.0  ;;  %v6525_v12 = vld [vmem:[#allocation8 + $0x340] ss:$16 sps:$4 sm:$0xff]   ;;  %v6526_v44 = vld [vmem:[#allocation8 + $0x364] ss:$16 sps:$4 sm:$0xff]  }
 0x321   : > { %v1771_v17 = vmax.f32 %v1635_v42, 0.0  ;;  %v6528_v2 = vld [vmem:[#allocation8 + $0x360] ss:$16 sps:$4 sm:$0xff]   ;;  %v6532_v4 = vld [vmem:[#allocation8 + $0x3a4] ss:$16 sps:$4 sm:$0xff]  }
 0x322   : > { %v1772_v7 = vmax.f32 %v1637_v23, 0.0  ;;  %3166 = vmatmul.mubr.bf16.gmra.mrb[56].mxu1 %v6489_v29  ;;  %v6529_v29 = vld [vmem:[#allocation8 + $0x384] ss:$16 sps:$4 sm:$0xff]   ;;  %v6531_v42 = vld [vmem:[#allocation8 + $0x380] ss:$16 sps:$4 sm:$0xff]  }
 0x323   : > { %v1965_v0 = vpack.c.bf16 %v1771_v17, %v1769_v11  ;;  %3175 = vmatprep.mubr.bf16.mxu1 %v6490_v60  ;;  %v6534_v60 = vld [vmem:[#allocation8 + $0x3a0] ss:$16 sps:$4 sm:$0xff]   ;;  %v6535_v23 = vld [vmem:[#allocation8 + $0x3c4] ss:$16 sps:$4 sm:$0xff]  }
 0x324   : > { %v1966_v8 = vpack.c.bf16 %v1772_v7, %v1770_v38  ;;  %v1640_v59 = vpop.f32.mrb[124].mxu0  ;;  %v6537_v11 = vld [vmem:[#allocation8 + $0x3c0] ss:$16 sps:$4 sm:$0xff]   ;;  %v6538_v17 = vld [vmem:[#allocation8 + $0x3e4] ss:$16 sps:$4 sm:$0xff]  }
 0x325   : > { %v1641_v26 = vadd.f32 %v1640_v59, %v7882_v50  ;;  %v1642_v61 = vpop.f32.mrb[125].mxu0  ;;  %v6540_v38 = vld [vmem:[#allocation8 + $0x3e0] ss:$16 sps:$4 sm:$0xff]   ;;  %v6543_v7 = vld [vmem:[#allocation8 + $0xc] ss:$16 sps:$4 sm:$0xff]  }
 0x326   : > { %v1643_v21 = vadd.f32 %v1642_v61, %v7882_v50  ;;  %v1644_v36 = vpop.f32.mrb[126].mxu0  ;;  %3374 = vmatprep.subr.bf16.mxu1 %v1966_v8  ;;  %v6495_v50 = vld [vmem:[#allocation8 + $0x200] ss:$16 sps:$4 sm:$0xff]   ;;  %v6544_v8 = vld [vmem:[#allocation8 + $0x2c] ss:$16 sps:$4 sm:$0xff]  }
 0x327   : > { %v1645_v40 = vadd.f32 %v1644_v36, %v8145_v6  ;;  %v1646_v35 = vpop.f32.mrb[127].mxu0  ;;  %3375 = vmatpush1.bf16.msra.mxu1 %v1965_v0  ;;  %v1773_v5 = vmax.f32 %v1641_v26, 0.0  ;;  %v6541_v0 = vld [vmem:[#allocation8 + $0x8] ss:$16 sps:$4 sm:$0xff]   ;;  %v6547_v26 = vld [vmem:[#allocation8 + $0x4c] ss:$16 sps:$4 sm:$0xff]  }
 0x328   : > { %v1647_v13 = vadd.f32 %v1646_v35, %v8145_v6  ;;  %v1774_v46 = vmax.f32 %v1643_v21, 0.0  ;;  %v6546_v59 = vld [vmem:[#allocation8 + $0x28] ss:$16 sps:$4 sm:$0xff]   ;;  %v6550_v21 = vld [vmem:[#allocation8 + $0x6c] ss:$16 sps:$4 sm:$0xff]  }
 0x329   : > { %v1775_v54 = vmax.f32 %v1645_v40, 0.0  ;;  %v6549_v61 = vld [vmem:[#allocation8 + $0x48] ss:$16 sps:$4 sm:$0xff]   ;;  %v6556_v40 = vld [vmem:[#allocation8 + $0xac] ss:$16 sps:$4 sm:$0xff]  }
 0x32a   : > { %v1776_v3 = vmax.f32 %v1647_v13, 0.0  ;;  %3176 = vmatmul.mubr.bf16.gmra.mrb[60].mxu1 %v6492_v22  ;;  %v6552_v36 = vld [vmem:[#allocation8 + $0x68] ss:$16 sps:$4 sm:$0xff]   ;;  %v6553_v22 = vld [vmem:[#allocation8 + $0x8c] ss:$16 sps:$4 sm:$0xff]  }
 0x32b   : > { %v1967_v62 = vpack.c.bf16 %v1775_v54, %v1773_v5  ;;  %3185 = vmatprep.mubr.bf16.mxu1 %v6493_v24  ;;  %v6555_v6 = vld [vmem:[#allocation8 + $0x88] ss:$16 sps:$4 sm:$0xff]   ;;  %v6559_v24 = vld [vmem:[#allocation8 + $0xcc] ss:$16 sps:$4 sm:$0xff]  }
 0x32c   : > { %v1968_v28 = vpack.c.bf16 %v1776_v3, %v1774_v46  ;;  %v6558_v35 = vld [vmem:[#allocation8 + $0xa8] ss:$16 sps:$4 sm:$0xff]   ;;  %v6562_v5 = vld [vmem:[#allocation8 + $0xec] ss:$16 sps:$4 sm:$0xff]  }
 0x32d   : > { %v6561_v13 = vld [vmem:[#allocation8 + $0xc8] ss:$16 sps:$4 sm:$0xff]   ;;  %v6565_v46 = vld [vmem:[#allocation8 + $0x10c] ss:$16 sps:$4 sm:$0xff]  }
 0x32e   : > { %3376 = vmatprep.subr.bf16.mxu1 %v1968_v28  ;;  %v6564_v54 = vld [vmem:[#allocation8 + $0xe8] ss:$16 sps:$4 sm:$0xff]  }
 0x32f   : > { %3377 = vmatpush1.bf16.msra.mxu1 %v1967_v62  ;;  %v6567_v3 = vld [vmem:[#allocation8 + $0x108] ss:$16 sps:$4 sm:$0xff]   ;;  %v6568_v62 = vld [vmem:[#allocation8 + $0x12c] ss:$16 sps:$4 sm:$0xff]  }
 0x330   : > { %v6570_v28 = vld [vmem:[#allocation8 + $0x128] ss:$16 sps:$4 sm:$0xff]  }
 0x332   : > { %3186 = vmatmul.mubr.bf16.gmra.mrb[64].mxu1 %v6495_v50  ;;  %v6571_v50 = vld [vmem:[#allocation8 + $0x14c] ss:$16 sps:$4 sm:$0xff]  }
 0x333   : > { %3195 = vmatprep.mubr.bf16.mxu1 %v6496_v51  ;;  %v6573_v51 = vld [vmem:[#allocation8 + $0x148] ss:$16 sps:$4 sm:$0xff]  }
 0x33a   : > { %3196 = vmatmul.mubr.bf16.gmra.mrb[68].mxu1 %v6498_v58  ;;  %v6574_v58 = vld [vmem:[#allocation8 + $0x16c] ss:$16 sps:$4 sm:$0xff]  }
 0x33b   : > { %3205 = vmatprep.mubr.bf16.mxu1 %v6499_v1  ;;  %v6576_v1 = vld [vmem:[#allocation8 + $0x168] ss:$16 sps:$4 sm:$0xff]  }
 0x342   : > { %3206 = vmatmul.mubr.bf16.gmra.mrb[72].mxu1 %v6501_v49  ;;  %v6577_v49 = vld [vmem:[#allocation8 + $0x18c] ss:$16 sps:$4 sm:$0xff]  }
 0x343   : > { %3215 = vmatprep.mubr.bf16.mxu1 %v6502_v33  ;;  %v6579_v33 = vld [vmem:[#allocation8 + $0x188] ss:$16 sps:$4 sm:$0xff]  }
 0x34a   : > { %3216 = vmatmul.mubr.bf16.gmra.mrb[76].mxu1 %v6504_v53  ;;  %v6580_v53 = vld [vmem:[#allocation8 + $0x1ac] ss:$16 sps:$4 sm:$0xff]  }
 0x34b   : > { %3225 = vmatprep.mubr.bf16.mxu1 %v6505_v27  ;;  %v6582_v27 = vld [vmem:[#allocation8 + $0x1a8] ss:$16 sps:$4 sm:$0xff]  }
 0x352   : > { %3226 = vmatmul.mubr.bf16.gmra.mrb[80].mxu1 %v6507_v31  ;;  %v6583_v31 = vld [vmem:[#allocation8 + $0x1cc] ss:$16 sps:$4 sm:$0xff]  }
 0x353   : > { %3235 = vmatprep.mubr.bf16.mxu1 %v6508_v15  ;;  %v6585_v15 = vld [vmem:[#allocation8 + $0x1c8] ss:$16 sps:$4 sm:$0xff]  }
 0x35a   : > { %3236 = vmatmul.mubr.bf16.gmra.mrb[84].mxu1 %v6510_v63  ;;  %v6586_v63 = vld [vmem:[#allocation8 + $0x1ec] ss:$16 sps:$4 sm:$0xff]  }
 0x35b   : > { %3245 = vmatprep.mubr.bf16.mxu1 %v6511_v30  ;;  %v6588_v30 = vld [vmem:[#allocation8 + $0x1e8] ss:$16 sps:$4 sm:$0xff]  }
 0x362   : > { %3246 = vmatmul.mubr.bf16.gmra.mrb[88].mxu1 %v6513_v43  ;;  %v6589_v43 = vld [vmem:[#allocation8 + $0x20c] ss:$16 sps:$4 sm:$0xff]  }
 0x363   : > { %3255 = vmatprep.mubr.bf16.mxu1 %v6514_v16  ;;  %v6591_v16 = vld [vmem:[#allocation8 + $0x208] ss:$16 sps:$4 sm:$0xff]  }
 0x36a   : > { %3256 = vmatmul.mubr.bf16.gmra.mrb[92].mxu1 %v6516_v19  ;;  %v6592_v19 = vld [vmem:[#allocation8 + $0x22c] ss:$16 sps:$4 sm:$0xff]  }
 0x36b   : > { %3265 = vmatprep.mubr.bf16.mxu1 %v6517_v41  ;;  %v6594_v41 = vld [vmem:[#allocation8 + $0x228] ss:$16 sps:$4 sm:$0xff]  }
 0x372   : > { %3266 = vmatmul.mubr.bf16.gmra.mrb[96].mxu1 %v6519_v47  ;;  %v6595_v47 = vld [vmem:[#allocation8 + $0x24c] ss:$16 sps:$4 sm:$0xff]  }
 0x373   : > { %3275 = vmatprep.mubr.bf16.mxu1 %v6520_v34  ;;  %v6597_v34 = vld [vmem:[#allocation8 + $0x248] ss:$16 sps:$4 sm:$0xff]  }
 0x37a   : > { %3276 = vmatmul.mubr.bf16.gmra.mrb[100].mxu1 %v6522_v37  ;;  %v6598_v37 = vld [vmem:[#allocation8 + $0x26c] ss:$16 sps:$4 sm:$0xff]  }
 0x37b   : > { %3285 = vmatprep.mubr.bf16.mxu1 %v6523_v9  ;;  %v6600_v9 = vld [vmem:[#allocation8 + $0x268] ss:$16 sps:$4 sm:$0xff]  }
 0x382   : > { %3286 = vmatmul.mubr.bf16.gmra.mrb[104].mxu1 %v6525_v12  ;;  %v6601_v12 = vld [vmem:[#allocation8 + $0x28c] ss:$16 sps:$4 sm:$0xff]  }
 0x383   : > { %3295 = vmatprep.mubr.bf16.mxu1 %v6526_v44  ;;  %v6603_v44 = vld [vmem:[#allocation8 + $0x288] ss:$16 sps:$4 sm:$0xff]  }
 0x38a   : > { %3296 = vmatmul.mubr.bf16.gmra.mrb[108].mxu1 %v6528_v2  ;;  %v6604_v2 = vld [vmem:[#allocation8 + $0x2ac] ss:$16 sps:$4 sm:$0xff]  }
 0x38b   : > { %3305 = vmatprep.mubr.bf16.mxu1 %v6529_v29  ;;  %v6606_v29 = vld [vmem:[#allocation8 + $0x2a8] ss:$16 sps:$4 sm:$0xff]  }
 0x392   : > { %3306 = vmatmul.mubr.bf16.gmra.mrb[112].mxu1 %v6531_v42  ;;  %v6607_v42 = vld [vmem:[#allocation8 + $0x2cc] ss:$16 sps:$4 sm:$0xff]  }
 0x393   : > { %3315 = vmatprep.mubr.bf16.mxu1 %v6532_v4  ;;  %v6609_v4 = vld [vmem:[#allocation8 + $0x2c8] ss:$16 sps:$4 sm:$0xff]  }
 0x39a   : > { %3316 = vmatmul.mubr.bf16.gmra.mrb[116].mxu1 %v6534_v60  ;;  %v6610_v60 = vld [vmem:[#allocation8 + $0x2ec] ss:$16 sps:$4 sm:$0xff]  }
 0x39b   : > { %3325 = vmatprep.mubr.bf16.mxu1 %v6535_v23  ;;  %v6612_v23 = vld [vmem:[#allocation8 + $0x2e8] ss:$16 sps:$4 sm:$0xff]  }
 0x3a2   : > { %3326 = vmatmul.mubr.bf16.gmra.mrb[120].mxu1 %v6537_v11  ;;  %v6613_v11 = vld [vmem:[#allocation8 + $0x30c] ss:$16 sps:$4 sm:$0xff]  }
 0x3a3   : > { %3335 = vmatprep.mubr.bf16.mxu1 %v6538_v17  ;;  %v6615_v17 = vld [vmem:[#allocation8 + $0x308] ss:$16 sps:$4 sm:$0xff]  }
 0x3aa   : > { %3336 = vmatmul.mubr.bf16.gmra.mrb[124].mxu1 %v6540_v38  ;;  %v6616_v38 = vld [vmem:[#allocation8 + $0x32c] ss:$16 sps:$4 sm:$0xff]  }
 0x3ab   : > { %3378 = vmatprep.mubr.bf16.mxu1 %v6543_v7  ;;  %v6618_v7 = vld [vmem:[#allocation8 + $0x328] ss:$16 sps:$4 sm:$0xff]  }
 0x3b2   : > { %3379 = vmatmul.mubr.bf16.vlgmr.msra.gmra.mrb[0].mxu1 %v6541_v0  ;;  %v6619_v0 = vld [vmem:[#allocation8 + $0x34c] ss:$16 sps:$4 sm:$0xff]  }
 0x3b3   : > { %3388 = vmatprep.mubr.bf16.mxu1 %v6544_v8  ;;  %v6621_v8 = vld [vmem:[#allocation8 + $0x348] ss:$16 sps:$4 sm:$0xff]  }
 0x3ba   : > { %3389 = vmatmul.mubr.bf16.gmra.mrb[4].mxu1 %v6546_v59  ;;  %v6622_v59 = vld [vmem:[#allocation8 + $0x36c] ss:$16 sps:$4 sm:$0xff]  }
 0x3bb   : > { %3398 = vmatprep.mubr.bf16.mxu1 %v6547_v26 }
 0x3c2   : > { %3399 = vmatmul.mubr.bf16.gmra.mrb[8].mxu1 %v6549_v61 }
 0x3c3   : > { %3408 = vmatprep.mubr.bf16.mxu1 %v6550_v21 }
 0x3ca   : > { %3409 = vmatmul.mubr.bf16.gmra.mrb[12].mxu1 %v6552_v36  ;;  %v6624_v36 = vld [vmem:[#allocation8 + $0x368] ss:$16 sps:$4 sm:$0xff]  }
 0x3cb   : > { %3418 = vmatprep.mubr.bf16.mxu1 %v6553_v22 }
 0x3d2   : > { %3419 = vmatmul.mubr.bf16.gmra.mrb[16].mxu1 %v6555_v6 }
 0x3d3   : > { %3428 = vmatprep.mubr.bf16.mxu1 %v6556_v40  ;;  %v6625_v40 = vld [vmem:[#allocation8 + $0x38c] ss:$16 sps:$4 sm:$0xff]  }
 0x3da   : > { %3429 = vmatmul.mubr.bf16.gmra.mrb[20].mxu1 %v6558_v35 }
 0x3db   : > { %3438 = vmatprep.mubr.bf16.mxu1 %v6559_v24 }
 0x3e2   : > { %3439 = vmatmul.mubr.bf16.gmra.mrb[24].mxu1 %v6561_v13  ;;  %v6639_v13 = vld [vmem:[#allocation11 + $0x4] ss:$16 sps:$4 sm:$0xff]  }
 0x3e3   : > { %3448 = vmatprep.mubr.bf16.mxu1 %v6562_v5  ;;  %4499 = vmatprep.mubr.bf16.mxu0 %v6639_v13 }
 0x3ea   : > { %3449 = vmatmul.mubr.bf16.gmra.mrb[28].mxu1 %v6564_v54 }
 0x3eb   : > { %3458 = vmatprep.mubr.bf16.mxu1 %v6565_v46 }
 0x3f2   : > { %3459 = vmatmul.mubr.bf16.gmra.mrb[32].mxu1 %v6567_v3 }
 0x3f3   : > { %3468 = vmatprep.mubr.bf16.mxu1 %v6568_v62 }
 0x3fa   : > { %3469 = vmatmul.mubr.bf16.gmra.mrb[36].mxu1 %v6570_v28 }
 0x3fb   : > { %3478 = vmatprep.mubr.bf16.mxu1 %v6571_v50 }
 0x402   : > { %3479 = vmatmul.mubr.bf16.gmra.mrb[40].mxu1 %v6573_v51 }
 0x403   : > { %3488 = vmatprep.mubr.bf16.mxu1 %v6574_v58 }
 0x40a   : > { %3489 = vmatmul.mubr.bf16.gmra.mrb[44].mxu1 %v6576_v1  ;;  %v6627_v1 = vld [vmem:[#allocation8 + $0x388] ss:$16 sps:$4 sm:$0xff]  }
 0x40b   : > { %3498 = vmatprep.mubr.bf16.mxu1 %v6577_v49 }
 0x412   : > { %3499 = vmatmul.mubr.bf16.gmra.mrb[48].mxu1 %v6579_v33 }
 0x413   : > { %3508 = vmatprep.mubr.bf16.mxu1 %v6580_v53  ;;  %v6628_v53 = vld [vmem:[#allocation8 + $0x3ac] ss:$16 sps:$4 sm:$0xff]  }
 0x41a   : > { %3509 = vmatmul.mubr.bf16.gmra.mrb[52].mxu1 %v6582_v27 }
 0x41b   : > { %3518 = vmatprep.mubr.bf16.mxu1 %v6583_v31 }
 0x422   : > { %3519 = vmatmul.mubr.bf16.gmra.mrb[56].mxu1 %v6585_v15 }
 0x423   : > { %3528 = vmatprep.mubr.bf16.mxu1 %v6586_v63 }
 0x42a   : > { %3529 = vmatmul.mubr.bf16.gmra.mrb[60].mxu1 %v6588_v30 }
 0x42b   : > { %3538 = vmatprep.mubr.bf16.mxu1 %v6589_v43 }
 0x432   : > { %3539 = vmatmul.mubr.bf16.gmra.mrb[64].mxu1 %v6591_v16 }
 0x433   : > { %3548 = vmatprep.mubr.bf16.mxu1 %v6592_v19 }
 0x43a   : > { %3549 = vmatmul.mubr.bf16.gmra.mrb[68].mxu1 %v6594_v41 }
 0x43b   : > { %3558 = vmatprep.mubr.bf16.mxu1 %v6595_v47 }
 0x442   : > { %3559 = vmatmul.mubr.bf16.gmra.mrb[72].mxu1 %v6597_v34  ;;  %v6630_v34 = vld [vmem:[#allocation8 + $0x3a8] ss:$16 sps:$4 sm:$0xff]  }
 0x443   : > { %3568 = vmatprep.mubr.bf16.mxu1 %v6598_v37 }
 0x44a   : > { %3569 = vmatmul.mubr.bf16.gmra.mrb[76].mxu1 %v6600_v9 }
 0x44b   : > { %3578 = vmatprep.mubr.bf16.mxu1 %v6601_v12  ;;  %v6631_v12 = vld [vmem:[#allocation8 + $0x3cc] ss:$16 sps:$4 sm:$0xff]  }
 0x452   : > { %3579 = vmatmul.mubr.bf16.gmra.mrb[80].mxu1 %v6603_v44 }
 0x453   : > { %3588 = vmatprep.mubr.bf16.mxu1 %v6604_v2 }
 0x45a   : > { %3589 = vmatmul.mubr.bf16.gmra.mrb[84].mxu1 %v6606_v29 }
 0x45b   : > { %3598 = vmatprep.mubr.bf16.mxu1 %v6607_v42 }
 0x462   : > { %3599 = vmatmul.mubr.bf16.gmra.mrb[88].mxu1 %v6609_v4 }
 0x463   : > { %3608 = vmatprep.mubr.bf16.mxu1 %v6610_v60 }
 0x46a   : > { %3609 = vmatmul.mubr.bf16.gmra.mrb[92].mxu1 %v6612_v23 }
 0x46b   : > { %3618 = vmatprep.mubr.bf16.mxu1 %v6613_v11 }
 0x472   : > { %3619 = vmatmul.mubr.bf16.gmra.mrb[96].mxu1 %v6615_v17 }
 0x473   : > { %3628 = vmatprep.mubr.bf16.mxu1 %v6616_v38  ;;  %v8146_v38 = vld [vmem:[#allocation31_spill] sm:$0xff] }
 0x47a   : > { %3629 = vmatmul.mubr.bf16.gmra.mrb[100].mxu1 %v6618_v7 }
 0x47b   : > { %3638 = vmatprep.mubr.bf16.mxu1 %v6619_v0  ;;  %v6633_v0 = vld [vmem:[#allocation8 + $0x3c8] ss:$16 sps:$4 sm:$0xff]  }
 0x482   : > { %3639 = vmatmul.mubr.bf16.gmra.mrb[104].mxu1 %v6621_v8 }
 0x483   : > { %3648 = vmatprep.mubr.bf16.mxu1 %v6622_v59 }
 0x485   : > { %v3380_v26 = vpop.f32.mrb[0].mxu1 }
 0x486   : > { %v5857_v61 = vadd.f32 %v3380_v26, %v7888_v57  ;;  %v3382_v21 = vpop.f32.mrb[1].mxu1  ;;  %v6634_v26 = vld [vmem:[#allocation8 + $0x3ec] ss:$16 sps:$4 sm:$0xff]  }
 0x487   : > { %v5858_v22 = vadd.f32 %v3382_v21, %v7888_v57  ;;  %v3384_v6 = vpop.f32.mrb[2].mxu1 }
 0x488   : > { %v5859_v35 = vadd.f32 %v3384_v6, %v7891_v18  ;;  %v3386_v24 = vpop.f32.mrb[3].mxu1  ;;  %v3699_v54 = vmax.f32 %v5857_v61, 0.0  ;;  %v8147_v61 = vld [vmem:[#allocation32_spill] sm:$0xff] }
 0x489   : > { %v5860_v5 = vadd.f32 %v3386_v24, %v7891_v18  ;;  %v3700_v3 = vmax.f32 %v5858_v22, 0.0 }
 0x48a   : > { %v3701_v46 = vmax.f32 %v5859_v35, 0.0  ;;  %3649 = vmatmul.mubr.bf16.gmra.mrb[108].mxu1 %v6624_v36 }
 0x48b   : > { %v3702_v62 = vmax.f32 %v5860_v5, 0.0  ;;  %3658 = vmatprep.mubr.bf16.mxu1 %v6625_v40 }
 0x48c   : > { %v3891_v28 = vpack.c.bf16 %v3701_v46, %v3699_v54 }
 0x48d   : > { %v3892_v50 = vpack.c.bf16 %v3702_v62, %v3700_v3  ;;  %v3390_v51 = vpop.f32.mrb[4].mxu1  ;;  %v6636_v3 = vld [vmem:[#allocation8 + $0x3e8] ss:$16 sps:$4 sm:$0xff]  }
 0x48e   : > { %v5861_v57 = vadd.f32 %v3390_v51, %v7896_v25  ;;  %v3392_v58 = vpop.f32.mrb[5].mxu1 }
 0x48f   : > { %v5862_v49 = vadd.f32 %v3392_v58, %v7896_v25  ;;  %v3394_v33 = vpop.f32.mrb[6].mxu1  ;;  %4467 = vmatprep.subr.bf16.mxu0 %v3892_v50 }
 0x490   : > { %v5863_v18 = vadd.f32 %v3394_v33, %v7898_v55  ;;  %v3396_v27 = vpop.f32.mrb[7].mxu1  ;;  %4468 = vmatpush1.bf16.msra.mxu0 %v3891_v28  ;;  %v3703_v15 = vmax.f32 %v5861_v57, 0.0 }
 0x491   : > { %v5864_v31 = vadd.f32 %v3396_v27, %v7898_v55  ;;  %v3704_v30 = vmax.f32 %v5862_v49, 0.0 }
 0x492   : > { %v3705_v63 = vmax.f32 %v5863_v18, 0.0  ;;  %3659 = vmatmul.mubr.bf16.gmra.mrb[112].mxu1 %v6627_v1 }
 0x493   : > { %v3706_v43 = vmax.f32 %v5864_v31, 0.0  ;;  %3668 = vmatprep.mubr.bf16.mxu1 %v6628_v53  ;;  %v8148_v53 = vmov 0  }
 0x494   : > { %v3893_v16 = vpack.c.bf16 %v3705_v63, %v3703_v15 }
 0x495   : > { %v3894_v19 = vpack.c.bf16 %v3706_v43, %v3704_v30  ;;  %v3400_v41 = vpop.f32.mrb[8].mxu1 }
 0x496   : > { %v5865_v25 = vadd.f32 %v3400_v41, %v7904_v52  ;;  %v3402_v47 = vpop.f32.mrb[9].mxu1 }
 0x497   : > { %v5866_v37 = vadd.f32 %v3402_v47, %v7904_v52  ;;  %v3404_v9 = vpop.f32.mrb[10].mxu1  ;;  %4469 = vmatprep.subr.bf16.mxu0 %v3894_v19 }
 0x498   : > { %v5867_v55 = vadd.f32 %v3404_v9, %v7906_v48  ;;  %v3406_v44 = vpop.f32.mrb[11].mxu1  ;;  %4470 = vmatpush1.bf16.msra.mxu0 %v3893_v16  ;;  %v3707_v29 = vmax.f32 %v5865_v25, 0.0 }
 0x499   : > { %v5868_v2 = vadd.f32 %v3406_v44, %v7906_v48  ;;  %v3708_v4 = vmax.f32 %v5866_v37, 0.0 }
 0x49a   : > { %v3709_v42 = vmax.f32 %v5867_v55, 0.0  ;;  %3669 = vmatmul.mubr.bf16.gmra.mrb[116].mxu1 %v6630_v34 }
 0x49b   : > { %v3710_v60 = vmax.f32 %v5868_v2, 0.0  ;;  %3678 = vmatprep.mubr.bf16.mxu1 %v6631_v12 }
 0x49c   : > { %v3895_v23 = vpack.c.bf16 %v3709_v42, %v3707_v29 }
 0x49d   : > { %v3896_v11 = vpack.c.bf16 %v3710_v60, %v3708_v4  ;;  %v3410_v17 = vpop.f32.mrb[12].mxu1 }
 0x49e   : > { %v5869_v52 = vadd.f32 %v3410_v17, %v8146_v38  ;;  %v3412_v7 = vpop.f32.mrb[13].mxu1 }
 0x49f   : > { %v5870_v8 = vadd.f32 %v3412_v7, %v8146_v38  ;;  %v3414_v59 = vpop.f32.mrb[14].mxu1  ;;  %4471 = vmatprep.subr.bf16.mxu0 %v3896_v11 }
 0x4a0   : > { %v5871_v48 = vadd.f32 %v3414_v59, %v8147_v61  ;;  %v3416_v21 = vpop.f32.mrb[15].mxu1  ;;  %4472 = vmatpush1.bf16.msra.mxu0 %v3895_v23  ;;  %v3711_v22 = vmax.f32 %v5869_v52, 0.0 }
 0x4a1   : > { %v5872_v36 = vadd.f32 %v3416_v21, %v8147_v61  ;;  %v3712_v40 = vmax.f32 %v5870_v8, 0.0 }
 0x4a2   : > { %v3713_v6 = vmax.f32 %v5871_v48, 0.0  ;;  %3679 = vmatmul.mubr.bf16.gmra.mrb[120].mxu1 %v6633_v0  ;;  %v2111_v0 = vpop.permute.xlu1 %2110 }
 0x4a3   : > { %v3714_v35 = vmax.f32 %v5872_v36, 0.0  ;;  %3688 = vmatprep.mubr.bf16.mxu1 %v6634_v26 }
 0x4a4   : > { %v3897_v24 = vpack.c.bf16 %v3713_v6, %v3711_v22  ;;  %v2116_v6 = vpop.permute.xlu0 %2115 }
 0x4a5   : > { %v3898_v13 = vpack.c.bf16 %v3714_v35, %v3712_v40  ;;  %v3420_v5 = vpop.f32.mrb[16].mxu1 }
 0x4a6   : > { %v5873_v54 = vadd.f32 %v3420_v5, %v7916_v14  ;;  %v3422_v46 = vpop.f32.mrb[17].mxu1  ;;  %v2121_v5 = vpop.permute.xlu1 %2120 }
 0x4a7   : > { %v5874_v62 = vadd.f32 %v3422_v46, %v7916_v14  ;;  %v3424_v28 = vpop.f32.mrb[18].mxu1  ;;  %4473 = vmatprep.subr.bf16.mxu0 %v3898_v13 }
 0x4a8   : > { %v5875_v50 = vadd.f32 %v3424_v28, %v7919_v10  ;;  %v3426_v51 = vpop.f32.mrb[19].mxu1  ;;  %4474 = vmatpush1.bf16.msra.mxu0 %v3897_v24  ;;  %v3715_v58 = vmax.f32 %v5873_v54, 0.0 }
 0x4a9   : > { %v5876_v57 = vadd.f32 %v3426_v51, %v7919_v10  ;;  %v3716_v49 = vmax.f32 %v5874_v62, 0.0 }
 0x4aa   : > { %v3717_v1 = vmax.f32 %v5875_v50, 0.0  ;;  %3689 = vmatmul.mubr.bf16.gmra.mrb[124].mxu1 %v6636_v3 }
 0x4ab   : > { %v3718_v33 = vmax.f32 %v5876_v57, 0.0  ;;  %5341 = vmatprep.mubr.bf16.mxu1 %v8148_v53 }
 0x4ac   : > { %v3899_v18 = vpack.c.bf16 %v3717_v1, %v3715_v58  ;;  %v2126_v1 = vpop.permute.xlu0 %2125 }
 0x4ad   : > { %v3900_v27 = vpack.c.bf16 %v3718_v33, %v3716_v49  ;;  %v3430_v31 = vpop.f32.mrb[20].mxu1 }
 0x4ae   : > { %v5877_v14 = vadd.f32 %v3430_v31, %v7924_v45  ;;  %v3432_v15 = vpop.f32.mrb[21].mxu1 }
 0x4af   : > { %v5878_v63 = vadd.f32 %v3432_v15, %v7924_v45  ;;  %v3434_v30 = vpop.f32.mrb[22].mxu1  ;;  %4475 = vmatprep.subr.bf16.mxu0 %v3900_v27  ;;  %v2131_v27 = vpop.permute.xlu1 %2130 }
 0x4b0   : > { %v5879_v43 = vadd.f32 %v3434_v30, %v7926_v32  ;;  %v3436_v10 = vpop.f32.mrb[23].mxu1  ;;  %4476 = vmatpush1.bf16.msra.mxu0 %v3899_v18  ;;  %v3719_v19 = vmax.f32 %v5877_v14, 0.0 }
 0x4b1   : > { %v5880_v16 = vadd.f32 %v3436_v10, %v7926_v32  ;;  %v3720_v25 = vmax.f32 %v5878_v63, 0.0 }
 0x4b2   : > { %v3721_v41 = vmax.f32 %v5879_v43, 0.0 }
 0x4b3   : > { %v3722_v47 = vmax.f32 %v5880_v16, 0.0 }
 0x4b4   : > { %v3901_v34 = vpack.c.bf16 %v3721_v41, %v3719_v19 }
 0x4b5   : > { %v3902_v37 = vpack.c.bf16 %v3722_v47, %v3720_v25  ;;  %v3440_v9 = vpop.f32.mrb[24].mxu1  ;;  %v2136_v25 = vpop.permute.xlu0 %2135 }
 0x4b6   : > { %v5881_v12 = vadd.f32 %v3440_v9, %v7932_v56  ;;  %v3442_v55 = vpop.f32.mrb[25].mxu1 }
 0x4b7   : > { %v5882_v45 = vadd.f32 %v3442_v55, %v7932_v56  ;;  %v3444_v44 = vpop.f32.mrb[26].mxu1  ;;  %4477 = vmatprep.subr.bf16.mxu0 %v3902_v37 }
 0x4b8   : > { %v5883_v2 = vadd.f32 %v3444_v44, %v7934_v20  ;;  %v3446_v29 = vpop.f32.mrb[27].mxu1  ;;  %4478 = vmatpush1.bf16.msra.mxu0 %v3901_v34  ;;  %v3723_v42 = vmax.f32 %v5881_v12, 0.0  ;;  %v2141_v12 = vpop.permute.xlu1 %2140 }
 0x4b9   : > { %v5884_v32 = vadd.f32 %v3446_v29, %v7934_v20  ;;  %v3724_v60 = vmax.f32 %v5882_v45, 0.0 }
 0x4ba   : > { %v3725_v4 = vmax.f32 %v5883_v2, 0.0 }
 0x4bb   : > { %v3726_v23 = vmax.f32 %v5884_v32, 0.0 }
 0x4bc   : > { %v3903_v11 = vpack.c.bf16 %v3725_v4, %v3723_v42 }
 0x4bd   : > { %v3904_v17 = vpack.c.bf16 %v3726_v23, %v3724_v60  ;;  %v3450_v38 = vpop.f32.mrb[28].mxu1 }
 0x4be   : > { %v5885_v52 = vadd.f32 %v3450_v38, %v7938_v39  ;;  %v3452_v7 = vpop.f32.mrb[29].mxu1 }
 0x4bf   : > { %v5886_v56 = vadd.f32 %v3452_v7, %v7938_v39  ;;  %v3454_v8 = vpop.f32.mrb[30].mxu1  ;;  %4479 = vmatprep.subr.bf16.mxu0 %v3904_v17 }
 0x4c0   : > { %v5887_v59 = vadd.f32 %v3454_v8, %v2111_v0  ;;  %v3456_v26 = vpop.f32.mrb[31].mxu1  ;;  %4480 = vmatpush1.bf16.msra.mxu0 %v3903_v11  ;;  %v3727_v20 = vmax.f32 %v5885_v52, 0.0  ;;  %v2146_v11 = vpop.permute.xlu0 %2145 }
 0x4c1   : > { %v5888_v61 = vadd.f32 %v3456_v26, %v2111_v0  ;;  %v3728_v21 = vmax.f32 %v5886_v56, 0.0  ;;  %v2151_v0 = vpop.permute.xlu1 %2150 }
 0x4c2   : > { %v3729_v48 = vmax.f32 %v5887_v59, 0.0 }
 0x4c3   : > { %v3730_v36 = vmax.f32 %v5888_v61, 0.0 }
 0x4c4   : > { %v3905_v22 = vpack.c.bf16 %v3729_v48, %v3727_v20 }
 0x4c5   : > { %v3906_v40 = vpack.c.bf16 %v3730_v36, %v3728_v21  ;;  %v3460_v35 = vpop.f32.mrb[32].mxu1 }
 0x4c6   : > { %v5889_v24 = vadd.f32 %v3460_v35, %v2116_v6  ;;  %v3462_v13 = vpop.f32.mrb[33].mxu1 }
 0x4c7   : > { %v5890_v54 = vadd.f32 %v3462_v13, %v2116_v6  ;;  %v3464_v46 = vpop.f32.mrb[34].mxu1  ;;  %4481 = vmatprep.subr.bf16.mxu0 %v3906_v40  ;;  %v2156_v6 = vpop.permute.xlu0 %2155 }
 0x4c8   : > { %v5891_v39 = vadd.f32 %v3464_v46, %v2121_v5  ;;  %v3466_v3 = vpop.f32.mrb[35].mxu1  ;;  %4482 = vmatpush1.bf16.msra.mxu0 %v3905_v22  ;;  %v3731_v28 = vmax.f32 %v5889_v24, 0.0 }
 0x4c9   : > { %v5892_v62 = vadd.f32 %v3466_v3, %v2121_v5  ;;  %v3732_v51 = vmax.f32 %v5890_v54, 0.0  ;;  %v2161_v5 = vpop.permute.xlu1 %2160 }
 0x4ca   : > { %v3733_v50 = vmax.f32 %v5891_v39, 0.0 }
 0x4cb   : > { %v3734_v57 = vmax.f32 %v5892_v62, 0.0 }
 0x4cc   : > { %v3907_v58 = vpack.c.bf16 %v3733_v50, %v3731_v28 }
 0x4cd   : > { %v3908_v49 = vpack.c.bf16 %v3734_v57, %v3732_v51  ;;  %v3470_v33 = vpop.f32.mrb[36].mxu1 }
 0x4ce   : > { %v5893_v53 = vadd.f32 %v3470_v33, %v2126_v1  ;;  %v3472_v18 = vpop.f32.mrb[37].mxu1 }
 0x4cf   : > { %v5894_v31 = vadd.f32 %v3472_v18, %v2126_v1  ;;  %v3474_v14 = vpop.f32.mrb[38].mxu1  ;;  %4483 = vmatprep.subr.bf16.mxu0 %v3908_v49  ;;  %v2166_v1 = vpop.permute.xlu0 %2165 }
 0x4d0   : > { %v5895_v15 = vadd.f32 %v3474_v14, %v2131_v27  ;;  %v3476_v63 = vpop.f32.mrb[39].mxu1  ;;  %4484 = vmatpush1.bf16.msra.mxu0 %v3907_v58  ;;  %v3735_v43 = vmax.f32 %v5893_v53, 0.0 }
 0x4d1   : > { %v5896_v30 = vadd.f32 %v3476_v63, %v2131_v27  ;;  %v3736_v16 = vmax.f32 %v5894_v31, 0.0  ;;  %v2171_v27 = vpop.permute.xlu1 %2170 }
 0x4d2   : > { %v3737_v10 = vmax.f32 %v5895_v15, 0.0 }
 0x4d3   : > { %v3738_v19 = vmax.f32 %v5896_v30, 0.0 }
 0x4d4   : > { %v3909_v41 = vpack.c.bf16 %v3737_v10, %v3735_v43 }
 0x4d5   : > { %v3910_v47 = vpack.c.bf16 %v3738_v19, %v3736_v16  ;;  %v3480_v34 = vpop.f32.mrb[40].mxu1 }
 0x4d6   : > { %v5897_v37 = vadd.f32 %v3480_v34, %v2136_v25  ;;  %v3482_v9 = vpop.f32.mrb[41].mxu1 }
 0x4d7   : > { %v5898_v55 = vadd.f32 %v3482_v9, %v2136_v25  ;;  %v3484_v45 = vpop.f32.mrb[42].mxu1  ;;  %4485 = vmatprep.subr.bf16.mxu0 %v3910_v47  ;;  %v2176_v25 = vpop.permute.xlu0 %2175 }
 0x4d8   : > { %v5899_v44 = vadd.f32 %v3484_v45, %v2141_v12  ;;  %v3486_v2 = vpop.f32.mrb[43].mxu1  ;;  %4486 = vmatpush1.bf16.msra.mxu0 %v3909_v41  ;;  %v3739_v32 = vmax.f32 %v5897_v37, 0.0 }
 0x4d9   : > { %v5900_v29 = vadd.f32 %v3486_v2, %v2141_v12  ;;  %v3740_v4 = vmax.f32 %v5898_v55, 0.0  ;;  %v2181_v12 = vpop.permute.xlu1 %2180 }
 0x4da   : > { %v3741_v42 = vmax.f32 %v5899_v44, 0.0 }
 0x4db   : > { %v3742_v60 = vmax.f32 %v5900_v29, 0.0 }
 0x4dc   : > { %v3911_v23 = vpack.c.bf16 %v3741_v42, %v3739_v32 }
 0x4dd   : > { %v3912_v17 = vpack.c.bf16 %v3742_v60, %v3740_v4  ;;  %v3490_v38 = vpop.f32.mrb[44].mxu1 }
 0x4de   : > { %v5901_v52 = vadd.f32 %v3490_v38, %v2146_v11  ;;  %v3492_v7 = vpop.f32.mrb[45].mxu1 }
 0x4df   : > { %v5902_v56 = vadd.f32 %v3492_v7, %v2146_v11  ;;  %v3494_v8 = vpop.f32.mrb[46].mxu1  ;;  %4487 = vmatprep.subr.bf16.mxu0 %v3912_v17  ;;  %v2186_v11 = vpop.permute.xlu0 %2185 }
 0x4e0   : > { %v5903_v59 = vadd.f32 %v3494_v8, %v2151_v0  ;;  %v3496_v26 = vpop.f32.mrb[47].mxu1  ;;  %4488 = vmatpush1.bf16.msra.mxu0 %v3911_v23  ;;  %v3743_v20 = vmax.f32 %v5901_v52, 0.0 }
 0x4e1   : > { %v5904_v61 = vadd.f32 %v3496_v26, %v2151_v0  ;;  %v3744_v21 = vmax.f32 %v5902_v56, 0.0  ;;  %v2191_v0 = vpop.permute.xlu1 %2190 }
 0x4e2   : > { %v3745_v48 = vmax.f32 %v5903_v59, 0.0 }
 0x4e3   : > { %v3746_v36 = vmax.f32 %v5904_v61, 0.0 }
 0x4e4   : > { %v3913_v22 = vpack.c.bf16 %v3745_v48, %v3743_v20 }
 0x4e5   : > { %v3914_v40 = vpack.c.bf16 %v3746_v36, %v3744_v21  ;;  %v3500_v35 = vpop.f32.mrb[48].mxu1 }
 0x4e6   : > { %v5905_v24 = vadd.f32 %v3500_v35, %v2156_v6  ;;  %v3502_v13 = vpop.f32.mrb[49].mxu1 }
 0x4e7   : > { %v5906_v54 = vadd.f32 %v3502_v13, %v2156_v6  ;;  %v3504_v46 = vpop.f32.mrb[50].mxu1  ;;  %4489 = vmatprep.subr.bf16.mxu0 %v3914_v40  ;;  %v2196_v6 = vpop.permute.xlu0 %2195 }
 0x4e8   : > { %v5907_v39 = vadd.f32 %v3504_v46, %v2161_v5  ;;  %v3506_v3 = vpop.f32.mrb[51].mxu1  ;;  %4490 = vmatpush1.bf16.msra.mxu0 %v3913_v22  ;;  %v3747_v28 = vmax.f32 %v5905_v24, 0.0 }
 0x4e9   : > { %v5908_v62 = vadd.f32 %v3506_v3, %v2161_v5  ;;  %v3748_v51 = vmax.f32 %v5906_v54, 0.0  ;;  %v2201_v5 = vpop.permute.xlu1 %2200 }
 0x4ea   : > { %v3749_v50 = vmax.f32 %v5907_v39, 0.0  ;;  %v6637_v39 = vld [vmem:[#allocation11] ss:$16 sps:$4 sm:$0xff]  }
 0x4eb   : > { %v3750_v57 = vmax.f32 %v5908_v62, 0.0 }
 0x4ec   : > { %v3915_v58 = vpack.c.bf16 %v3749_v50, %v3747_v28  ;;  %v6640_v28 = vld [vmem:[#allocation11 + $0x24] ss:$16 sps:$4 sm:$0xff]  }
 0x4ed   : > { %v3916_v49 = vpack.c.bf16 %v3750_v57, %v3748_v51  ;;  %v3510_v33 = vpop.f32.mrb[52].mxu1 }
 0x4ee   : > { %v5909_v53 = vadd.f32 %v3510_v33, %v2166_v1  ;;  %v3512_v18 = vpop.f32.mrb[53].mxu1  ;;  %v2206_v33 = vpop.permute.xlu0 %2205 }
 0x4ef   : > { %v5910_v31 = vadd.f32 %v3512_v18, %v2166_v1  ;;  %v3514_v14 = vpop.f32.mrb[54].mxu1  ;;  %4491 = vmatprep.subr.bf16.mxu0 %v3916_v49 }
 0x4f0   : > { %v5911_v15 = vadd.f32 %v3514_v14, %v2171_v27  ;;  %v3516_v63 = vpop.f32.mrb[55].mxu1  ;;  %4492 = vmatpush1.bf16.msra.mxu0 %v3915_v58  ;;  %v3751_v43 = vmax.f32 %v5909_v53, 0.0  ;;  %v2211_v14 = vpop.permute.xlu1 %2210 }
 0x4f1   : > { %v5912_v30 = vadd.f32 %v3516_v63, %v2171_v27  ;;  %v3752_v16 = vmax.f32 %v5910_v31, 0.0 }
 0x4f2   : > { %v3753_v10 = vmax.f32 %v5911_v15, 0.0 }
 0x4f3   : > { %v3754_v19 = vmax.f32 %v5912_v30, 0.0  ;;  %v6642_v30 = vld [vmem:[#allocation11 + $0x20] ss:$16 sps:$4 sm:$0xff]  }
 0x4f4   : > { %v3917_v41 = vpack.c.bf16 %v3753_v10, %v3751_v43 }
 0x4f5   : > { %v3918_v47 = vpack.c.bf16 %v3754_v19, %v3752_v16  ;;  %v3520_v34 = vpop.f32.mrb[56].mxu1  ;;  %v6643_v16 = vld [vmem:[#allocation11 + $0x44] ss:$16 sps:$4 sm:$0xff]  }
 0x4f6   : > { %v5913_v37 = vadd.f32 %v3520_v34, %v2176_v25  ;;  %v3522_v9 = vpop.f32.mrb[57].mxu1 }
 0x4f7   : > { %v5914_v55 = vadd.f32 %v3522_v9, %v2176_v25  ;;  %v3524_v45 = vpop.f32.mrb[58].mxu1  ;;  %4493 = vmatprep.subr.bf16.mxu0 %v3918_v47  ;;  %v2216_v9 = vpop.permute.xlu0 %2215 }
 0x4f8   : > { %v5915_v44 = vadd.f32 %v3524_v45, %v2181_v12  ;;  %v3526_v2 = vpop.f32.mrb[59].mxu1  ;;  %4494 = vmatpush1.bf16.msra.mxu0 %v3917_v41  ;;  %v3755_v32 = vmax.f32 %v5913_v37, 0.0 }
 0x4f9   : > { %v5916_v29 = vadd.f32 %v3526_v2, %v2181_v12  ;;  %v3756_v4 = vmax.f32 %v5914_v55, 0.0  ;;  %v2221_v2 = vpop.permute.xlu1 %2220 }
 0x4fa   : > { %v3757_v42 = vmax.f32 %v5915_v44, 0.0 }
 0x4fb   : > { %v3758_v60 = vmax.f32 %v5916_v29, 0.0 }
 0x4fc   : > { %v3919_v23 = vpack.c.bf16 %v3757_v42, %v3755_v32  ;;  %v6645_v42 = vld [vmem:[#allocation11 + $0x40] ss:$16 sps:$4 sm:$0xff]  }
 0x4fd   : > { %v3920_v17 = vpack.c.bf16 %v3758_v60, %v3756_v4  ;;  %v3530_v38 = vpop.f32.mrb[60].mxu1 }
 0x4fe   : > { %v5917_v52 = vadd.f32 %v3530_v38, %v2186_v11  ;;  %v3532_v7 = vpop.f32.mrb[61].mxu1 }
 0x4ff   : > { %v5918_v56 = vadd.f32 %v3532_v7, %v2186_v11  ;;  %v3534_v8 = vpop.f32.mrb[62].mxu1  ;;  %4495 = vmatprep.subr.bf16.mxu0 %v3920_v17 }
 0x500   : > { %v5919_v59 = vadd.f32 %v3534_v8, %v2191_v0  ;;  %v3536_v26 = vpop.f32.mrb[63].mxu1  ;;  %4496 = vmatpush1.bf16.msra.mxu0 %v3919_v23  ;;  %v3759_v20 = vmax.f32 %v5917_v52, 0.0  ;;  %v6646_v23 = vld [vmem:[#allocation11 + $0x64] ss:$16 sps:$4 sm:$0xff]  }
 0x501   : > { %v5920_v61 = vadd.f32 %v3536_v26, %v2191_v0  ;;  %v3760_v21 = vmax.f32 %v5918_v56, 0.0  ;;  %v2226_v56 = vpop.permute.xlu0 %2225 }
 0x502   : > { %v3761_v48 = vmax.f32 %v5919_v59, 0.0 }
 0x503   : > { %v3762_v36 = vmax.f32 %v5920_v61, 0.0 }
 0x504   : > { %v3921_v22 = vpack.c.bf16 %v3761_v48, %v3759_v20  ;;  %v2231_v20 = vpop.permute.xlu1 %2230 }
 0x505   : > { %v3922_v40 = vpack.c.bf16 %v3762_v36, %v3760_v21  ;;  %v3540_v35 = vpop.f32.mrb[64].mxu1  ;;  %v6648_v36 = vld [vmem:[#allocation11 + $0x60] ss:$16 sps:$4 sm:$0xff]  }
 0x506   : > { %v5921_v24 = vadd.f32 %v3540_v35, %v2196_v6  ;;  %v3542_v13 = vpop.f32.mrb[65].mxu1 }
 0x507   : > { %v5922_v54 = vadd.f32 %v3542_v13, %v2196_v6  ;;  %v3544_v46 = vpop.f32.mrb[66].mxu1  ;;  %4497 = vmatprep.subr.bf16.mxu0 %v3922_v40  ;;  %v6649_v40 = vld [vmem:[#allocation11 + $0x84] ss:$16 sps:$4 sm:$0xff]  }
 0x508   : > { %v5923_v3 = vadd.f32 %v3544_v46, %v2201_v5  ;;  %v3546_v62 = vpop.f32.mrb[67].mxu1  ;;  %4498 = vmatpush1.bf16.msra.mxu0 %v3921_v22  ;;  %v3763_v51 = vmax.f32 %v5921_v24, 0.0 }
 0x509   : > { %v5924_v50 = vadd.f32 %v3546_v62, %v2201_v5  ;;  %v3764_v58 = vmax.f32 %v5922_v54, 0.0 }
 0x50a   : > { %v3765_v57 = vmax.f32 %v5923_v3, 0.0 }
 0x50b   : > { %v3766_v1 = vmax.f32 %v5924_v50, 0.0  ;;  %4500 = vmatmul.mubr.bf16.vlgmr.msra.gmra.mrb[128].mxu0 %v6637_v39  ;;  %v2236_v39 = vpop.permute.xlu0 %2235 }
 0x50c   : > { %v3923_v49 = vpack.c.bf16 %v3765_v57, %v3763_v51  ;;  %4509 = vmatprep.mubr.bf16.mxu0 %v6640_v28  ;;  %v2241_v51 = vpop.permute.xlu1 %2240 }
 0x50d   : > { %v3924_v53 = vpack.c.bf16 %v3766_v1, %v3764_v58  ;;  %v3550_v18 = vpop.f32.mrb[68].mxu1  ;;  %v6651_v1 = vld [vmem:[#allocation11 + $0x80] ss:$16 sps:$4 sm:$0xff]  }
 0x50e   : > { %v5925_v27 = vadd.f32 %v3550_v18, %v2206_v33  ;;  %v3552_v31 = vpop.f32.mrb[69].mxu1 }
 0x50f   : > { %v5926_v15 = vadd.f32 %v3552_v31, %v2206_v33  ;;  %v3554_v63 = vpop.f32.mrb[70].mxu1  ;;  %4660 = vmatprep.subr.bf16.mxu0 %v3924_v53  ;;  %v6652_v53 = vld [vmem:[#allocation11 + $0xa4] ss:$16 sps:$4 sm:$0xff]  }
 0x510   : > { %v5927_v43 = vadd.f32 %v3554_v63, %v2211_v14  ;;  %v3556_v10 = vpop.f32.mrb[71].mxu1  ;;  %4661 = vmatpush1.bf16.msra.mxu0 %v3923_v49  ;;  %v3767_v41 = vmax.f32 %v5925_v27, 0.0 }
 0x511   : > { %v5928_v19 = vadd.f32 %v3556_v10, %v2211_v14  ;;  %v3768_v47 = vmax.f32 %v5926_v15, 0.0 }
 0x512   : > { %v3769_v25 = vmax.f32 %v5927_v43, 0.0 }
 0x513   : > { %v3770_v34 = vmax.f32 %v5928_v19, 0.0  ;;  %4510 = vmatmul.mubr.bf16.gmra.mrb[132].mxu0 %v6642_v30  ;;  %v2246_v30 = vpop.permute.xlu0 %2245 }
 0x514   : > { %v3925_v37 = vpack.c.bf16 %v3769_v25, %v3767_v41  ;;  %4519 = vmatprep.mubr.bf16.mxu0 %v6643_v16  ;;  %v2251_v41 = vpop.permute.xlu1 %2250 }
 0x515   : > { %v3926_v12 = vpack.c.bf16 %v3770_v34, %v3768_v47  ;;  %v3560_v55 = vpop.f32.mrb[72].mxu1  ;;  %v6654_v34 = vld [vmem:[#allocation11 + $0xa0] ss:$16 sps:$4 sm:$0xff]  }
 0x516   : > { %v5929_v45 = vadd.f32 %v3560_v55, %v2216_v9  ;;  %v3562_v44 = vpop.f32.mrb[73].mxu1 }
 0x517   : > { %v5930_v29 = vadd.f32 %v3562_v44, %v2216_v9  ;;  %v3564_v32 = vpop.f32.mrb[74].mxu1  ;;  %4662 = vmatprep.subr.bf16.mxu0 %v3926_v12  ;;  %v6655_v12 = vld [vmem:[#allocation11 + $0xc4] ss:$16 sps:$4 sm:$0xff]  }
 0x518   : > { %v5931_v4 = vadd.f32 %v3564_v32, %v2221_v2  ;;  %v3566_v60 = vpop.f32.mrb[75].mxu1  ;;  %4663 = vmatpush1.bf16.msra.mxu0 %v3925_v37  ;;  %v3771_v17 = vmax.f32 %v5929_v45, 0.0 }
 0x519   : > { %v5932_v11 = vadd.f32 %v3566_v60, %v2221_v2  ;;  %v3772_v52 = vmax.f32 %v5930_v29, 0.0 }
 0x51a   : > { %v3773_v38 = vmax.f32 %v5931_v4, 0.0 }
 0x51b   : > { %v3774_v7 = vmax.f32 %v5932_v11, 0.0  ;;  %4520 = vmatmul.mubr.bf16.gmra.mrb[136].mxu0 %v6645_v42  ;;  %v2256_v42 = vpop.permute.xlu0 %2255 }
 0x51c   : > { %v3927_v0 = vpack.c.bf16 %v3773_v38, %v3771_v17  ;;  %4529 = vmatprep.mubr.bf16.mxu0 %v6646_v23  ;;  %v2261_v17 = vpop.permute.xlu1 %2260 }
 0x51d   : > { %v3928_v8 = vpack.c.bf16 %v3774_v7, %v3772_v52  ;;  %v3570_v59 = vpop.f32.mrb[76].mxu1  ;;  %v6657_v7 = vld [vmem:[#allocation11 + $0xc0] ss:$16 sps:$4 sm:$0xff]  }
 0x51e   : > { %v5933_v26 = vadd.f32 %v3570_v59, %v2226_v56  ;;  %v3572_v61 = vpop.f32.mrb[77].mxu1 }
 0x51f   : > { %v5934_v48 = vadd.f32 %v3572_v61, %v2226_v56  ;;  %v3574_v21 = vpop.f32.mrb[78].mxu1  ;;  %4664 = vmatprep.subr.bf16.mxu0 %v3928_v8  ;;  %v6658_v8 = vld [vmem:[#allocation11 + $0xe4] ss:$16 sps:$4 sm:$0xff]  }
 0x520   : > { %v5935_v22 = vadd.f32 %v3574_v21, %v2231_v20  ;;  %v3576_v6 = vpop.f32.mrb[79].mxu1  ;;  %4665 = vmatpush1.bf16.msra.mxu0 %v3927_v0  ;;  %v3775_v24 = vmax.f32 %v5933_v26, 0.0 }
 0x521   : > { %v5936_v35 = vadd.f32 %v3576_v6, %v2231_v20  ;;  %v3776_v5 = vmax.f32 %v5934_v48, 0.0 }
 0x522   : > { %v3777_v13 = vmax.f32 %v5935_v22, 0.0 }
 0x523   : > { %v3778_v54 = vmax.f32 %v5936_v35, 0.0  ;;  %4530 = vmatmul.mubr.bf16.gmra.mrb[140].mxu0 %v6648_v36  ;;  %v2266_v36 = vpop.permute.xlu0 %2265 }
 0x524   : > { %v3929_v46 = vpack.c.bf16 %v3777_v13, %v3775_v24  ;;  %4539 = vmatprep.mubr.bf16.mxu0 %v6649_v40  ;;  %v2271_v24 = vpop.permute.xlu1 %2270 }
 0x525   : > { %v3930_v3 = vpack.c.bf16 %v3778_v54, %v3776_v5  ;;  %v3580_v62 = vpop.f32.mrb[80].mxu1  ;;  %v6660_v54 = vld [vmem:[#allocation11 + $0xe0] ss:$16 sps:$4 sm:$0xff]  }
 0x526   : > { %v5937_v28 = vadd.f32 %v3580_v62, %v2236_v39  ;;  %v3582_v50 = vpop.f32.mrb[81].mxu1 }
 0x527   : > { %v5938_v57 = vadd.f32 %v3582_v50, %v2236_v39  ;;  %v3584_v58 = vpop.f32.mrb[82].mxu1  ;;  %4666 = vmatprep.subr.bf16.mxu0 %v3930_v3  ;;  %v6661_v3 = vld [vmem:[#allocation11 + $0x104] ss:$16 sps:$4 sm:$0xff]  }
 0x528   : > { %v5939_v49 = vadd.f32 %v3584_v58, %v2241_v51  ;;  %v3586_v33 = vpop.f32.mrb[83].mxu1  ;;  %4667 = vmatpush1.bf16.msra.mxu0 %v3929_v46  ;;  %v3779_v27 = vmax.f32 %v5937_v28, 0.0 }
 0x529   : > { %v5940_v18 = vadd.f32 %v3586_v33, %v2241_v51  ;;  %v3780_v14 = vmax.f32 %v5938_v57, 0.0 }
 0x52a   : > { %v3781_v31 = vmax.f32 %v5939_v49, 0.0 }
 0x52b   : > { %v3782_v15 = vmax.f32 %v5940_v18, 0.0  ;;  %4540 = vmatmul.mubr.bf16.gmra.mrb[144].mxu0 %v6651_v1  ;;  %v2276_v1 = vpop.permute.xlu0 %2275 }
 0x52c   : > { %v3931_v63 = vpack.c.bf16 %v3781_v31, %v3779_v27  ;;  %4549 = vmatprep.mubr.bf16.mxu0 %v6652_v53  ;;  %v2281_v27 = vpop.permute.xlu1 %2280 }
 0x52d   : > { %v3932_v43 = vpack.c.bf16 %v3782_v15, %v3780_v14  ;;  %v3590_v10 = vpop.f32.mrb[84].mxu1  ;;  %v6663_v15 = vld [vmem:[#allocation11 + $0x100] ss:$16 sps:$4 sm:$0xff]  }
 0x52e   : > { %v5941_v16 = vadd.f32 %v3590_v10, %v2246_v30  ;;  %v3592_v19 = vpop.f32.mrb[85].mxu1 }
 0x52f   : > { %v5942_v25 = vadd.f32 %v3592_v19, %v2246_v30  ;;  %v3594_v47 = vpop.f32.mrb[86].mxu1  ;;  %4668 = vmatprep.subr.bf16.mxu0 %v3932_v43  ;;  %v6664_v43 = vld [vmem:[#allocation11 + $0x124] ss:$16 sps:$4 sm:$0xff]  }
 0x530   : > { %v5943_v37 = vadd.f32 %v3594_v47, %v2251_v41  ;;  %v3596_v9 = vpop.f32.mrb[87].mxu1  ;;  %4669 = vmatpush1.bf16.msra.mxu0 %v3931_v63  ;;  %v3783_v45 = vmax.f32 %v5941_v16, 0.0 }
 0x531   : > { %v5944_v55 = vadd.f32 %v3596_v9, %v2251_v41  ;;  %v3784_v2 = vmax.f32 %v5942_v25, 0.0 }
 0x532   : > { %v3785_v44 = vmax.f32 %v5943_v37, 0.0 }
 0x533   : > { %v3786_v29 = vmax.f32 %v5944_v55, 0.0  ;;  %4550 = vmatmul.mubr.bf16.gmra.mrb[148].mxu0 %v6654_v34  ;;  %v2286_v34 = vpop.permute.xlu0 %2285 }
 0x534   : > { %v3933_v32 = vpack.c.bf16 %v3785_v44, %v3783_v45  ;;  %4559 = vmatprep.mubr.bf16.mxu0 %v6655_v12  ;;  %v2291_v45 = vpop.permute.xlu1 %2290 }
 0x535   : > { %v3934_v4 = vpack.c.bf16 %v3786_v29, %v3784_v2  ;;  %v3600_v60 = vpop.f32.mrb[88].mxu1  ;;  %v6666_v29 = vld [vmem:[#allocation11 + $0x120] ss:$16 sps:$4 sm:$0xff]  }
 0x536   : > { %v5945_v23 = vadd.f32 %v3600_v60, %v2256_v42  ;;  %v3602_v11 = vpop.f32.mrb[89].mxu1 }
 0x537   : > { %v5946_v38 = vadd.f32 %v3602_v11, %v2256_v42  ;;  %v3604_v52 = vpop.f32.mrb[90].mxu1  ;;  %4670 = vmatprep.subr.bf16.mxu0 %v3934_v4  ;;  %v6667_v4 = vld [vmem:[#allocation11 + $0x144] ss:$16 sps:$4 sm:$0xff]  }
 0x538   : > { %v5947_v0 = vadd.f32 %v3604_v52, %v2261_v17  ;;  %v3606_v56 = vpop.f32.mrb[91].mxu1  ;;  %4671 = vmatpush1.bf16.msra.mxu0 %v3933_v32  ;;  %v3787_v26 = vmax.f32 %v5945_v23, 0.0 }
 0x539   : > { %v5948_v59 = vadd.f32 %v3606_v56, %v2261_v17  ;;  %v3788_v20 = vmax.f32 %v5946_v38, 0.0 }
 0x53a   : > { %v3789_v61 = vmax.f32 %v5947_v0, 0.0 }
 0x53b   : > { %v3790_v48 = vmax.f32 %v5948_v59, 0.0  ;;  %4560 = vmatmul.mubr.bf16.gmra.mrb[152].mxu0 %v6657_v7  ;;  %v2296_v7 = vpop.permute.xlu0 %2295 }
 0x53c   : > { %v3935_v21 = vpack.c.bf16 %v3789_v61, %v3787_v26  ;;  %4569 = vmatprep.mubr.bf16.mxu0 %v6658_v8  ;;  %v2301_v26 = vpop.permute.xlu1 %2300 }
 0x53d   : > { %v3936_v22 = vpack.c.bf16 %v3790_v48, %v3788_v20  ;;  %v3610_v6 = vpop.f32.mrb[92].mxu1  ;;  %v6669_v48 = vld [vmem:[#allocation11 + $0x140] ss:$16 sps:$4 sm:$0xff]  }
 0x53e   : > { %v5949_v40 = vadd.f32 %v3610_v6, %v2266_v36  ;;  %v3612_v35 = vpop.f32.mrb[93].mxu1 }
 0x53f   : > { %v5950_v13 = vadd.f32 %v3612_v35, %v2266_v36  ;;  %v3614_v5 = vpop.f32.mrb[94].mxu1  ;;  %4672 = vmatprep.subr.bf16.mxu0 %v3936_v22  ;;  %v6670_v22 = vld [vmem:[#allocation11 + $0x164] ss:$16 sps:$4 sm:$0xff]  }
 0x540   : > { %v5951_v46 = vadd.f32 %v3614_v5, %v2271_v24  ;;  %v3616_v39 = vpop.f32.mrb[95].mxu1  ;;  %4673 = vmatpush1.bf16.msra.mxu0 %v3935_v21  ;;  %v3791_v28 = vmax.f32 %v5949_v40, 0.0 }
 0x541   : > { %v5952_v62 = vadd.f32 %v3616_v39, %v2271_v24  ;;  %v3792_v51 = vmax.f32 %v5950_v13, 0.0 }
 0x542   : > { %v3793_v50 = vmax.f32 %v5951_v46, 0.0 }
 0x543   : > { %v3794_v57 = vmax.f32 %v5952_v62, 0.0  ;;  %4570 = vmatmul.mubr.bf16.gmra.mrb[156].mxu0 %v6660_v54  ;;  %v2306_v54 = vpop.permute.xlu0 %2305 }
 0x544   : > { %v3937_v58 = vpack.c.bf16 %v3793_v50, %v3791_v28  ;;  %4579 = vmatprep.mubr.bf16.mxu0 %v6661_v3  ;;  %v2311_v28 = vpop.permute.xlu1 %2310 }
 0x545   : > { %v3938_v49 = vpack.c.bf16 %v3794_v57, %v3792_v51  ;;  %v3620_v33 = vpop.f32.mrb[96].mxu1  ;;  %v6672_v57 = vld [vmem:[#allocation11 + $0x160] ss:$16 sps:$4 sm:$0xff]  }
 0x546   : > { %v5953_v53 = vadd.f32 %v3620_v33, %v2276_v1  ;;  %v3622_v18 = vpop.f32.mrb[97].mxu1 }
 0x547   : > { %v5954_v31 = vadd.f32 %v3622_v18, %v2276_v1  ;;  %v3624_v14 = vpop.f32.mrb[98].mxu1  ;;  %4674 = vmatprep.subr.bf16.mxu0 %v3938_v49  ;;  %v6673_v49 = vld [vmem:[#allocation11 + $0x184] ss:$16 sps:$4 sm:$0xff]  }
 0x548   : > { %v5955_v63 = vadd.f32 %v3624_v14, %v2281_v27  ;;  %v3626_v30 = vpop.f32.mrb[99].mxu1  ;;  %4675 = vmatpush1.bf16.msra.mxu0 %v3937_v58  ;;  %v3795_v16 = vmax.f32 %v5953_v53, 0.0 }
 0x549   : > { %v5956_v10 = vadd.f32 %v3626_v30, %v2281_v27  ;;  %v3796_v41 = vmax.f32 %v5954_v31, 0.0 }
 0x54a   : > { %v3797_v19 = vmax.f32 %v5955_v63, 0.0 }
 0x54b   : > { %v3798_v25 = vmax.f32 %v5956_v10, 0.0  ;;  %4580 = vmatmul.mubr.bf16.gmra.mrb[160].mxu0 %v6663_v15  ;;  %v2316_v15 = vpop.permute.xlu0 %2315 }
 0x54c   : > { %v3939_v47 = vpack.c.bf16 %v3797_v19, %v3795_v16  ;;  %4589 = vmatprep.mubr.bf16.mxu0 %v6664_v43  ;;  %v2321_v16 = vpop.permute.xlu1 %2320 }
 0x54d   : > { %v3940_v37 = vpack.c.bf16 %v3798_v25, %v3796_v41  ;;  %v3630_v9 = vpop.f32.mrb[100].mxu1  ;;  %v6675_v25 = vld [vmem:[#allocation11 + $0x180] ss:$16 sps:$4 sm:$0xff]  }
 0x54e   : > { %v5957_v12 = vadd.f32 %v3630_v9, %v2286_v34  ;;  %v3632_v55 = vpop.f32.mrb[101].mxu1 }
 0x54f   : > { %v5958_v44 = vadd.f32 %v3632_v55, %v2286_v34  ;;  %v3634_v2 = vpop.f32.mrb[102].mxu1  ;;  %4676 = vmatprep.subr.bf16.mxu0 %v3940_v37  ;;  %v6676_v37 = vld [vmem:[#allocation11 + $0x1a4] ss:$16 sps:$4 sm:$0xff]  }
 0x550   : > { %v5959_v32 = vadd.f32 %v3634_v2, %v2291_v45  ;;  %v3636_v42 = vpop.f32.mrb[103].mxu1  ;;  %4677 = vmatpush1.bf16.msra.mxu0 %v3939_v47  ;;  %v3799_v23 = vmax.f32 %v5957_v12, 0.0 }
 0x551   : > { %v5960_v60 = vadd.f32 %v3636_v42, %v2291_v45  ;;  %v3800_v17 = vmax.f32 %v5958_v44, 0.0 }
 0x552   : > { %v3801_v11 = vmax.f32 %v5959_v32, 0.0 }
 0x553   : > { %v3802_v38 = vmax.f32 %v5960_v60, 0.0  ;;  %4590 = vmatmul.mubr.bf16.gmra.mrb[164].mxu0 %v6666_v29  ;;  %v2326_v29 = vpop.permute.xlu0 %2325 }
 0x554   : > { %v3941_v52 = vpack.c.bf16 %v3801_v11, %v3799_v23  ;;  %4599 = vmatprep.mubr.bf16.mxu0 %v6667_v4  ;;  %v2331_v23 = vpop.permute.xlu1 %2330 }
 0x555   : > { %v3942_v0 = vpack.c.bf16 %v3802_v38, %v3800_v17  ;;  %v3640_v56 = vpop.f32.mrb[104].mxu1  ;;  %v6678_v38 = vld [vmem:[#allocation11 + $0x1a0] ss:$16 sps:$4 sm:$0xff]  }
 0x556   : > { %v5961_v8 = vadd.f32 %v3640_v56, %v2296_v7  ;;  %v3642_v59 = vpop.f32.mrb[105].mxu1 }
 0x557   : > { %v5962_v61 = vadd.f32 %v3642_v59, %v2296_v7  ;;  %v3644_v20 = vpop.f32.mrb[106].mxu1  ;;  %4678 = vmatprep.subr.bf16.mxu0 %v3942_v0  ;;  %v6679_v0 = vld [vmem:[#allocation11 + $0x1c4] ss:$16 sps:$4 sm:$0xff]  }
 0x558   : > { %v5963_v21 = vadd.f32 %v3644_v20, %v2301_v26  ;;  %v3646_v36 = vpop.f32.mrb[107].mxu1  ;;  %4679 = vmatpush1.bf16.msra.mxu0 %v3941_v52  ;;  %v3803_v40 = vmax.f32 %v5961_v8, 0.0 }
 0x559   : > { %v5964_v6 = vadd.f32 %v3646_v36, %v2301_v26  ;;  %v3804_v24 = vmax.f32 %v5962_v61, 0.0 }
 0x55a   : > { %v3805_v35 = vmax.f32 %v5963_v21, 0.0 }
 0x55b   : > { %v3806_v13 = vmax.f32 %v5964_v6, 0.0  ;;  %4600 = vmatmul.mubr.bf16.gmra.mrb[168].mxu0 %v6669_v48  ;;  %v2336_v48 = vpop.permute.xlu0 %2335 }
 0x55c   : > { %v3943_v5 = vpack.c.bf16 %v3805_v35, %v3803_v40  ;;  %4609 = vmatprep.mubr.bf16.mxu0 %v6670_v22  ;;  %v2341_v40 = vpop.permute.xlu1 %2340 }
 0x55d   : > { %v3944_v46 = vpack.c.bf16 %v3806_v13, %v3804_v24  ;;  %v3650_v39 = vpop.f32.mrb[108].mxu1  ;;  %v6681_v13 = vld [vmem:[#allocation11 + $0x1c0] ss:$16 sps:$4 sm:$0xff]  }
 0x55e   : > { %v5965_v3 = vadd.f32 %v3650_v39, %v2306_v54  ;;  %v3652_v62 = vpop.f32.mrb[109].mxu1 }
 0x55f   : > { %v5966_v50 = vadd.f32 %v3652_v62, %v2306_v54  ;;  %v3654_v51 = vpop.f32.mrb[110].mxu1  ;;  %4680 = vmatprep.subr.bf16.mxu0 %v3944_v46  ;;  %v6682_v46 = vld [vmem:[#allocation11 + $0x1e4] ss:$16 sps:$4 sm:$0xff]  }
 0x560   : > { %v5967_v58 = vadd.f32 %v3654_v51, %v2311_v28  ;;  %v3656_v1 = vpop.f32.mrb[111].mxu1  ;;  %4681 = vmatpush1.bf16.msra.mxu0 %v3943_v5  ;;  %v3807_v53 = vmax.f32 %v5965_v3, 0.0 }
 0x561   : > { %v5968_v33 = vadd.f32 %v3656_v1, %v2311_v28  ;;  %v3808_v27 = vmax.f32 %v5966_v50, 0.0 }
 0x562   : > { %v3809_v18 = vmax.f32 %v5967_v58, 0.0 }
 0x563   : > { %v3810_v31 = vmax.f32 %v5968_v33, 0.0  ;;  %4610 = vmatmul.mubr.bf16.gmra.mrb[172].mxu0 %v6672_v57  ;;  %v2346_v57 = vpop.permute.xlu0 %2345 }
 0x564   : > { %v3945_v14 = vpack.c.bf16 %v3809_v18, %v3807_v53  ;;  %4619 = vmatprep.mubr.bf16.mxu0 %v6673_v49  ;;  %v2351_v53 = vpop.permute.xlu1 %2350 }
 0x565   : > { %v3946_v63 = vpack.c.bf16 %v3810_v31, %v3808_v27  ;;  %v3660_v30 = vpop.f32.mrb[112].mxu1  ;;  %v6684_v31 = vld [vmem:[#allocation11 + $0x1e0] ss:$16 sps:$4 sm:$0xff]  }
 0x566   : > { %v5969_v43 = vadd.f32 %v3660_v30, %v2316_v15  ;;  %v3662_v10 = vpop.f32.mrb[113].mxu1 }
 0x567   : > { %v5970_v19 = vadd.f32 %v3662_v10, %v2316_v15  ;;  %v3664_v41 = vpop.f32.mrb[114].mxu1  ;;  %4682 = vmatprep.subr.bf16.mxu0 %v3946_v63  ;;  %v6687_v63 = vld [vmem:[#allocation11 + $0xc] ss:$16 sps:$4 sm:$0xff]  }
 0x568   : > { %v5971_v47 = vadd.f32 %v3664_v41, %v2321_v16  ;;  %v3666_v34 = vpop.f32.mrb[115].mxu1  ;;  %4683 = vmatpush1.bf16.msra.mxu0 %v3945_v14  ;;  %v3811_v12 = vmax.f32 %v5969_v43, 0.0 }
 0x569   : > { %v5972_v9 = vadd.f32 %v3666_v34, %v2321_v16  ;;  %v3812_v45 = vmax.f32 %v5970_v19, 0.0  ;;  %v6688_v34 = vld [vmem:[#allocation11 + $0x2c] ss:$16 sps:$4 sm:$0xff]  }
 0x56a   : > { %v3813_v55 = vmax.f32 %v5971_v47, 0.0  ;;  %v6685_v47 = vld [vmem:[#allocation11 + $0x8] ss:$16 sps:$4 sm:$0xff]  }
 0x56b   : > { %v3814_v44 = vmax.f32 %v5972_v9, 0.0  ;;  %4620 = vmatmul.mubr.bf16.gmra.mrb[176].mxu0 %v6675_v25  ;;  %v6691_v9 = vld [vmem:[#allocation11 + $0x4c] ss:$16 sps:$4 sm:$0xff]  }
 0x56c   : > { %v3947_v2 = vpack.c.bf16 %v3813_v55, %v3811_v12  ;;  %4629 = vmatprep.mubr.bf16.mxu0 %v6676_v37  ;;  %v6690_v37 = vld [vmem:[#allocation11 + $0x28] ss:$16 sps:$4 sm:$0xff]   ;;  %v6694_v55 = vld [vmem:[#allocation11 + $0x6c] ss:$16 sps:$4 sm:$0xff]  }
 0x56d   : > { %v3948_v32 = vpack.c.bf16 %v3814_v44, %v3812_v45  ;;  %v3670_v42 = vpop.f32.mrb[116].mxu1  ;;  %v6693_v12 = vld [vmem:[#allocation11 + $0x48] ss:$16 sps:$4 sm:$0xff]   ;;  %v6697_v44 = vld [vmem:[#allocation11 + $0x8c] ss:$16 sps:$4 sm:$0xff]  }
 0x56e   : > { %v5973_v4 = vadd.f32 %v3670_v42, %v2326_v29  ;;  %v3672_v60 = vpop.f32.mrb[117].mxu1  ;;  %v6696_v45 = vld [vmem:[#allocation11 + $0x68] ss:$16 sps:$4 sm:$0xff]   ;;  %v6703_v42 = vld [vmem:[#allocation11 + $0xcc] ss:$16 sps:$4 sm:$0xff]  }
 0x56f   : > { %v5974_v11 = vadd.f32 %v3672_v60, %v2326_v29  ;;  %v3674_v17 = vpop.f32.mrb[118].mxu1  ;;  %4684 = vmatprep.subr.bf16.mxu0 %v3948_v32  ;;  %v6700_v29 = vld [vmem:[#allocation11 + $0xac] ss:$16 sps:$4 sm:$0xff]   ;;  %v6702_v32 = vld [vmem:[#allocation11 + $0xa8] ss:$16 sps:$4 sm:$0xff]  }
 0x570   : > { %v5975_v52 = vadd.f32 %v3674_v17, %v2331_v23  ;;  %v3676_v7 = vpop.f32.mrb[119].mxu1  ;;  %4685 = vmatpush1.bf16.msra.mxu0 %v3947_v2  ;;  %v3815_v8 = vmax.f32 %v5973_v4, 0.0  ;;  %v6699_v2 = vld [vmem:[#allocation11 + $0x88] ss:$16 sps:$4 sm:$0xff]   ;;  %v6706_v60 = vld [vmem:[#allocation11 + $0xec] ss:$16 sps:$4 sm:$0xff]  }
 0x571   : > { %v5976_v56 = vadd.f32 %v3676_v7, %v2331_v23  ;;  %v3816_v26 = vmax.f32 %v5974_v11, 0.0  ;;  %v6705_v4 = vld [vmem:[#allocation11 + $0xc8] ss:$16 sps:$4 sm:$0xff]   ;;  %v6709_v11 = vld [vmem:[#allocation11 + $0x10c] ss:$16 sps:$4 sm:$0xff]  }
 0x572   : > { %v3817_v59 = vmax.f32 %v5975_v52, 0.0  ;;  %v6708_v23 = vld [vmem:[#allocation11 + $0xe8] ss:$16 sps:$4 sm:$0xff]   ;;  %v6715_v7 = vld [vmem:[#allocation11 + $0x14c] ss:$16 sps:$4 sm:$0xff]  }
 0x573   : > { %v3818_v61 = vmax.f32 %v5976_v56, 0.0  ;;  %4630 = vmatmul.mubr.bf16.gmra.mrb[180].mxu0 %v6678_v38  ;;  %v6711_v17 = vld [vmem:[#allocation11 + $0x108] ss:$16 sps:$4 sm:$0xff]   ;;  %v6712_v38 = vld [vmem:[#allocation11 + $0x12c] ss:$16 sps:$4 sm:$0xff]  }
 0x574   : > { %v3949_v20 = vpack.c.bf16 %v3817_v59, %v3815_v8  ;;  %4639 = vmatprep.mubr.bf16.mxu0 %v6679_v0  ;;  %v6714_v52 = vld [vmem:[#allocation11 + $0x128] ss:$16 sps:$4 sm:$0xff]   ;;  %v6718_v56 = vld [vmem:[#allocation11 + $0x16c] ss:$16 sps:$4 sm:$0xff]  }
 0x575   : > { %v3950_v21 = vpack.c.bf16 %v3818_v61, %v3816_v26  ;;  %v3680_v36 = vpop.f32.mrb[120].mxu1  ;;  %v6717_v0 = vld [vmem:[#allocation11 + $0x148] ss:$16 sps:$4 sm:$0xff]   ;;  %v6721_v59 = vld [vmem:[#allocation11 + $0x18c] ss:$16 sps:$4 sm:$0xff]  }
 0x576   : > { %v5977_v22 = vadd.f32 %v3680_v36, %v2336_v48  ;;  %v3682_v6 = vpop.f32.mrb[121].mxu1  ;;  %v6720_v8 = vld [vmem:[#allocation11 + $0x168] ss:$16 sps:$4 sm:$0xff]   ;;  %v6724_v61 = vld [vmem:[#allocation11 + $0x1ac] ss:$16 sps:$4 sm:$0xff]  }
 0x577   : > { %v5978_v35 = vadd.f32 %v3682_v6, %v2336_v48  ;;  %v3684_v24 = vpop.f32.mrb[122].mxu1  ;;  %4686 = vmatprep.subr.bf16.mxu0 %v3950_v21  ;;  %v6723_v26 = vld [vmem:[#allocation11 + $0x188] ss:$16 sps:$4 sm:$0xff]   ;;  %v6727_v48 = vld [vmem:[#allocation11 + $0x1cc] ss:$16 sps:$4 sm:$0xff]   ;;  %v3990_v6 = vpop.permute.xlu0 %3989 }
 0x578   : > { %v5979_v5 = vadd.f32 %v3684_v24, %v2341_v40  ;;  %v3686_v54 = vpop.f32.mrb[123].mxu1  ;;  %4687 = vmatpush1.bf16.msra.mxu0 %v3949_v20  ;;  %v3819_v3 = vmax.f32 %v5977_v22, 0.0  ;;  %v6726_v20 = vld [vmem:[#allocation11 + $0x1a8] ss:$16 sps:$4 sm:$0xff]   ;;  %v6730_v36 = vld [vmem:[#allocation11 + $0x1ec] ss:$16 sps:$4 sm:$0xff]  }
 0x579   : > { %v5980_v39 = vadd.f32 %v3686_v54, %v2341_v40  ;;  %v3820_v28 = vmax.f32 %v5978_v35, 0.0  ;;  %v6729_v21 = vld [vmem:[#allocation11 + $0x1c8] ss:$16 sps:$4 sm:$0xff]  }
 0x57a   : > { %v3821_v62 = vmax.f32 %v5979_v5, 0.0  ;;  %v6732_v22 = vld [vmem:[#allocation11 + $0x1e8] ss:$16 sps:$4 sm:$0xff]  }
 0x57b   : > { %v3822_v50 = vmax.f32 %v5980_v39, 0.0  ;;  %4640 = vmatmul.mubr.bf16.gmra.mrb[184].mxu0 %v6681_v13  ;;  %v3995_v13 = vpop.permute.xlu1 %3994 }
 0x57c   : > { %v3951_v51 = vpack.c.bf16 %v3821_v62, %v3819_v3  ;;  %4649 = vmatprep.mubr.bf16.mxu0 %v6682_v46  ;;  %v6735_v3 = vld [vmem:[#allocation14 + $0x4] ss:$8 sps:$4 sm:$0xff]  }
 0x57d   : > { %v3952_v58 = vpack.c.bf16 %v3822_v50, %v3820_v28  ;;  %v3690_v1 = vpop.f32.mrb[124].mxu1 }
 0x57e   : > { %v5981_v49 = vadd.f32 %v3690_v1, %v2346_v57  ;;  %v3692_v33 = vpop.f32.mrb[125].mxu1  ;;  %v4000_v1 = vpop.permute.xlu0 %3999 }
 0x57f   : > { %v5982_v18 = vadd.f32 %v3692_v33, %v2346_v57  ;;  %v3694_v27 = vpop.f32.mrb[126].mxu1  ;;  %4688 = vmatprep.subr.bf16.mxu0 %v3952_v58 }
 0x580   : > { %v5983_v14 = vadd.f32 %v3694_v27, %v2351_v53  ;;  %v3696_v15 = vpop.f32.mrb[127].mxu1  ;;  %4689 = vmatpush1.bf16.msra.mxu0 %v3951_v51  ;;  %v3823_v43 = vmax.f32 %v5981_v49, 0.0  ;;  %v4005_v27 = vpop.permute.xlu1 %4004 }
 0x581   : > { %v5984_v30 = vadd.f32 %v3696_v15, %v2351_v53  ;;  %v3824_v16 = vmax.f32 %v5982_v18, 0.0 }
 0x582   : > { %v3825_v10 = vmax.f32 %v5983_v14, 0.0 }
 0x583   : > { %v3826_v19 = vmax.f32 %v5984_v30, 0.0  ;;  %4650 = vmatmul.mubr.bf16.gmra.mrb[188].mxu0 %v6684_v31 }
 0x584   : > { %v3953_v41 = vpack.c.bf16 %v3825_v10, %v3823_v43  ;;  %4692 = vmatprep.mubr.bf16.mxu0 %v6687_v63 }
 0x585   : > { %v3954_v25 = vpack.c.bf16 %v3826_v19, %v3824_v16 }
 0x587   : > { %4690 = vmatprep.subr.bf16.mxu0 %v3954_v25  ;;  %v4010_v25 = vpop.permute.xlu0 %4009 }
 0x588   : > { %4691 = vmatpush1.bf16.msra.mxu0 %v3953_v41 }
 0x58b   : > { %4693 = vmatmul.mubr.bf16.vlgmr.msra.gmra.mrb[128].mxu0 %v6685_v47 }
 0x58c   : > { %4702 = vmatprep.mubr.bf16.mxu0 %v6688_v34 }
 0x593   : > { %4703 = vmatmul.mubr.bf16.gmra.mrb[132].mxu0 %v6690_v37 }
 0x594   : > { %4712 = vmatprep.mubr.bf16.mxu0 %v6691_v9 }
 0x59b   : > { %4713 = vmatmul.mubr.bf16.gmra.mrb[136].mxu0 %v6693_v12  ;;  %v4015_v12 = vpop.permute.xlu1 %4014 }
 0x59c   : > { %4722 = vmatprep.mubr.bf16.mxu0 %v6694_v55 }
 0x5a3   : > { %4723 = vmatmul.mubr.bf16.gmra.mrb[140].mxu0 %v6696_v45 }
 0x5a4   : > { %4732 = vmatprep.mubr.bf16.mxu0 %v6697_v44 }
 0x5ab   : > { %4733 = vmatmul.mubr.bf16.gmra.mrb[144].mxu0 %v6699_v2 }
 0x5ac   : > { %4742 = vmatprep.mubr.bf16.mxu0 %v6700_v29 }
 0x5b3   : > { %4743 = vmatmul.mubr.bf16.gmra.mrb[148].mxu0 %v6702_v32 }
 0x5b4   : > { %4752 = vmatprep.mubr.bf16.mxu0 %v6703_v42 }
 0x5bb   : > { %4753 = vmatmul.mubr.bf16.gmra.mrb[152].mxu0 %v6705_v4 }
 0x5bc   : > { %4762 = vmatprep.mubr.bf16.mxu0 %v6706_v60 }
 0x5c3   : > { %4763 = vmatmul.mubr.bf16.gmra.mrb[156].mxu0 %v6708_v23 }
 0x5c4   : > { %4772 = vmatprep.mubr.bf16.mxu0 %v6709_v11  ;;  %v4020_v11 = vpop.permute.xlu0 %4019 }
 0x5cb   : > { %4773 = vmatmul.mubr.bf16.gmra.mrb[160].mxu0 %v6711_v17 }
 0x5cc   : > { %4782 = vmatprep.mubr.bf16.mxu0 %v6712_v38 }
 0x5d3   : > { %4783 = vmatmul.mubr.bf16.gmra.mrb[164].mxu0 %v6714_v52 }
 0x5d4   : > { %4792 = vmatprep.mubr.bf16.mxu0 %v6715_v7 }
 0x5db   : > { %4793 = vmatmul.mubr.bf16.gmra.mrb[168].mxu0 %v6717_v0  ;;  %v4025_v0 = vpop.permute.xlu1 %4024 }
 0x5dc   : > { %4802 = vmatprep.mubr.bf16.mxu0 %v6718_v56 }
 0x5e3   : > { %4803 = vmatmul.mubr.bf16.gmra.mrb[172].mxu0 %v6720_v8 }
 0x5e4   : > { %4812 = vmatprep.mubr.bf16.mxu0 %v6721_v59 }
 0x5eb   : > { %4813 = vmatmul.mubr.bf16.gmra.mrb[176].mxu0 %v6723_v26 }
 0x5ec   : > { %4822 = vmatprep.mubr.bf16.mxu0 %v6724_v61 }
 0x5f3   : > { %4823 = vmatmul.mubr.bf16.gmra.mrb[180].mxu0 %v6726_v20 }
 0x5f4   : > { %4832 = vmatprep.mubr.bf16.mxu0 %v6727_v48 }
 0x5fb   : > { %4833 = vmatmul.mubr.bf16.gmra.mrb[184].mxu0 %v6729_v21 }
 0x5fc   : > { %4842 = vmatprep.mubr.bf16.mxu0 %v6730_v36 }
 0x603   : > { %4843 = vmatmul.mubr.bf16.gmra.mrb[188].mxu0 %v6732_v22 }
 0x604   : > { %5173 = vmatprep.mubr.bf16.mxu0 %v6735_v3 }
 0x65e   : > { %v4694_v40 = vpop.f32.mrb[128].mxu0 }
 0x65f   : > { %v5985_v35 = vadd.f32 %v4694_v40, %v3990_v6  ;;  %v4696_v24 = vpop.f32.mrb[129].mxu0 }
 0x660   : > { %v5986_v5 = vadd.f32 %v4696_v24, %v3990_v6  ;;  %v4698_v54 = vpop.f32.mrb[130].mxu0  ;;  %v4030_v6 = vpop.permute.xlu0 %4029 }
 0x661   : > { %v5987_v46 = vadd.f32 %v4698_v54, %v3995_v13  ;;  %v4700_v39 = vpop.f32.mrb[131].mxu0  ;;  %v4853_v28 = vmax.f32 %v5985_v35, 0.0 }
 0x662   : > { %v5988_v62 = vadd.f32 %v4700_v39, %v3995_v13  ;;  %v4854_v51 = vmax.f32 %v5986_v5, 0.0  ;;  %v4035_v5 = vpop.permute.xlu1 %4034 }
 0x663   : > { %v4855_v50 = vmax.f32 %v5987_v46, 0.0 }
 0x664   : > { %v4856_v57 = vmax.f32 %v5988_v62, 0.0 }
 0x665   : > { %v4933_v58 = vpack.c.bf16 %v4855_v50, %v4853_v28 }
 0x666   : > { %v4934_v49 = vpack.c.bf16 %v4856_v57, %v4854_v51  ;;  %v4704_v33 = vpop.f32.mrb[132].mxu0 }
 0x667   : > { %v5989_v53 = vadd.f32 %v4704_v33, %v4000_v1  ;;  %v4706_v18 = vpop.f32.mrb[133].mxu0 }
 0x668   : > { %v5990_v31 = vadd.f32 %v4706_v18, %v4000_v1  ;;  %v4708_v14 = vpop.f32.mrb[134].mxu0  ;;  %5141 = vmatprep.subr.bf16.mxu0 %v4934_v49  ;;  %v4040_v1 = vpop.permute.xlu0 %4039 }
 0x669   : > { %v5991_v15 = vadd.f32 %v4708_v14, %v4005_v27  ;;  %v4710_v63 = vpop.f32.mrb[135].mxu0  ;;  %5142 = vmatpush1.bf16.msra.mxu0 %v4933_v58  ;;  %v4857_v43 = vmax.f32 %v5989_v53, 0.0 }
 0x66a   : > { %v5992_v30 = vadd.f32 %v4710_v63, %v4005_v27  ;;  %v4858_v16 = vmax.f32 %v5990_v31, 0.0  ;;  %v4045_v27 = vpop.permute.xlu1 %4044 }
 0x66b   : > { %v4859_v10 = vmax.f32 %v5991_v15, 0.0 }
 0x66c   : > { %v4860_v19 = vmax.f32 %v5992_v30, 0.0 }
 0x66d   : > { %v4935_v41 = vpack.c.bf16 %v4859_v10, %v4857_v43 }
 0x66e   : > { %v4936_v47 = vpack.c.bf16 %v4860_v19, %v4858_v16  ;;  %v4714_v34 = vpop.f32.mrb[136].mxu0 }
 0x66f   : > { %v5993_v37 = vadd.f32 %v4714_v34, %v4010_v25  ;;  %v4716_v9 = vpop.f32.mrb[137].mxu0 }
 0x670   : > { %v5994_v55 = vadd.f32 %v4716_v9, %v4010_v25  ;;  %v4718_v45 = vpop.f32.mrb[138].mxu0  ;;  %5143 = vmatprep.subr.bf16.mxu0 %v4936_v47  ;;  %v4050_v25 = vpop.permute.xlu0 %4049 }
 0x671   : > { %v5995_v44 = vadd.f32 %v4718_v45, %v4015_v12  ;;  %v4720_v2 = vpop.f32.mrb[139].mxu0  ;;  %5144 = vmatpush1.bf16.msra.mxu0 %v4935_v41  ;;  %v4861_v32 = vmax.f32 %v5993_v37, 0.0 }
 0x672   : > { %v5996_v29 = vadd.f32 %v4720_v2, %v4015_v12  ;;  %v4862_v4 = vmax.f32 %v5994_v55, 0.0  ;;  %v4055_v12 = vpop.permute.xlu1 %4054 }
 0x673   : > { %v4863_v42 = vmax.f32 %v5995_v44, 0.0 }
 0x674   : > { %v4864_v60 = vmax.f32 %v5996_v29, 0.0 }
 0x675   : > { %v4937_v23 = vpack.c.bf16 %v4863_v42, %v4861_v32 }
 0x676   : > { %v4938_v17 = vpack.c.bf16 %v4864_v60, %v4862_v4  ;;  %v4724_v38 = vpop.f32.mrb[140].mxu0 }
 0x677   : > { %v5997_v52 = vadd.f32 %v4724_v38, %v4020_v11  ;;  %v4726_v7 = vpop.f32.mrb[141].mxu0 }
 0x678   : > { %v5998_v56 = vadd.f32 %v4726_v7, %v4020_v11  ;;  %v4728_v8 = vpop.f32.mrb[142].mxu0  ;;  %5145 = vmatprep.subr.bf16.mxu0 %v4938_v17  ;;  %v4060_v11 = vpop.permute.xlu0 %4059 }
 0x679   : > { %v5999_v59 = vadd.f32 %v4728_v8, %v4025_v0  ;;  %v4730_v26 = vpop.f32.mrb[143].mxu0  ;;  %5146 = vmatpush1.bf16.msra.mxu0 %v4937_v23  ;;  %v4865_v20 = vmax.f32 %v5997_v52, 0.0 }
 0x67a   : > { %v6000_v61 = vadd.f32 %v4730_v26, %v4025_v0  ;;  %v4866_v21 = vmax.f32 %v5998_v56, 0.0  ;;  %v4065_v0 = vpop.permute.xlu1 %4064 }
 0x67b   : > { %v4867_v48 = vmax.f32 %v5999_v59, 0.0 }
 0x67c   : > { %v4868_v36 = vmax.f32 %v6000_v61, 0.0 }
 0x67d   : > { %v4939_v22 = vpack.c.bf16 %v4867_v48, %v4865_v20 }
 0x67e   : > { %v4940_v40 = vpack.c.bf16 %v4868_v36, %v4866_v21  ;;  %v4734_v35 = vpop.f32.mrb[144].mxu0 }
 0x67f   : > { %v6001_v24 = vadd.f32 %v4734_v35, %v4030_v6  ;;  %v4736_v13 = vpop.f32.mrb[145].mxu0 }
 0x680   : > { %v6002_v54 = vadd.f32 %v4736_v13, %v4030_v6  ;;  %v4738_v46 = vpop.f32.mrb[146].mxu0  ;;  %5147 = vmatprep.subr.bf16.mxu0 %v4940_v40  ;;  %v4070_v6 = vpop.permute.xlu0 %4069 }
 0x681   : > { %v6003_v39 = vadd.f32 %v4738_v46, %v4035_v5  ;;  %v4740_v3 = vpop.f32.mrb[147].mxu0  ;;  %5148 = vmatpush1.bf16.msra.mxu0 %v4939_v22  ;;  %v4869_v28 = vmax.f32 %v6001_v24, 0.0 }
 0x682   : > { %v6004_v62 = vadd.f32 %v4740_v3, %v4035_v5  ;;  %v4870_v51 = vmax.f32 %v6002_v54, 0.0  ;;  %v4075_v5 = vpop.permute.xlu1 %4074 }
 0x683   : > { %v4871_v50 = vmax.f32 %v6003_v39, 0.0 }
 0x684   : > { %v4872_v57 = vmax.f32 %v6004_v62, 0.0 }
 0x685   : > { %v4941_v58 = vpack.c.bf16 %v4871_v50, %v4869_v28 }
 0x686   : > { %v4942_v49 = vpack.c.bf16 %v4872_v57, %v4870_v51  ;;  %v4744_v33 = vpop.f32.mrb[148].mxu0 }
 0x687   : > { %v6005_v53 = vadd.f32 %v4744_v33, %v4040_v1  ;;  %v4746_v18 = vpop.f32.mrb[149].mxu0 }
 0x688   : > { %v6006_v31 = vadd.f32 %v4746_v18, %v4040_v1  ;;  %v4748_v14 = vpop.f32.mrb[150].mxu0  ;;  %5149 = vmatprep.subr.bf16.mxu0 %v4942_v49  ;;  %v4080_v1 = vpop.permute.xlu0 %4079 }
 0x689   : > { %v6007_v15 = vadd.f32 %v4748_v14, %v4045_v27  ;;  %v4750_v63 = vpop.f32.mrb[151].mxu0  ;;  %5150 = vmatpush1.bf16.msra.mxu0 %v4941_v58  ;;  %v4873_v43 = vmax.f32 %v6005_v53, 0.0 }
 0x68a   : > { %v6008_v30 = vadd.f32 %v4750_v63, %v4045_v27  ;;  %v4874_v16 = vmax.f32 %v6006_v31, 0.0  ;;  %v4085_v27 = vpop.permute.xlu1 %4084 }
 0x68b   : > { %v4875_v10 = vmax.f32 %v6007_v15, 0.0 }
 0x68c   : > { %v4876_v19 = vmax.f32 %v6008_v30, 0.0 }
 0x68d   : > { %v4943_v41 = vpack.c.bf16 %v4875_v10, %v4873_v43 }
 0x68e   : > { %v4944_v47 = vpack.c.bf16 %v4876_v19, %v4874_v16  ;;  %v4754_v34 = vpop.f32.mrb[152].mxu0 }
 0x68f   : > { %v6009_v37 = vadd.f32 %v4754_v34, %v4050_v25  ;;  %v4756_v9 = vpop.f32.mrb[153].mxu0 }
 0x690   : > { %v6010_v55 = vadd.f32 %v4756_v9, %v4050_v25  ;;  %v4758_v45 = vpop.f32.mrb[154].mxu0  ;;  %5151 = vmatprep.subr.bf16.mxu0 %v4944_v47  ;;  %v4090_v25 = vpop.permute.xlu0 %4089 }
 0x691   : > { %v6011_v44 = vadd.f32 %v4758_v45, %v4055_v12  ;;  %v4760_v2 = vpop.f32.mrb[155].mxu0  ;;  %5152 = vmatpush1.bf16.msra.mxu0 %v4943_v41  ;;  %v4877_v32 = vmax.f32 %v6009_v37, 0.0 }
 0x692   : > { %v6012_v29 = vadd.f32 %v4760_v2, %v4055_v12  ;;  %v4878_v4 = vmax.f32 %v6010_v55, 0.0  ;;  %v4095_v12 = vpop.permute.xlu1 %4094 }
 0x693   : > { %v4879_v42 = vmax.f32 %v6011_v44, 0.0 }
 0x694   : > { %v4880_v60 = vmax.f32 %v6012_v29, 0.0 }
 0x695   : > { %v4945_v23 = vpack.c.bf16 %v4879_v42, %v4877_v32 }
 0x696   : > { %v4946_v17 = vpack.c.bf16 %v4880_v60, %v4878_v4  ;;  %v4764_v38 = vpop.f32.mrb[156].mxu0 }
 0x697   : > { %v6013_v52 = vadd.f32 %v4764_v38, %v4060_v11  ;;  %v4766_v7 = vpop.f32.mrb[157].mxu0 }
 0x698   : > { %v6014_v56 = vadd.f32 %v4766_v7, %v4060_v11  ;;  %v4768_v8 = vpop.f32.mrb[158].mxu0  ;;  %5153 = vmatprep.subr.bf16.mxu0 %v4946_v17  ;;  %v4100_v11 = vpop.permute.xlu0 %4099 }
 0x699   : > { %v6015_v59 = vadd.f32 %v4768_v8, %v4065_v0  ;;  %v4770_v26 = vpop.f32.mrb[159].mxu0  ;;  %5154 = vmatpush1.bf16.msra.mxu0 %v4945_v23  ;;  %v4881_v20 = vmax.f32 %v6013_v52, 0.0 }
 0x69a   : > { %v6016_v61 = vadd.f32 %v4770_v26, %v4065_v0  ;;  %v4882_v21 = vmax.f32 %v6014_v56, 0.0  ;;  %v4105_v0 = vpop.permute.xlu1 %4104 }
 0x69b   : > { %v4883_v48 = vmax.f32 %v6015_v59, 0.0 }
 0x69c   : > { %v4884_v36 = vmax.f32 %v6016_v61, 0.0 }
 0x69d   : > { %v4947_v22 = vpack.c.bf16 %v4883_v48, %v4881_v20 }
 0x69e   : > { %v4948_v40 = vpack.c.bf16 %v4884_v36, %v4882_v21  ;;  %v4774_v35 = vpop.f32.mrb[160].mxu0 }
 0x69f   : > { %v6017_v24 = vadd.f32 %v4774_v35, %v4070_v6  ;;  %v4776_v13 = vpop.f32.mrb[161].mxu0 }
 0x6a0   : > { %v6018_v54 = vadd.f32 %v4776_v13, %v4070_v6  ;;  %v4778_v46 = vpop.f32.mrb[162].mxu0  ;;  %5155 = vmatprep.subr.bf16.mxu0 %v4948_v40  ;;  %v4110_v6 = vpop.permute.xlu0 %4109 }
 0x6a1   : > { %v6019_v39 = vadd.f32 %v4778_v46, %v4075_v5  ;;  %v4780_v3 = vpop.f32.mrb[163].mxu0  ;;  %5156 = vmatpush1.bf16.msra.mxu0 %v4947_v22  ;;  %v4885_v28 = vmax.f32 %v6017_v24, 0.0 }
 0x6a2   : > { %v6020_v62 = vadd.f32 %v4780_v3, %v4075_v5  ;;  %v4886_v51 = vmax.f32 %v6018_v54, 0.0  ;;  %v4115_v5 = vpop.permute.xlu1 %4114 }
 0x6a3   : > { %v4887_v50 = vmax.f32 %v6019_v39, 0.0 }
 0x6a4   : > { %v4888_v57 = vmax.f32 %v6020_v62, 0.0 }
 0x6a5   : > { %v4949_v58 = vpack.c.bf16 %v4887_v50, %v4885_v28 }
 0x6a6   : > { %v4950_v49 = vpack.c.bf16 %v4888_v57, %v4886_v51  ;;  %v4784_v33 = vpop.f32.mrb[164].mxu0 }
 0x6a7   : > { %v6021_v53 = vadd.f32 %v4784_v33, %v4080_v1  ;;  %v4786_v18 = vpop.f32.mrb[165].mxu0 }
 0x6a8   : > { %v6022_v31 = vadd.f32 %v4786_v18, %v4080_v1  ;;  %v4788_v14 = vpop.f32.mrb[166].mxu0  ;;  %5157 = vmatprep.subr.bf16.mxu0 %v4950_v49  ;;  %v4120_v1 = vpop.permute.xlu0 %4119 }
 0x6a9   : > { %v6023_v15 = vadd.f32 %v4788_v14, %v4085_v27  ;;  %v4790_v63 = vpop.f32.mrb[167].mxu0  ;;  %5158 = vmatpush1.bf16.msra.mxu0 %v4949_v58  ;;  %v4889_v43 = vmax.f32 %v6021_v53, 0.0 }
 0x6aa   : > { %v6024_v30 = vadd.f32 %v4790_v63, %v4085_v27  ;;  %v4890_v16 = vmax.f32 %v6022_v31, 0.0  ;;  %v4125_v27 = vpop.permute.xlu1 %4124 }
 0x6ab   : > { %v4891_v10 = vmax.f32 %v6023_v15, 0.0 }
 0x6ac   : > { %v4892_v19 = vmax.f32 %v6024_v30, 0.0 }
 0x6ad   : > { %v4951_v41 = vpack.c.bf16 %v4891_v10, %v4889_v43 }
 0x6ae   : > { %v4952_v47 = vpack.c.bf16 %v4892_v19, %v4890_v16  ;;  %v4794_v34 = vpop.f32.mrb[168].mxu0 }
 0x6af   : > { %v6025_v37 = vadd.f32 %v4794_v34, %v4090_v25  ;;  %v4796_v9 = vpop.f32.mrb[169].mxu0 }
 0x6b0   : > { %v6026_v55 = vadd.f32 %v4796_v9, %v4090_v25  ;;  %v4798_v45 = vpop.f32.mrb[170].mxu0  ;;  %5159 = vmatprep.subr.bf16.mxu0 %v4952_v47  ;;  %v4130_v25 = vpop.permute.xlu0 %4129 }
 0x6b1   : > { %v6027_v44 = vadd.f32 %v4798_v45, %v4095_v12  ;;  %v4800_v2 = vpop.f32.mrb[171].mxu0  ;;  %5160 = vmatpush1.bf16.msra.mxu0 %v4951_v41  ;;  %v4893_v32 = vmax.f32 %v6025_v37, 0.0 }
 0x6b2   : > { %v6028_v29 = vadd.f32 %v4800_v2, %v4095_v12  ;;  %v4894_v4 = vmax.f32 %v6026_v55, 0.0  ;;  %v4135_v12 = vpop.permute.xlu1 %4134 }
 0x6b3   : > { %v4895_v42 = vmax.f32 %v6027_v44, 0.0 }
 0x6b4   : > { %v4896_v60 = vmax.f32 %v6028_v29, 0.0 }
 0x6b5   : > { %v4953_v23 = vpack.c.bf16 %v4895_v42, %v4893_v32 }
 0x6b6   : > { %v4954_v17 = vpack.c.bf16 %v4896_v60, %v4894_v4  ;;  %v4804_v38 = vpop.f32.mrb[172].mxu0 }
 0x6b7   : > { %v6029_v52 = vadd.f32 %v4804_v38, %v4100_v11  ;;  %v4806_v7 = vpop.f32.mrb[173].mxu0 }
 0x6b8   : > { %v6030_v56 = vadd.f32 %v4806_v7, %v4100_v11  ;;  %v4808_v8 = vpop.f32.mrb[174].mxu0  ;;  %5161 = vmatprep.subr.bf16.mxu0 %v4954_v17  ;;  %v4140_v11 = vpop.permute.xlu0 %4139 }
 0x6b9   : > { %v6031_v59 = vadd.f32 %v4808_v8, %v4105_v0  ;;  %v4810_v26 = vpop.f32.mrb[175].mxu0  ;;  %5162 = vmatpush1.bf16.msra.mxu0 %v4953_v23  ;;  %v4897_v20 = vmax.f32 %v6029_v52, 0.0 }
 0x6ba   : > { %v6032_v61 = vadd.f32 %v4810_v26, %v4105_v0  ;;  %v4898_v21 = vmax.f32 %v6030_v56, 0.0  ;;  %v4145_v0 = vpop.permute.xlu1 %4144 }
 0x6bb   : > { %v4899_v48 = vmax.f32 %v6031_v59, 0.0 }
 0x6bc   : > { %v4900_v36 = vmax.f32 %v6032_v61, 0.0 }
 0x6bd   : > { %v4955_v22 = vpack.c.bf16 %v4899_v48, %v4897_v20 }
 0x6be   : > { %v4956_v40 = vpack.c.bf16 %v4900_v36, %v4898_v21  ;;  %v4814_v35 = vpop.f32.mrb[176].mxu0 }
 0x6bf   : > { %v6033_v24 = vadd.f32 %v4814_v35, %v4110_v6  ;;  %v4816_v13 = vpop.f32.mrb[177].mxu0  ;;  %v6736_v35 = vld [vmem:[#allocation14 + $0x14] ss:$8 sps:$4 sm:$0xff]  }
 0x6c0   : > { %v6034_v54 = vadd.f32 %v4816_v13, %v4110_v6  ;;  %v4818_v46 = vpop.f32.mrb[178].mxu0  ;;  %5163 = vmatprep.subr.bf16.mxu0 %v4956_v40  ;;  %v6733_v40 = vld [vmem:[#allocation14] ss:$8 sps:$4 sm:$0xff]   ;;  %v6739_v13 = vld [vmem:[#allocation14 + $0x24] ss:$8 sps:$4 sm:$0xff]  }
 0x6c1   : > { %v6035_v39 = vadd.f32 %v4818_v46, %v4115_v5  ;;  %v4820_v3 = vpop.f32.mrb[179].mxu0  ;;  %5164 = vmatpush1.bf16.msra.mxu0 %v4955_v22  ;;  %v4901_v28 = vmax.f32 %v6033_v24, 0.0  ;;  %v6738_v24 = vld [vmem:[#allocation14 + $0x10] ss:$8 sps:$4 sm:$0xff]  }
 0x6c2   : > { %v6036_v62 = vadd.f32 %v4820_v3, %v4115_v5  ;;  %v4902_v51 = vmax.f32 %v6034_v54, 0.0  ;;  %v6741_v5 = vld [vmem:[#allocation14 + $0x20] ss:$8 sps:$4 sm:$0xff]   ;;  %v6742_v54 = vld [vmem:[#allocation14 + $0x34] ss:$8 sps:$4 sm:$0xff]  }
 0x6c3   : > { %v4903_v50 = vmax.f32 %v6035_v39, 0.0  ;;  %v6744_v46 = vld [vmem:[#allocation14 + $0x30] ss:$8 sps:$4 sm:$0xff]   ;;  %v6745_v39 = vld [vmem:[#allocation14 + $0x44] ss:$8 sps:$4 sm:$0xff]  }
 0x6c4   : > { %v4904_v57 = vmax.f32 %v6036_v62, 0.0  ;;  %v6747_v3 = vld [vmem:[#allocation14 + $0x40] ss:$8 sps:$4 sm:$0xff]   ;;  %v6748_v62 = vld [vmem:[#allocation14 + $0x54] ss:$8 sps:$4 sm:$0xff]  }
 0x6c5   : > { %v4957_v58 = vpack.c.bf16 %v4903_v50, %v4901_v28  ;;  %v6750_v28 = vld [vmem:[#allocation14 + $0x50] ss:$8 sps:$4 sm:$0xff]   ;;  %v6751_v50 = vld [vmem:[#allocation14 + $0x64] ss:$8 sps:$4 sm:$0xff]  }
 0x6c6   : > { %v4958_v49 = vpack.c.bf16 %v4904_v57, %v4902_v51  ;;  %v4824_v33 = vpop.f32.mrb[180].mxu0  ;;  %v6753_v51 = vld [vmem:[#allocation14 + $0x60] ss:$8 sps:$4 sm:$0xff]   ;;  %v6754_v57 = vld [vmem:[#allocation14 + $0x74] ss:$8 sps:$4 sm:$0xff]  }
 0x6c7   : > { %v6037_v53 = vadd.f32 %v4824_v33, %v4120_v1  ;;  %v4826_v18 = vpop.f32.mrb[181].mxu0 }
 0x6c8   : > { %v6038_v31 = vadd.f32 %v4826_v18, %v4120_v1  ;;  %v4828_v14 = vpop.f32.mrb[182].mxu0  ;;  %5165 = vmatprep.subr.bf16.mxu0 %v4958_v49  ;;  %v4984_v1 = vpop.permute.xlu0 %4983 }
 0x6c9   : > { %v6039_v15 = vadd.f32 %v4828_v14, %v4125_v27  ;;  %v4830_v63 = vpop.f32.mrb[183].mxu0  ;;  %5166 = vmatpush1.bf16.msra.mxu0 %v4957_v58  ;;  %v4905_v43 = vmax.f32 %v6037_v53, 0.0  ;;  %v6756_v58 = vld [vmem:[#allocation14 + $0x70] ss:$8 sps:$4 sm:$0xff]   ;;  %v4989_v18 = vpop.permute.xlu1 %4988 }
 0x6ca   : > { %v6040_v30 = vadd.f32 %v4830_v63, %v4125_v27  ;;  %v4906_v16 = vmax.f32 %v6038_v31, 0.0 }
 0x6cb   : > { %v4907_v10 = vmax.f32 %v6039_v15, 0.0 }
 0x6cc   : > { %v4908_v19 = vmax.f32 %v6040_v30, 0.0 }
 0x6cd   : > { %v4959_v41 = vpack.c.bf16 %v4907_v10, %v4905_v43 }
 0x6ce   : > { %v4960_v47 = vpack.c.bf16 %v4908_v19, %v4906_v16  ;;  %v4834_v34 = vpop.f32.mrb[184].mxu0 }
 0x6cf   : > { %v6041_v37 = vadd.f32 %v4834_v34, %v4130_v25  ;;  %v4836_v9 = vpop.f32.mrb[185].mxu0 }
 0x6d0   : > { %v6042_v55 = vadd.f32 %v4836_v9, %v4130_v25  ;;  %v4838_v45 = vpop.f32.mrb[186].mxu0  ;;  %5167 = vmatprep.subr.bf16.mxu0 %v4960_v47  ;;  %v4999_v9 = vpop.permute.xlu1 %4998 }
 0x6d1   : > { %v6043_v44 = vadd.f32 %v4838_v45, %v4135_v12  ;;  %v4840_v2 = vpop.f32.mrb[187].mxu0  ;;  %5168 = vmatpush1.bf16.msra.mxu0 %v4959_v41  ;;  %v4909_v32 = vmax.f32 %v6041_v37, 0.0  ;;  %v4994_v41 = vpop.permute.xlu0 %4993 }
 0x6d2   : > { %v6044_v29 = vadd.f32 %v4840_v2, %v4135_v12  ;;  %v4910_v4 = vmax.f32 %v6042_v55, 0.0 }
 0x6d3   : > { %v4911_v42 = vmax.f32 %v6043_v44, 0.0 }
 0x6d4   : > { %v4912_v60 = vmax.f32 %v6044_v29, 0.0 }
 0x6d5   : > { %v4961_v23 = vpack.c.bf16 %v4911_v42, %v4909_v32 }
 0x6d6   : > { %v4962_v17 = vpack.c.bf16 %v4912_v60, %v4910_v4  ;;  %v4844_v38 = vpop.f32.mrb[188].mxu0 }
 0x6d7   : > { %v6045_v52 = vadd.f32 %v4844_v38, %v4140_v11  ;;  %v4846_v7 = vpop.f32.mrb[189].mxu0 }
 0x6d8   : > { %v6046_v56 = vadd.f32 %v4846_v7, %v4140_v11  ;;  %v4848_v8 = vpop.f32.mrb[190].mxu0  ;;  %5169 = vmatprep.subr.bf16.mxu0 %v4962_v17  ;;  %v5009_v7 = vpop.permute.xlu1 %5008 }
 0x6d9   : > { %v6047_v59 = vadd.f32 %v4848_v8, %v4145_v0  ;;  %v4850_v26 = vpop.f32.mrb[191].mxu0  ;;  %5170 = vmatpush1.bf16.msra.mxu0 %v4961_v23  ;;  %v4913_v20 = vmax.f32 %v6045_v52, 0.0  ;;  %v5004_v23 = vpop.permute.xlu0 %5003 }
 0x6da   : > { %v6048_v61 = vadd.f32 %v4850_v26, %v4145_v0  ;;  %v4914_v21 = vmax.f32 %v6046_v56, 0.0 }
 0x6db   : > { %v4915_v48 = vmax.f32 %v6047_v59, 0.0 }
 0x6dc   : > { %v4916_v36 = vmax.f32 %v6048_v61, 0.0 }
 0x6dd   : > { %v4963_v22 = vpack.c.bf16 %v4915_v48, %v4913_v20 }
 0x6de   : > { %v4964_v6 = vpack.c.bf16 %v4916_v36, %v4914_v21 }
 0x6e0   : > { %5171 = vmatprep.subr.bf16.mxu0 %v4964_v6 }
 0x6e1   : > { %5172 = vmatpush1.bf16.msra.mxu0 %v4963_v22  ;;  %v5014_v22 = vpop.permute.xlu0 %5013 }
 0x6e4   : > { %5174 = vmatmul.mubr.bf16.vlgmr.msra.gmra.mrb[192].mxu0 %v6733_v40 }
 0x6e5   : > { %5183 = vmatprep.mubr.bf16.mxu0 %v6736_v35 }
 0x6ec   : > { %5184 = vmatmul.mubr.bf16.gmra.mrb[196].mxu0 %v6738_v24 }
 0x6ed   : > { %5193 = vmatprep.mubr.bf16.mxu0 %v6739_v13  ;;  %v5019_v13 = vpop.permute.xlu1 %5018 }
 0x6f4   : > { %5194 = vmatmul.mubr.bf16.gmra.mrb[200].mxu0 %v6741_v5 }
 0x6f5   : > { %5203 = vmatprep.mubr.bf16.mxu0 %v6742_v54 }
 0x6fc   : > { %5204 = vmatmul.mubr.bf16.gmra.mrb[204].mxu0 %v6744_v46 }
 0x6fd   : > { %5213 = vmatprep.mubr.bf16.mxu0 %v6745_v39 }
 0x704   : > { %5214 = vmatmul.mubr.bf16.gmra.mrb[208].mxu0 %v6747_v3 }
 0x705   : > { %5223 = vmatprep.mubr.bf16.mxu0 %v6748_v62 }
 0x70c   : > { %5224 = vmatmul.mubr.bf16.gmra.mrb[212].mxu0 %v6750_v28 }
 0x70d   : > { %5233 = vmatprep.mubr.bf16.mxu0 %v6751_v50 }
 0x714   : > { %5234 = vmatmul.mubr.bf16.gmra.mrb[216].mxu0 %v6753_v51 }
 0x715   : > { %5243 = vmatprep.mubr.bf16.mxu0 %v6754_v57 }
 0x71c   : > { %5244 = vmatmul.mubr.bf16.gmra.mrb[220].mxu0 %v6756_v58  ;;  %v5024_v58 = vpop.permute.xlu0 %5023 }
 0x7b7   : > { %v5175_v49 = vpop.f32.mrb[192].mxu0 }
 0x7b8   : > { %v5176_v33 = vadd.f32 %v5175_v49, %v4984_v1  ;;  %v5177_v53 = vpop.f32.mrb[193].mxu0 }
 0x7b9   : > { %v5178_v27 = vadd.f32 %v5177_v53, %v4984_v1  ;;  %v5179_v31 = vpop.f32.mrb[194].mxu0 }
 0x7ba   : > { %v5180_v14 = vadd.f32 %v5179_v31, %v4989_v18  ;;  %v5181_v15 = vpop.f32.mrb[195].mxu0  ;;  %v5254_v30 = vmax.f32 %v5176_v33, 0.0 }
 0x7bb   : > { %v5182_v63 = vadd.f32 %v5181_v15, %v4989_v18  ;;  %v5255_v10 = vmax.f32 %v5178_v27, 0.0  ;;  %v5029_v18 = vpop.permute.xlu1 %5028 }
 0x7bc   : > { %v5256_v43 = vmax.f32 %v5180_v14, 0.0 }
 0x7bd   : > { %v5257_v16 = vmax.f32 %v5182_v63, 0.0 }
 0x7be   : > { %v5287_v19 = vpack.c.bf16 %v5256_v43, %v5254_v30 }
 0x7bf   : > { %v5288_v25 = vpack.c.bf16 %v5257_v16, %v5255_v10  ;;  %v5185_v47 = vpop.f32.mrb[196].mxu0 }
 0x7c0   : > { %v5186_v34 = vadd.f32 %v5185_v47, %v4994_v41  ;;  %v5187_v37 = vpop.f32.mrb[197].mxu0 }
 0x7c1   : > { %v5188_v12 = vadd.f32 %v5187_v37, %v4994_v41  ;;  %v5189_v55 = vpop.f32.mrb[198].mxu0  ;;  %5309 = vmatprep.subr.bf16.mxu1 %v5288_v25  ;;  %v5034_v41 = vpop.permute.xlu0 %5033 }
 0x7c2   : > { %v5190_v45 = vadd.f32 %v5189_v55, %v4999_v9  ;;  %v5191_v44 = vpop.f32.mrb[199].mxu0  ;;  %5310 = vmatpush1.bf16.msra.mxu1 %v5287_v19  ;;  %v5258_v29 = vmax.f32 %v5186_v34, 0.0 }
 0x7c3   : > { %v5192_v2 = vadd.f32 %v5191_v44, %v4999_v9  ;;  %v5259_v42 = vmax.f32 %v5188_v12, 0.0  ;;  %v5039_v9 = vpop.permute.xlu1 %5038 }
 0x7c4   : > { %v5260_v32 = vmax.f32 %v5190_v45, 0.0 }
 0x7c5   : > { %v5261_v4 = vmax.f32 %v5192_v2, 0.0 }
 0x7c6   : > { %v5289_v60 = vpack.c.bf16 %v5260_v32, %v5258_v29 }
 0x7c7   : > { %v5290_v11 = vpack.c.bf16 %v5261_v4, %v5259_v42  ;;  %v5195_v17 = vpop.f32.mrb[200].mxu0 }
 0x7c8   : > { %v5196_v38 = vadd.f32 %v5195_v17, %v5004_v23  ;;  %v5197_v52 = vpop.f32.mrb[201].mxu0 }
 0x7c9   : > { %v5198_v0 = vadd.f32 %v5197_v52, %v5004_v23  ;;  %v5199_v56 = vpop.f32.mrb[202].mxu0  ;;  %5311 = vmatprep.subr.bf16.mxu1 %v5290_v11  ;;  %v5044_v23 = vpop.permute.xlu0 %5043 }
 0x7ca   : > { %v5200_v8 = vadd.f32 %v5199_v56, %v5009_v7  ;;  %v5201_v59 = vpop.f32.mrb[203].mxu0  ;;  %5312 = vmatpush1.bf16.msra.mxu1 %v5289_v60  ;;  %v5262_v61 = vmax.f32 %v5196_v38, 0.0 }
 0x7cb   : > { %v5202_v26 = vadd.f32 %v5201_v59, %v5009_v7  ;;  %v5263_v48 = vmax.f32 %v5198_v0, 0.0  ;;  %v5049_v7 = vpop.permute.xlu1 %5048 }
 0x7cc   : > { %v5264_v20 = vmax.f32 %v5200_v8, 0.0 }
 0x7cd   : > { %v5265_v21 = vmax.f32 %v5202_v26, 0.0 }
 0x7ce   : > { %v5291_v36 = vpack.c.bf16 %v5264_v20, %v5262_v61 }
 0x7cf   : > { %v5292_v6 = vpack.c.bf16 %v5265_v21, %v5263_v48  ;;  %v5205_v40 = vpop.f32.mrb[204].mxu0 }
 0x7d0   : > { %v5206_v35 = vadd.f32 %v5205_v40, %v5014_v22  ;;  %v5207_v24 = vpop.f32.mrb[205].mxu0 }
 0x7d1   : > { %v5208_v5 = vadd.f32 %v5207_v24, %v5014_v22  ;;  %v5209_v54 = vpop.f32.mrb[206].mxu0  ;;  %5313 = vmatprep.subr.bf16.mxu1 %v5292_v6  ;;  %v5054_v22 = vpop.permute.xlu0 %5053 }
 0x7d2   : > { %v5210_v46 = vadd.f32 %v5209_v54, %v5019_v13  ;;  %v5211_v39 = vpop.f32.mrb[207].mxu0  ;;  %5314 = vmatpush1.bf16.msra.mxu1 %v5291_v36  ;;  %v5266_v62 = vmax.f32 %v5206_v35, 0.0 }
 0x7d3   : > { %v5212_v3 = vadd.f32 %v5211_v39, %v5019_v13  ;;  %v5267_v50 = vmax.f32 %v5208_v5, 0.0  ;;  %v5059_v13 = vpop.permute.xlu1 %5058 }
 0x7d4   : > { %v5268_v28 = vmax.f32 %v5210_v46, 0.0 }
 0x7d5   : > { %v5269_v51 = vmax.f32 %v5212_v3, 0.0 }
 0x7d6   : > { %v5293_v57 = vpack.c.bf16 %v5268_v28, %v5266_v62 }
 0x7d7   : > { %v5294_v1 = vpack.c.bf16 %v5269_v51, %v5267_v50  ;;  %v5215_v49 = vpop.f32.mrb[208].mxu0 }
 0x7d8   : > { %v5216_v33 = vadd.f32 %v5215_v49, %v5024_v58  ;;  %v5217_v53 = vpop.f32.mrb[209].mxu0  ;;  %v5307_v49 = vpop.permute.xlu0 %5306 }
 0x7d9   : > { %v5218_v27 = vadd.f32 %v5217_v53, %v5024_v58  ;;  %v5219_v31 = vpop.f32.mrb[210].mxu0  ;;  %5315 = vmatprep.subr.bf16.mxu1 %v5294_v1  ;;  %v5286_v1 = vld [vmem:[#allocation17] sm:$0xf] }
 0x7da   : > { %v5220_v14 = vadd.f32 %v5219_v31, %v5029_v18  ;;  %v5221_v15 = vpop.f32.mrb[211].mxu0  ;;  %5316 = vmatpush1.bf16.msra.mxu1 %v5293_v57  ;;  %v5270_v30 = vmax.f32 %v5216_v33, 0.0 }
 0x7db   : > { %v5222_v63 = vadd.f32 %v5221_v15, %v5029_v18  ;;  %v5271_v10 = vmax.f32 %v5218_v27, 0.0 }
 0x7dc   : > { %v5272_v43 = vmax.f32 %v5220_v14, 0.0 }
 0x7dd   : > { %v5273_v16 = vmax.f32 %v5222_v63, 0.0 }
 0x7de   : > { %v5295_v19 = vpack.c.bf16 %v5272_v43, %v5270_v30 }
 0x7df   : > { %v5296_v25 = vpack.c.bf16 %v5273_v16, %v5271_v10  ;;  %v5225_v47 = vpop.f32.mrb[212].mxu0 }
 0x7e0   : > { %v5226_v34 = vadd.f32 %v5225_v47, %v5034_v41  ;;  %v5227_v37 = vpop.f32.mrb[213].mxu0 }
 0x7e1   : > { %v5228_v12 = vadd.f32 %v5227_v37, %v5034_v41  ;;  %v5229_v55 = vpop.f32.mrb[214].mxu0  ;;  %5317 = vmatprep.subr.bf16.mxu1 %v5296_v25 }
 0x7e2   : > { %v5230_v45 = vadd.f32 %v5229_v55, %v5039_v9  ;;  %v5231_v44 = vpop.f32.mrb[215].mxu0  ;;  %5318 = vmatpush1.bf16.msra.mxu1 %v5295_v19  ;;  %v5274_v29 = vmax.f32 %v5226_v34, 0.0 }
 0x7e3   : > { %v5232_v2 = vadd.f32 %v5231_v44, %v5039_v9  ;;  %v5275_v42 = vmax.f32 %v5228_v12, 0.0 }
 0x7e4   : > { %v5276_v32 = vmax.f32 %v5230_v45, 0.0 }
 0x7e5   : > { %v5277_v4 = vmax.f32 %v5232_v2, 0.0 }
 0x7e6   : > { %v5297_v60 = vpack.c.bf16 %v5276_v32, %v5274_v29 }
 0x7e7   : > { %v5298_v11 = vpack.c.bf16 %v5277_v4, %v5275_v42  ;;  %v5235_v17 = vpop.f32.mrb[216].mxu0 }
 0x7e8   : > { %v5236_v38 = vadd.f32 %v5235_v17, %v5044_v23  ;;  %v5237_v52 = vpop.f32.mrb[217].mxu0 }
 0x7e9   : > { %v5238_v0 = vadd.f32 %v5237_v52, %v5044_v23  ;;  %v5239_v56 = vpop.f32.mrb[218].mxu0  ;;  %5319 = vmatprep.subr.bf16.mxu1 %v5298_v11 }
 0x7ea   : > { %v5240_v8 = vadd.f32 %v5239_v56, %v5049_v7  ;;  %v5241_v59 = vpop.f32.mrb[219].mxu0  ;;  %5320 = vmatpush1.bf16.msra.mxu1 %v5297_v60  ;;  %v5278_v61 = vmax.f32 %v5236_v38, 0.0 }
 0x7eb   : > { %v5242_v26 = vadd.f32 %v5241_v59, %v5049_v7  ;;  %v5279_v48 = vmax.f32 %v5238_v0, 0.0 }
 0x7ec   : > { %v5280_v20 = vmax.f32 %v5240_v8, 0.0 }
 0x7ed   : > { %v5281_v21 = vmax.f32 %v5242_v26, 0.0 }
 0x7ee   : > { %v5299_v36 = vpack.c.bf16 %v5280_v20, %v5278_v61 }
 0x7ef   : > { %v5300_v6 = vpack.c.bf16 %v5281_v21, %v5279_v48  ;;  %v5245_v40 = vpop.f32.mrb[220].mxu0 }
 0x7f0   : > { %v5246_v35 = vadd.f32 %v5245_v40, %v5054_v22  ;;  %v5247_v24 = vpop.f32.mrb[221].mxu0 }
 0x7f1   : > { %v5248_v5 = vadd.f32 %v5247_v24, %v5054_v22  ;;  %v5249_v54 = vpop.f32.mrb[222].mxu0  ;;  %5321 = vmatprep.subr.bf16.mxu1 %v5300_v6 }
 0x7f2   : > { %v5250_v46 = vadd.f32 %v5249_v54, %v5059_v13  ;;  %v5251_v39 = vpop.f32.mrb[223].mxu0  ;;  %5322 = vmatpush1.bf16.msra.mxu1 %v5299_v36  ;;  %v5282_v62 = vmax.f32 %v5246_v35, 0.0 }
 0x7f3   : > { %v5252_v3 = vadd.f32 %v5251_v39, %v5059_v13  ;;  %v5283_v50 = vmax.f32 %v5248_v5, 0.0 }
 0x7f4   : > { %v5284_v28 = vmax.f32 %v5250_v46, 0.0 }
 0x7f5   : > { %v5285_v51 = vmax.f32 %v5252_v3, 0.0 }
 0x7f6   : > { %v5301_v57 = vpack.c.bf16 %v5284_v28, %v5282_v62 }
 0x7f7   : > { %v5302_v58 = vpack.c.bf16 %v5285_v51, %v5283_v50 }
 0x7f9   : > { %5323 = vmatprep.subr.bf16.mxu1 %v5302_v58 }
 0x7fa   : > { %5324 = vmatpush1.bf16.msra.mxu1 %v5301_v57 }
 0x7fd   : > { %5342 = vmatmul.mubr.bf16.vlgmr.msra.gmra.mrb[128].mxu1 %v5286_v1 }
 0x8d0   : > { %v5343_v33 = vpop.f32.mrb[128].mxu1 }
 0x8d1   : > { %v5344_v53 = vadd.f32 %v5343_v33, %v5307_v49  ;;  %v5345_v18 = vpop.f32.mrb[129].mxu1 }
 0x8d2   : > { %v5346_v27 = vadd.f32 %v5345_v18, %v5307_v49  ;;  %v5347_v31 = vpop.f32.mrb[130].mxu1 }
 0x8d3   : > { %5350 = vst [vmem:[%s563_s28] sm:$0xff] %v5344_v53  ;;  %v5348_v14 = vpop.f32.mrb[131].mxu1 }
 0x8d4   : > { %5351 = vst [vmem:[%s563_s28 + $0x8] sm:$0xff] %v5346_v27 }
 0x8d5   : > { %7080 = shalt.err (!%p7077_p8)
}
 0x8d6   : > { %s7081_s23 = scalar_lea.hbm %s8042_s26, 256  ;;  %s7085_s15 = scalar_lea.hbm %s8150_s3, 512 }
 0x8d7   : > { %p7082_p3 = scmp.ne.s32.totalorder %s8042_s26, %s7081_s23  ;;  %p7086_p13 = scmp.lt.u32.totalorder %s8042_s26, %s8150_s3 }
 0x8d8   : > { %p7087_p1 = scmp.lt.u32.totalorder %s7085_s15, %s7081_s23  ;;  %p7089_p2 = scmp.lt.u32.totalorder %s7081_s23, %s8042_s26 }
 0x8d9   : > { %p7083_p11 = pnand %p7082_p3, %p8151_p9 }
 0x8da   : > { %p7088_p4 = por %p7087_p1, %p7086_p13 }
 0x8db   : > { %p7084_p6 = pneg %p7083_p11 }
 0x8dc   : > { %p7090_p10 = por %p7089_p2, %p7088_p4 }
 0x8de   : > { %p7091_p12 = pnand %p7090_p10, %p7084_p6 }
 0x8e0   : > { %7094 = shalt.err (!%p7091_p12)
}
 0x8e1   : > { %6283 = dma.vmem_to_hbm [thread:$0]  (%p8151_p9), %s8044_s27, 256, %s8042_s26, %s5353_s1  }
 0x8e2 PF: > { %s5381_s0 = sand.u32 1, %s7149_s17   ;;  %p8152_p0 = scmp.ne.s32.totalorder %s8134_s30, 0 }
 0x8e3   : > { %p8153_p7 = scmp.ge.s32.totalorder %s7169_s22, 2  ;;  %s5382_s24 = scalar_lea.sflag [#allocation4], %s5381_s0 }
 0x8e5   : > { %p6321_p5 = pnand %p8153_p7, %p8152_p0 }
 0x8e7   : > { %7144 = dma.done.wait (!%p6321_p5), %s5382_s24, 256  }
 0x8e8   : > { %7146 = vsyncadd (!%p6321_p5), %s5382_s24, 4294967040  ;;  %s32_s22 = sadd.s32 1, %s7169_s22   ;;  %s8154_s17 = smov %s7153_s18 }
 0x8e9   : > { %p29_p8 = scmp.ge.s32.totalorder %s32_s22, 4   ;;  %s8155_s18 = smov %s7157_s19 }
 0x8ea   : > { %s8156_s19 = smov %s7552_s12  ;;  %s8157_s20 = smov %s7165_s21 }
 0x8eb   : > { %s8158_s21 = smov %s8160_s29  ;;  %31 = sbr.rel (!%p29_p8) target bundleno = 16 (0x10), region = 149 }
 0x8f2   :  { %5387 = vsyncpa [#allocation3], 1 }
 0x8f3   :  { %5389 = vsyncpa [#allocation3 + $0x1], 1 }
 0x8f4   :  { %5390 = vsyncpa [#allocation6], 1 }
 0x8f5   :  { %5391 = vsyncpa [#allocation9], 1 }
 0x8f6   :  { %5392 = vsyncpa [#allocation12], 1 }
 0x8f7   :  { %5393 = vsyncpa [#allocation15], 1 }
 0x8f8   :  { %5394 = vsyncpa [#allocation18], 1 }
 0x8f9   :  { %5395 = vsyncpa [#allocation4], 1 }
 0x8fa   :  { %5397 = vsyncpa [#allocation4 + $0x1], 1 }

</bundles_post_ra>
